<compile_context>
chip_gen: v7x
topology: tpu7x:2x2x1
jax: 0.10.0
libtpu: 0.0.40
codegen_flags: <defaults>
</compile_context>

<pallas_src>
import functools

import jax
import jax.numpy as jnp
from jax.experimental import pallas as pl
from jax.experimental.pallas import tpu as pltpu


BBOX_ATTRS = 15          # 5 + 10 landmarks (prediction channels)
YTRUE_ATTRS = 16         # 4 box + 1 obj + 10 landmarks + 1 landmark flag
# log((1 - 1e-7) / 1e-7): clipping sigmoid(z) to [1e-7, 1-1e-7] == clipping z to +/- this.
_BCE_LOGIT_CLAMP = 16.118095651


def _detect_num_tensorcores():
    """Best-effort TensorCores-per-chip query (2 on v7x, 1 on v5e/v6e).  Never raises."""
    try:
        kind = jax.devices()[0].device_kind.lower()
        if "v7" in kind:
            return 2
    except Exception:
        pass
    try:
        info = pltpu.get_tpu_info()
        for attr in ("num_cores", "core_count", "num_tensorcores", "tensorcore_count"):
            v = getattr(info, attr, None)
            if isinstance(v, int) and v > 0:
                return min(int(v), 2)
    except Exception:
        pass
    return 1


def _yolo_loss_kernel(grid_ref, aux_ref, yt_ref, pred_hbm, out_ref, pbuf, sem, *, approx):
    """One grid step: `tb` (batch, anchor) planes x one `thw` lane chunk.

    grid_ref : (3, thw)             f32   [grid_x; grid_y; lane_valid]     per lane chunk
    aux_ref  : (tb, 3, 1)           f32   [anchor_w, anchor_h, plane_valid] per plane
    yt_ref   : (16, tb, thw)        feed  targets, channel-outermost (clean tiles)
    pred_hbm : (planes_pad, 15*hw)  feed  raw conv outputs, left in HBM (manual DMA)
    out_ref  : (1, 5, thw)          f32   per-(core, chunk) partial sums, accum over j
    pbuf     : (2*15, tb, thw)      feed  double-buffered per-channel prediction tiles
    sem      : DMA((2,))                  one semaphore per buffer slot
    """
    c = pl.program_id(0)                      # core shard (v7x: one per TensorCore)
    k = pl.program_id(1)                      # H*W lane chunk
    j = pl.program_id(2)                      # plane block within this core (reduction)
    nb = pl.num_programs(2)

    tb = pbuf.shape[1]
    thw = pbuf.shape[2]
    hw_full = pred_hbm.shape[1] // BBOX_ATTRS                 # lane-padded H*W of the head
    hw0 = pl.multiple_of(k * thw, 128)
    base = pl.multiple_of((c * nb + j) * tb, tb)
    slot = j % 2

    def pred_copies(blk_base, slot_):
        """15 per-channel strided DMAs HBM -> (tb, thw) VMEM tiles for one plane block."""
        cps = []
        for ch in range(BBOX_ATTRS):
            col = pl.multiple_of(ch * hw_full + hw0, 128)
            cps.append(pltpu.make_async_copy(
                pred_hbm.at[pl.ds(blk_base, tb), pl.ds(col, thw)],
                pbuf.at[slot_ * BBOX_ATTRS + ch],
                sem.at[slot_]))
        return cps

    @pl.when(j == 0)
    def _prime():                              # first block of this (core, chunk)
        for cp in pred_copies(base, slot):
            cp.start()

    @pl.when(j + 1 < nb)
    def _prefetch():                           # overlap next block's DMAs with compute
        for cp in pred_copies(base + tb, 1 - slot):
            cp.start()

    for cp in pred_copies(base, slot):         # wait for the current block's 15 tiles
        cp.wait()

    f32 = lambda v: v.astype(jnp.float32)
    sb = slot * BBOX_ATTRS

    gx = grid_ref[0:1, :]                      # (1, thw)  sublane-broadcast
    gy = grid_ref[1:2, :]
    lane_v = grid_ref[2:3, :]                  # 1.0 real H*W cell, 0.0 lane padding
    anchor_w = aux_ref[:, 0, :]                # (tb, 1)   lane-broadcast
    anchor_h = aux_ref[:, 1, :]
    plane_v = aux_ref[:, 2, :]                 # 1.0 real plane, 0.0 padded plane
    vmask = plane_v * lane_v                   # (tb, thw) combined validity

    # --- decode predictions (sigmoid on x, y, w, h; conf stays a logit) ---
    x = jax.nn.sigmoid(f32(pbuf[sb + 0]))
    y = jax.nn.sigmoid(f32(pbuf[sb + 1]))
    w = jax.nn.sigmoid(f32(pbuf[sb + 2]))
    h = jax.nn.sigmoid(f32(pbuf[sb + 3]))
    conf_logit = f32(pbuf[sb + 4])

    pb_x = x * 2.0 - 0.5 + gx
    pb_y = y * 2.0 - 0.5 + gy
    pb_w = (w * 2.0) * (w * 2.0) * anchor_w
    pb_h = (h * 2.0) * (h * 2.0) * anchor_h

    # --- targets (contiguous (tb, thw) tiles, no sublane gathers) ---
    t_x = f32(yt_ref[0])
    t_y = f32(yt_ref[1])
    t_w = f32(yt_ref[2])
    t_h = f32(yt_ref[3])
    t_obj = f32(yt_ref[4])
    t_flag = f32(yt_ref[15])

    # --- GIoU (component-wise box_giou) ---
    b1_min_x = pb_x - pb_w * 0.5
    b1_max_x = pb_x + pb_w * 0.5
    b1_min_y = pb_y - pb_h * 0.5
    b1_max_y = pb_y + pb_h * 0.5
    b2_min_x = t_x - t_w * 0.5
    b2_max_x = t_x + t_w * 0.5
    b2_min_y = t_y - t_h * 0.5
    b2_max_y = t_y + t_h * 0.5

    iw = jnp.maximum(jnp.minimum(b1_max_x, b2_max_x) - jnp.maximum(b1_min_x, b2_min_x), 0.0)
    ih = jnp.maximum(jnp.minimum(b1_max_y, b2_max_y) - jnp.maximum(b1_min_y, b2_min_y), 0.0)
    inter = iw * ih
    union = pb_w * pb_h + t_w * t_h - inter
    ew = jnp.maximum(jnp.maximum(b1_max_x, b2_max_x) - jnp.minimum(b1_min_x, b2_min_x), 0.0)
    eh = jnp.maximum(jnp.maximum(b1_max_y, b2_max_y) - jnp.minimum(b1_min_y, b2_min_y), 0.0)
    earea = ew * eh
    inv_u = pl.reciprocal(union + 1e-9, approx=approx)        # EUP, not a VPU divide
    inv_e = pl.reciprocal(earea + 1e-9, approx=approx)
    iou = inter * inv_u
    giou = iou - (earea - union) * inv_e

    pos = t_obj == 1.0
    posf = jnp.where(pos, vmask, 0.0)                 # positive AND valid cell
    landf = jnp.where(t_flag == 0.0, vmask, 0.0)      # landmark-selected AND valid cell

    # --- landmark smooth-L1: unrolled per channel, running (tb, thw) sum ---
    lsum = jnp.zeros_like(x)
    for i in range(10):
        d = f32(pbuf[sb + 5 + i]) - f32(yt_ref[5 + i])
        ad = jnp.abs(d)
        lsum = lsum + jnp.where(ad < 1.0, 0.5 * d * d, ad - 0.5)
    landm_cell = lsum * landf

    # --- confidence BCE vs tobj = clamp(giou, 0) on positives.
    #     Logits form with |z| clamped to log((1-eps)/eps) == the module's prob clip. ---
    tobj = jnp.where(pos, jnp.maximum(giou, 0.0), 0.0)
    z = jnp.clip(conf_logit, -_BCE_LOGIT_CLAMP, _BCE_LOGIT_CLAMP)
    bce = jnp.maximum(z, 0.0) - z * tobj + jnp.log(1.0 + jnp.exp(-jnp.abs(z)))
    conf_cell = bce * vmask

    # --- sublane-reduce (XLU) then accumulate a small (5, thw) block ---
    contrib = jnp.concatenate([
        jnp.sum(posf * (1.0 - giou), axis=0, keepdims=True),
        jnp.sum(posf, axis=0, keepdims=True),
        jnp.sum(landm_cell, axis=0, keepdims=True),
        jnp.sum(landf, axis=0, keepdims=True),
        jnp.sum(conf_cell, axis=0, keepdims=True),
    ], axis=0)                                         # (5, thw)

    @pl.when(j == 0)
    def _first():                                      # direct write: no zero-fill pass
        out_ref[0] = contrib

    @pl.when(j > 0)
    def _acc():
        out_ref[0] += contrib


def yolo_loss_pallas(l, x_input, targets, y_true, anchors, input_shape, anchors_mask, *,
                     y_true_layout="channel_first", tb=None, ncores=None, thw=None,
                     approx_recip=True, vmem_limit_bytes=None):
    """Pallas implementation of YoloLoss.forward.

    x_input : (bs, A*15, H, W) NCHW conv output, f32 or bf16 (bf16 halves HBM bytes;
              math is always f32).  Consumed without any HBM relayout.
    targets : list of per-image targets; only len(targets) (== bs) is used, as in torch.
    y_true  : layout "channel_first": (16, bs, A, H, W)  -- production fast path, free
                  reshape to the kernel's channel-outermost layout;
              layout "module":        (bs, A, H, W, 16)  -- module-faithful fallback, one
                  documented relayout pass.
    thw     : optional lane-chunk size (multiple of 128); chunk H*W on v7x large heads
              (>= 40x40) to bound per-step VMEM.  On v6e prefer vmem_limit_bytes instead.
    Returns (loss, loss_loc, loss_landm, loss_conf).
    """
    bs, C, in_h, in_w = x_input.shape
    A = len(anchors_mask[l])
    assert C == A * BBOX_ATTRS
    assert len(targets) == bs
    hw = in_h * in_w
    planes = bs * A

    # anchors scaled to feature-map units (same math as the torch module)
    stride_h = input_shape[0] / in_h
    stride_w = input_shape[1] / in_w
    scaled = jnp.asarray(anchors, jnp.float32) / jnp.asarray([stride_w, stride_h], jnp.float32)
    anchor_wh = scaled[jnp.asarray(anchors_mask[l])]                    # (A, 2)

    # --- feed dtype: stream inputs at storage precision, compute in f32 ---
    feed_dtype = (jnp.bfloat16
                  if (x_input.dtype == jnp.bfloat16 and y_true.dtype == jnp.bfloat16)
                  else jnp.float32)
    sub = 16 if feed_dtype == jnp.bfloat16 else 8          # sublane packing of feed dtype

    # --- tiling: tb planes on sublanes, thw lanes, generation-aware core split ---
    if tb is None:
        tb = sub
    assert tb % sub == 0, f"tb must be a multiple of {sub} for {feed_dtype}"
    if ncores is None:
        ncores = _detect_num_tensorcores()
    ncores = max(1, min(ncores, pl.cdiv(planes, tb)))      # don't pad just to feed idle cores
    nb = pl.cdiv(pl.cdiv(planes, tb), ncores)              # plane blocks per core
    planes_pad = ncores * nb * tb

    hw_pad = 128 * pl.cdiv(hw, 128)
    # TODO(synk): for heads whose H*W is not a 128-multiple (13x13, 20x20, 40x40), have the
    # producer emit lane-padded tensors; the jnp.pad below is an extra HBM pass.
    if thw is None:
        thw = hw_pad
    assert thw % 128 == 0 and hw_pad % thw == 0
    n_hw = hw_pad // thw

    # --- pred: free NCHW reshape; stays in HBM, kernel DMAs per-channel tiles itself ---
    pred = x_input.reshape(planes, BBOX_ATTRS, hw).astype(feed_dtype)

    # --- y_true -> channel-outermost (16, planes, hw) ---
    if y_true_layout == "channel_first":
        assert y_true.shape == (YTRUE_ATTRS, bs, A, in_h, in_w)
        yt = y_true.reshape(YTRUE_ATTRS, planes, hw).astype(feed_dtype)          # free
    elif y_true_layout == "module":
        assert y_true.shape == (bs, A, in_h, in_w, YTRUE_ATTRS)
        # TODO(synk): produce y_true channel-first upstream (target assignment builds it
        # anyway); this transpose is one extra HBM pass on an HBM-bound kernel.
        yt = jnp.transpose(y_true.reshape(planes, hw, YTRUE_ATTRS), (2, 0, 1)).astype(feed_dtype)
    else:
        raise ValueError(f"unknown y_true_layout {y_true_layout!r}")

    if planes_pad != planes or hw_pad != hw:
        pred = jnp.pad(pred, ((0, planes_pad - planes), (0, 0), (0, hw_pad - hw)))
        yt = jnp.pad(yt, ((0, 0), (0, planes_pad - planes), (0, hw_pad - hw)))
    pred = pred.reshape(planes_pad, BBOX_ATTRS * hw_pad)    # free: 2-D for strided DMAs

    # per-plane [anchor_w, anchor_h, plane_valid] table
    aw = jnp.tile(anchor_wh[:, 0], bs)
    ah = jnp.tile(anchor_wh[:, 1], bs)
    vl = jnp.ones((planes,), jnp.float32)
    if planes_pad != planes:
        pn = planes_pad - planes
        aw = jnp.concatenate([aw, jnp.ones((pn,), jnp.float32)])
        ah = jnp.concatenate([ah, jnp.ones((pn,), jnp.float32)])
        vl = jnp.concatenate([vl, jnp.zeros((pn,), jnp.float32)])
    aux = jnp.stack([aw, ah, vl], axis=1).reshape(planes_pad, 3, 1)

    # [grid_x; grid_y; lane_valid], built once and fetched per lane chunk
    idx = jnp.arange(hw_pad, dtype=jnp.int32)
    grid_xyv = jnp.stack([(idx % in_w).astype(jnp.float32),
                          (idx // in_w).astype(jnp.float32),
                          (idx < hw).astype(jnp.float32)], axis=0)               # (3, hw_pad)

    plane_block = lambda c, k, j: (c * nb + j, 0, 0)
    kernel = functools.partial(_yolo_loss_kernel, approx=approx_recip)

    partial_sums = pl.pallas_call(
        kernel,
        out_shape=jax.ShapeDtypeStruct((ncores, 5, hw_pad), jnp.float32),
        grid_spec=pltpu.PrefetchScalarGridSpec(
            num_scalar_prefetch=0,
            grid=(ncores, n_hw, nb),
            in_specs=[
                pl.BlockSpec((3, thw), lambda c, k, j: (0, k)),
                pl.BlockSpec((tb, 3, 1), plane_block),
                pl.BlockSpec((YTRUE_ATTRS, tb, thw), lambda c, k, j: (0, c * nb + j, k)),
                pl.BlockSpec(memory_space=pl.ANY),           # pred stays in HBM
            ],
            out_specs=pl.BlockSpec((1, 5, thw), lambda c, k, j: (c, 0, k)),
            scratch_shapes=[
                pltpu.VMEM((2 * BBOX_ATTRS, tb, thw), feed_dtype),   # double-buffered tiles
                pltpu.SemaphoreType.DMA((2,)),
            ]),
        compiler_params=pltpu.CompilerParams(
            dimension_semantics=("parallel", "arbitrary", "arbitrary"),
            vmem_limit_bytes=vmem_limit_bytes),
    )(grid_xyv, aux, yt, pred)

    # tiny final reduce, done once in XLA
    sums = jnp.sum(partial_sums, axis=(0, 2))
    loss_loc = sums[0] / sums[1]                 # mean over positives (NaN if none, like torch)
    loss_landm = sums[2] / (sums[3] * 10.0)      # smooth_l1 mean over selected elements
    loss_conf = sums[4] / float(planes * hw)     # mean BCE over all (real) cells
    loss = loss_loc + 10.0 * loss_landm + loss_conf
    return loss, loss_loc, loss_landm, loss_conf


# ----------------------------- pure-JAX reference -----------------------------
def yolo_loss_ref(l, inp, y_true, anchors, input_shape, anchors_mask):
    bs, C, in_h, in_w = inp.shape
    A = len(anchors_mask[l])
    stride_h = input_shape[0] / in_h
    stride_w = input_shape[1] / in_w
    scaled = jnp.asarray(anchors, jnp.float32) / jnp.asarray([stride_w, stride_h], jnp.float32)
    anc = scaled[jnp.asarray(anchors_mask[l])]

    pred = inp.reshape(bs, A, BBOX_ATTRS, in_h, in_w).transpose(0, 1, 3, 4, 2)
    x = jax.nn.sigmoid(pred[..., 0]); y = jax.nn.sigmoid(pred[..., 1])
    w = jax.nn.sigmoid(pred[..., 2]); h = jax.nn.sigmoid(pred[..., 3])
    conf = jax.nn.sigmoid(pred[..., 4])
    lm = pred[..., 5:]

    gx = jnp.broadcast_to(jnp.arange(in_w, dtype=jnp.float32)[None, :], (in_h, in_w))
    gy = jnp.broadcast_to(jnp.arange(in_h, dtype=jnp.float32)[:, None], (in_h, in_w))
    aw = anc[:, 0][None, :, None, None]
    ah = anc[:, 1][None, :, None, None]
    pbx = x * 2.0 - 0.5 + gx
    pby = y * 2.0 - 0.5 + gy
    pbw = (w * 2.0) ** 2 * aw
    pbh = (h * 2.0) ** 2 * ah
    b1 = jnp.stack([pbx, pby, pbw, pbh], -1)
    b2 = y_true[..., :4]

    def giou_fn(b1, b2):
        b1_xy, b1_wh = b1[..., :2], b1[..., 2:4]
        b2_xy, b2_wh = b2[..., :2], b2[..., 2:4]
        b1_min, b1_max = b1_xy - b1_wh / 2, b1_xy + b1_wh / 2
        b2_min, b2_max = b2_xy - b2_wh / 2, b2_xy + b2_wh / 2
        iwh = jnp.maximum(jnp.minimum(b1_max, b2_max) - jnp.maximum(b1_min, b2_min), 0.0)
        inter = iwh[..., 0] * iwh[..., 1]
        union = b1_wh[..., 0] * b1_wh[..., 1] + b2_wh[..., 0] * b2_wh[..., 1] - inter
        iou = inter / (union + 1e-9)
        ewh = jnp.maximum(jnp.maximum(b1_max, b2_max) - jnp.minimum(b1_min, b2_min), 0.0)
        earea = ewh[..., 0] * ewh[..., 1]
        return iou - (earea - union) / (earea + 1e-9)

    giou = giou_fn(b1, b2)
    pos = y_true[..., 4] == 1.0
    loss_loc = jnp.sum(jnp.where(pos, 1.0 - giou, 0.0)) / jnp.sum(pos.astype(jnp.float32))
    land = y_true[..., -1] == 0.0
    d = lm - y_true[..., 5:-1]
    ad = jnp.abs(d)
    sl1 = jnp.where(ad < 1.0, 0.5 * d * d, ad - 0.5)
    loss_landm = jnp.sum(sl1 * land[..., None].astype(jnp.float32)) / (
        jnp.sum(land.astype(jnp.float32)) * 10.0)
    tobj = jnp.where(pos, jnp.maximum(giou, 0.0), 0.0)
    pc = jnp.clip(conf, 1e-7, 1.0 - 1e-7)
    bce = -tobj * jnp.log(pc) - (1.0 - tobj) * jnp.log(1.0 - pc)
    loss_conf = jnp.mean(bce)
    loss = loss_loc + 10.0 * loss_landm + loss_conf
    return loss, loss_loc, loss_landm, loss_conf


if __name__ == "__main__":
    anchors = [[10.0, 13.0], [16.0, 30.0], [33.0, 23.0],
               [30.0, 61.0], [62.0, 45.0], [59.0, 119.0]]
    anchors_mask = [[4, 5], [2, 3], [0, 1]]
    l = 0
    A = len(anchors_mask[l])

    def make_inputs(key, bs, H, W):
        k1, k2, k3, k4, k5, k6 = jax.random.split(key, 6)
        x_in = jax.random.normal(k1, (bs, A * BBOX_ATTRS, H, W), jnp.float32)
        t_xy = jax.random.uniform(k2, (2, bs, A, H, W), jnp.float32, 0.0, float(W))
        t_wh = jax.random.uniform(k3, (2, bs, A, H, W), jnp.float32, 1.0, 8.0)
        t_obj = (jax.random.uniform(k4, (1, bs, A, H, W)) > 0.8).astype(jnp.float32)
        t_lm = jax.random.normal(k5, (10, bs, A, H, W), jnp.float32)
        t_flag = (jax.random.uniform(k6, (1, bs, A, H, W)) > 0.5).astype(jnp.float32)
        y_cf = jnp.concatenate([t_xy, t_wh, t_obj, t_lm, t_flag], axis=0)   # (16,bs,A,H,W)
        y_mod = jnp.transpose(y_cf, (1, 2, 3, 4, 0))                        # (bs,A,H,W,16)
        return x_in, y_cf, y_mod

    def check(got, want, tol):
        for g, w_ in zip(got, want):
            assert jnp.allclose(g, w_, rtol=tol, atol=tol), (g, w_)

    # Case A: f32, channel-first y_true, forced 2-way core split of the plane blocks
    # (exercises the (c*nb + j) plane-block sharding; runs serially on 1-TC parts).
    x_in, yt_cf, yt_mod = make_inputs(jax.random.PRNGKey(0), 8, 16, 16)     # 16 planes
    targets = [None] * 8
    input_shape = (64, 64)
    ref = yolo_loss_ref(l, x_in, yt_mod, anchors, input_shape, anchors_mask)
    out = yolo_loss_pallas(l, x_in, targets, yt_cf, anchors, input_shape, anchors_mask,
                           ncores=2)
    jax.block_until_ready(out)
    check(out, ref, 5e-3)

    # Case B: module-layout y_true fallback, H*W lane chunking (thw=128), 1 core,
    # exact reciprocals; exercises multi-block accumulation + DMA prefetch (nb=2).
    out = yolo_loss_pallas(l, x_in, targets, yt_mod, anchors, input_shape, anchors_mask,
                           y_true_layout="module", ncores=1, thw=128, approx_recip=False)
    jax.block_until_ready(out)
    check(out, ref, 5e-3)

    # Case C: bf16-streamed inputs (tb auto-raises to 16); reference uses the same
    # bf16-rounded values, so only in-kernel f32 accumulation order differs.
    x_bf = x_in.astype(jnp.bfloat16)
    yt_cf_bf = yt_cf.astype(jnp.bfloat16)
    ref_bf = yolo_loss_ref(l, x_bf.astype(jnp.float32),
                           jnp.transpose(yt_cf_bf.astype(jnp.float32), (1, 2, 3, 4, 0)),
                           anchors, input_shape, anchors_mask)
    out = yolo_loss_pallas(l, x_bf, targets, yt_cf_bf, anchors, input_shape, anchors_mask)
    jax.block_until_ready(out)
    check(out, ref_bf, 5e-3)

    # Case D: 12x12 head (H*W=144, not a 128 multiple) + 6 planes: exercises lane padding
    # with the lane-valid row and plane padding with plane_valid masking.
    x_in2, yt_cf2, yt_mod2 = make_inputs(jax.random.PRNGKey(1), 3, 12, 12)
    targets2 = [None] * 3
    ref2 = yolo_loss_ref(l, x_in2, yt_mod2, anchors, (48, 48), anchors_mask)
    out2 = yolo_loss_pallas(l, x_in2, targets2, yt_cf2, anchors, (48, 48), anchors_mask)
    jax.block_until_ready(out2)
    check(out2, ref2, 5e-3)

    print("KERNEL_OK")
</pallas_src>

<mosaic_0001>
module attributes {stable_mosaic.version = 11 : i64} {
  func.func @_yolo_loss_kernel(%arg0: i32, %arg1: i32, %arg2: i32, %arg3: memref<3x256xf32, #tpu.memory_space<vmem>>, %arg4: memref<8x3x1xf32, #tpu.memory_space<vmem>>, %arg5: memref<16x8x256xf32, #tpu.memory_space<vmem>>, %arg6: memref<16x3840xf32, #tpu.memory_space<any>>, %arg7: memref<1x5x256xf32, #tpu.memory_space<vmem>>, %arg8: memref<30x8x256xf32, #tpu.memory_space<vmem>>, %arg9: memref<2x!tpu.dma_semaphore, #tpu.memory_space<semaphore_mem>>) attributes {dimension_semantics = [#tpu.dimension_semantics<parallel>, #tpu.dimension_semantics<arbitrary>, #tpu.dimension_semantics<arbitrary>], iteration_bounds = array<i64: 2, 1, 1>, scalar_prefetch = 0 : i64, scratch_operands = 2 : i64, tpu.core_type = #tpu.core_type<tc>, window_params = [{transform_indices = @transform_0, window_bounds = array<i64: 3, 256>}, {transform_indices = @transform_1, window_bounds = array<i64: 8, 3, 1>}, {transform_indices = @transform_2, window_bounds = array<i64: 16, 8, 256>}, {}, {transform_indices = @transform_4, window_bounds = array<i64: 1, 5, 256>}]} {
    %c256_i32 = arith.constant 256 : i32
    %0 = arith.muli %arg1, %c256_i32 : i32
    %1 = tpu.assume_multiple %0, 128 : i32
    %c1_i32 = arith.constant 1 : i32
    %2 = arith.muli %arg0, %c1_i32 : i32
    %3 = arith.addi %2, %arg2 : i32
    %c8_i32 = arith.constant 8 : i32
    %4 = arith.muli %3, %c8_i32 : i32
    %5 = tpu.assume_multiple %4, 8 : i32
    %c2_i32 = arith.constant 2 : i32
    %c0_i32 = arith.constant 0 : i32
    %6 = arith.cmpi eq, %c2_i32, %c0_i32 : i32
    %c1_i32_0 = arith.constant 1 : i32
    %7 = arith.select %6, %c1_i32_0, %c2_i32 : i32
    %8 = arith.remsi %arg2, %7 : i32
    %c0_i32_1 = arith.constant 0 : i32
    %9 = arith.cmpi ne, %8, %c0_i32_1 : i32
    %c0_i32_2 = arith.constant 0 : i32
    %10 = arith.cmpi slt, %8, %c0_i32_2 : i32
    %c0_i32_3 = arith.constant 0 : i32
    %11 = arith.cmpi slt, %7, %c0_i32_3 : i32
    %12 = arith.xori %10, %11 : i1
    %13 = arith.andi %12, %9 : i1
    %14 = arith.addi %8, %7 : i32
    %15 = arith.select %13, %14, %8 : i32
    %c0_i32_4 = arith.constant 0 : i32
    %16 = arith.cmpi eq, %arg2, %c0_i32_4 : i32
    %17 = arith.extui %16 : i1 to i32
    %c0_i32_5 = arith.constant 0 : i32
    %18 = arith.cmpi ne, %17, %c0_i32_5 : i32
    scf.if %18 {
      %c0_i32_239 = arith.constant 0 : i32
      %540 = arith.addi %c0_i32_239, %1 : i32
      %541 = tpu.assume_multiple %540, 128 : i32
      %c15_i32_240 = arith.constant 15 : i32
      %542 = arith.muli %15, %c15_i32_240 : i32
      %c0_i32_241 = arith.constant 0 : i32
      %543 = arith.addi %542, %c0_i32_241 : i32
      %c256_i32_242 = arith.constant 256 : i32
      %544 = arith.addi %c256_i32_242, %1 : i32
      %545 = tpu.assume_multiple %544, 128 : i32
      %c15_i32_243 = arith.constant 15 : i32
      %546 = arith.muli %15, %c15_i32_243 : i32
      %c1_i32_244 = arith.constant 1 : i32
      %547 = arith.addi %546, %c1_i32_244 : i32
      %c512_i32_245 = arith.constant 512 : i32
      %548 = arith.addi %c512_i32_245, %1 : i32
      %549 = tpu.assume_multiple %548, 128 : i32
      %c15_i32_246 = arith.constant 15 : i32
      %550 = arith.muli %15, %c15_i32_246 : i32
      %c2_i32_247 = arith.constant 2 : i32
      %551 = arith.addi %550, %c2_i32_247 : i32
      %c768_i32_248 = arith.constant 768 : i32
      %552 = arith.addi %c768_i32_248, %1 : i32
      %553 = tpu.assume_multiple %552, 128 : i32
      %c15_i32_249 = arith.constant 15 : i32
      %554 = arith.muli %15, %c15_i32_249 : i32
      %c3_i32_250 = arith.constant 3 : i32
      %555 = arith.addi %554, %c3_i32_250 : i32
      %c1024_i32_251 = arith.constant 1024 : i32
      %556 = arith.addi %c1024_i32_251, %1 : i32
      %557 = tpu.assume_multiple %556, 128 : i32
      %c15_i32_252 = arith.constant 15 : i32
      %558 = arith.muli %15, %c15_i32_252 : i32
      %c4_i32_253 = arith.constant 4 : i32
      %559 = arith.addi %558, %c4_i32_253 : i32
      %c1280_i32_254 = arith.constant 1280 : i32
      %560 = arith.addi %c1280_i32_254, %1 : i32
      %561 = tpu.assume_multiple %560, 128 : i32
      %c15_i32_255 = arith.constant 15 : i32
      %562 = arith.muli %15, %c15_i32_255 : i32
      %c5_i32_256 = arith.constant 5 : i32
      %563 = arith.addi %562, %c5_i32_256 : i32
      %c1536_i32_257 = arith.constant 1536 : i32
      %564 = arith.addi %c1536_i32_257, %1 : i32
      %565 = tpu.assume_multiple %564, 128 : i32
      %c15_i32_258 = arith.constant 15 : i32
      %566 = arith.muli %15, %c15_i32_258 : i32
      %c6_i32_259 = arith.constant 6 : i32
      %567 = arith.addi %566, %c6_i32_259 : i32
      %c1792_i32_260 = arith.constant 1792 : i32
      %568 = arith.addi %c1792_i32_260, %1 : i32
      %569 = tpu.assume_multiple %568, 128 : i32
      %c15_i32_261 = arith.constant 15 : i32
      %570 = arith.muli %15, %c15_i32_261 : i32
      %c7_i32_262 = arith.constant 7 : i32
      %571 = arith.addi %570, %c7_i32_262 : i32
      %c2048_i32_263 = arith.constant 2048 : i32
      %572 = arith.addi %c2048_i32_263, %1 : i32
      %573 = tpu.assume_multiple %572, 128 : i32
      %c15_i32_264 = arith.constant 15 : i32
      %574 = arith.muli %15, %c15_i32_264 : i32
      %c8_i32_265 = arith.constant 8 : i32
      %575 = arith.addi %574, %c8_i32_265 : i32
      %c2304_i32_266 = arith.constant 2304 : i32
      %576 = arith.addi %c2304_i32_266, %1 : i32
      %577 = tpu.assume_multiple %576, 128 : i32
      %c15_i32_267 = arith.constant 15 : i32
      %578 = arith.muli %15, %c15_i32_267 : i32
      %c9_i32_268 = arith.constant 9 : i32
      %579 = arith.addi %578, %c9_i32_268 : i32
      %c2560_i32_269 = arith.constant 2560 : i32
      %580 = arith.addi %c2560_i32_269, %1 : i32
      %581 = tpu.assume_multiple %580, 128 : i32
      %c15_i32_270 = arith.constant 15 : i32
      %582 = arith.muli %15, %c15_i32_270 : i32
      %c10_i32_271 = arith.constant 10 : i32
      %583 = arith.addi %582, %c10_i32_271 : i32
      %c2816_i32_272 = arith.constant 2816 : i32
      %584 = arith.addi %c2816_i32_272, %1 : i32
      %585 = tpu.assume_multiple %584, 128 : i32
      %c15_i32_273 = arith.constant 15 : i32
      %586 = arith.muli %15, %c15_i32_273 : i32
      %c11_i32_274 = arith.constant 11 : i32
      %587 = arith.addi %586, %c11_i32_274 : i32
      %c3072_i32_275 = arith.constant 3072 : i32
      %588 = arith.addi %c3072_i32_275, %1 : i32
      %589 = tpu.assume_multiple %588, 128 : i32
      %c15_i32_276 = arith.constant 15 : i32
      %590 = arith.muli %15, %c15_i32_276 : i32
      %c12_i32_277 = arith.constant 12 : i32
      %591 = arith.addi %590, %c12_i32_277 : i32
      %c3328_i32_278 = arith.constant 3328 : i32
      %592 = arith.addi %c3328_i32_278, %1 : i32
      %593 = tpu.assume_multiple %592, 128 : i32
      %c15_i32_279 = arith.constant 15 : i32
      %594 = arith.muli %15, %c15_i32_279 : i32
      %c13_i32_280 = arith.constant 13 : i32
      %595 = arith.addi %594, %c13_i32_280 : i32
      %c3584_i32_281 = arith.constant 3584 : i32
      %596 = arith.addi %c3584_i32_281, %1 : i32
      %597 = tpu.assume_multiple %596, 128 : i32
      %c15_i32_282 = arith.constant 15 : i32
      %598 = arith.muli %15, %c15_i32_282 : i32
      %c14_i32_283 = arith.constant 14 : i32
      %599 = arith.addi %598, %c14_i32_283 : i32
      %600 = tpu.memref_slice %arg6[%5, %541] : memref<16x3840xf32, #tpu.memory_space<any>> -> memref<8x256xf32, #tpu.memory_space<any>>
      %c0_i32_284 = arith.constant 0 : i32
      %c0_i32_285 = arith.constant 0 : i32
      %601 = tpu.memref_slice %arg8[%543, %c0_i32_284, %c0_i32_285] : memref<30x8x256xf32, #tpu.memory_space<vmem>> -> memref<1x8x256xf32, #tpu.memory_space<vmem>>
      %602 = tpu.memref_squeeze %601 : memref<1x8x256xf32, #tpu.memory_space<vmem>> -> memref<8x256xf32, #tpu.memory_space<vmem>>
      %603 = tpu.memref_slice %arg9[%15] : memref<2x!tpu.dma_semaphore, #tpu.memory_space<semaphore_mem>> -> memref<1x!tpu.dma_semaphore, #tpu.memory_space<semaphore_mem>>
      %604 = tpu.memref_squeeze %603 : memref<1x!tpu.dma_semaphore, #tpu.memory_space<semaphore_mem>> -> memref<!tpu.dma_semaphore, #tpu.memory_space<semaphore_mem>>
      tpu.enqueue_dma source(%600 : memref<8x256xf32, #tpu.memory_space<any>>) target(%602 : memref<8x256xf32, #tpu.memory_space<vmem>>) target_semaphore(%604 : memref<!tpu.dma_semaphore, #tpu.memory_space<semaphore_mem>>)
      %605 = tpu.memref_slice %arg6[%5, %545] : memref<16x3840xf32, #tpu.memory_space<any>> -> memref<8x256xf32, #tpu.memory_space<any>>
      %c0_i32_286 = arith.constant 0 : i32
      %c0_i32_287 = arith.constant 0 : i32
      %606 = tpu.memref_slice %arg8[%547, %c0_i32_286, %c0_i32_287] : memref<30x8x256xf32, #tpu.memory_space<vmem>> -> memref<1x8x256xf32, #tpu.memory_space<vmem>>
      %607 = tpu.memref_squeeze %606 : memref<1x8x256xf32, #tpu.memory_space<vmem>> -> memref<8x256xf32, #tpu.memory_space<vmem>>
      %608 = tpu.memref_slice %arg9[%15] : memref<2x!tpu.dma_semaphore, #tpu.memory_space<semaphore_mem>> -> memref<1x!tpu.dma_semaphore, #tpu.memory_space<semaphore_mem>>
      %609 = tpu.memref_squeeze %608 : memref<1x!tpu.dma_semaphore, #tpu.memory_space<semaphore_mem>> -> memref<!tpu.dma_semaphore, #tpu.memory_space<semaphore_mem>>
      tpu.enqueue_dma source(%605 : memref<8x256xf32, #tpu.memory_space<any>>) target(%607 : memref<8x256xf32, #tpu.memory_space<vmem>>) target_semaphore(%609 : memref<!tpu.dma_semaphore, #tpu.memory_space<semaphore_mem>>)
      %610 = tpu.memref_slice %arg6[%5, %549] : memref<16x3840xf32, #tpu.memory_space<any>> -> memref<8x256xf32, #tpu.memory_space<any>>
      %c0_i32_288 = arith.constant 0 : i32
      %c0_i32_289 = arith.constant 0 : i32
      %611 = tpu.memref_slice %arg8[%551, %c0_i32_288, %c0_i32_289] : memref<30x8x256xf32, #tpu.memory_space<vmem>> -> memref<1x8x256xf32, #tpu.memory_space<vmem>>
      %612 = tpu.memref_squeeze %611 : memref<1x8x256xf32, #tpu.memory_space<vmem>> -> memref<8x256xf32, #tpu.memory_space<vmem>>
      %613 = tpu.memref_slice %arg9[%15] : memref<2x!tpu.dma_semaphore, #tpu.memory_space<semaphore_mem>> -> memref<1x!tpu.dma_semaphore, #tpu.memory_space<semaphore_mem>>
      %614 = tpu.memref_squeeze %613 : memref<1x!tpu.dma_semaphore, #tpu.memory_space<semaphore_mem>> -> memref<!tpu.dma_semaphore, #tpu.memory_space<semaphore_mem>>
      tpu.enqueue_dma source(%610 : memref<8x256xf32, #tpu.memory_space<any>>) target(%612 : memref<8x256xf32, #tpu.memory_space<vmem>>) target_semaphore(%614 : memref<!tpu.dma_semaphore, #tpu.memory_space<semaphore_mem>>)
      %615 = tpu.memref_slice %arg6[%5, %553] : memref<16x3840xf32, #tpu.memory_space<any>> -> memref<8x256xf32, #tpu.memory_space<any>>
      %c0_i32_290 = arith.constant 0 : i32
      %c0_i32_291 = arith.constant 0 : i32
      %616 = tpu.memref_slice %arg8[%555, %c0_i32_290, %c0_i32_291] : memref<30x8x256xf32, #tpu.memory_space<vmem>> -> memref<1x8x256xf32, #tpu.memory_space<vmem>>
      %617 = tpu.memref_squeeze %616 : memref<1x8x256xf32, #tpu.memory_space<vmem>> -> memref<8x256xf32, #tpu.memory_space<vmem>>
      %618 = tpu.memref_slice %arg9[%15] : memref<2x!tpu.dma_semaphore, #tpu.memory_space<semaphore_mem>> -> memref<1x!tpu.dma_semaphore, #tpu.memory_space<semaphore_mem>>
      %619 = tpu.memref_squeeze %618 : memref<1x!tpu.dma_semaphore, #tpu.memory_space<semaphore_mem>> -> memref<!tpu.dma_semaphore, #tpu.memory_space<semaphore_mem>>
      tpu.enqueue_dma source(%615 : memref<8x256xf32, #tpu.memory_space<any>>) target(%617 : memref<8x256xf32, #tpu.memory_space<vmem>>) target_semaphore(%619 : memref<!tpu.dma_semaphore, #tpu.memory_space<semaphore_mem>>)
      %620 = tpu.memref_slice %arg6[%5, %557] : memref<16x3840xf32, #tpu.memory_space<any>> -> memref<8x256xf32, #tpu.memory_space<any>>
      %c0_i32_292 = arith.constant 0 : i32
      %c0_i32_293 = arith.constant 0 : i32
      %621 = tpu.memref_slice %arg8[%559, %c0_i32_292, %c0_i32_293] : memref<30x8x256xf32, #tpu.memory_space<vmem>> -> memref<1x8x256xf32, #tpu.memory_space<vmem>>
      %622 = tpu.memref_squeeze %621 : memref<1x8x256xf32, #tpu.memory_space<vmem>> -> memref<8x256xf32, #tpu.memory_space<vmem>>
      %623 = tpu.memref_slice %arg9[%15] : memref<2x!tpu.dma_semaphore, #tpu.memory_space<semaphore_mem>> -> memref<1x!tpu.dma_semaphore, #tpu.memory_space<semaphore_mem>>
      %624 = tpu.memref_squeeze %623 : memref<1x!tpu.dma_semaphore, #tpu.memory_space<semaphore_mem>> -> memref<!tpu.dma_semaphore, #tpu.memory_space<semaphore_mem>>
      tpu.enqueue_dma source(%620 : memref<8x256xf32, #tpu.memory_space<any>>) target(%622 : memref<8x256xf32, #tpu.memory_space<vmem>>) target_semaphore(%624 : memref<!tpu.dma_semaphore, #tpu.memory_space<semaphore_mem>>)
      %625 = tpu.memref_slice %arg6[%5, %561] : memref<16x3840xf32, #tpu.memory_space<any>> -> memref<8x256xf32, #tpu.memory_space<any>>
      %c0_i32_294 = arith.constant 0 : i32
      %c0_i32_295 = arith.constant 0 : i32
      %626 = tpu.memref_slice %arg8[%563, %c0_i32_294, %c0_i32_295] : memref<30x8x256xf32, #tpu.memory_space<vmem>> -> memref<1x8x256xf32, #tpu.memory_space<vmem>>
      %627 = tpu.memref_squeeze %626 : memref<1x8x256xf32, #tpu.memory_space<vmem>> -> memref<8x256xf32, #tpu.memory_space<vmem>>
      %628 = tpu.memref_slice %arg9[%15] : memref<2x!tpu.dma_semaphore, #tpu.memory_space<semaphore_mem>> -> memref<1x!tpu.dma_semaphore, #tpu.memory_space<semaphore_mem>>
      %629 = tpu.memref_squeeze %628 : memref<1x!tpu.dma_semaphore, #tpu.memory_space<semaphore_mem>> -> memref<!tpu.dma_semaphore, #tpu.memory_space<semaphore_mem>>
      tpu.enqueue_dma source(%625 : memref<8x256xf32, #tpu.memory_space<any>>) target(%627 : memref<8x256xf32, #tpu.memory_space<vmem>>) target_semaphore(%629 : memref<!tpu.dma_semaphore, #tpu.memory_space<semaphore_mem>>)
      %630 = tpu.memref_slice %arg6[%5, %565] : memref<16x3840xf32, #tpu.memory_space<any>> -> memref<8x256xf32, #tpu.memory_space<any>>
      %c0_i32_296 = arith.constant 0 : i32
      %c0_i32_297 = arith.constant 0 : i32
      %631 = tpu.memref_slice %arg8[%567, %c0_i32_296, %c0_i32_297] : memref<30x8x256xf32, #tpu.memory_space<vmem>> -> memref<1x8x256xf32, #tpu.memory_space<vmem>>
      %632 = tpu.memref_squeeze %631 : memref<1x8x256xf32, #tpu.memory_space<vmem>> -> memref<8x256xf32, #tpu.memory_space<vmem>>
      %633 = tpu.memref_slice %arg9[%15] : memref<2x!tpu.dma_semaphore, #tpu.memory_space<semaphore_mem>> -> memref<1x!tpu.dma_semaphore, #tpu.memory_space<semaphore_mem>>
      %634 = tpu.memref_squeeze %633 : memref<1x!tpu.dma_semaphore, #tpu.memory_space<semaphore_mem>> -> memref<!tpu.dma_semaphore, #tpu.memory_space<semaphore_mem>>
      tpu.enqueue_dma source(%630 : memref<8x256xf32, #tpu.memory_space<any>>) target(%632 : memref<8x256xf32, #tpu.memory_space<vmem>>) target_semaphore(%634 : memref<!tpu.dma_semaphore, #tpu.memory_space<semaphore_mem>>)
      %635 = tpu.memref_slice %arg6[%5, %569] : memref<16x3840xf32, #tpu.memory_space<any>> -> memref<8x256xf32, #tpu.memory_space<any>>
      %c0_i32_298 = arith.constant 0 : i32
      %c0_i32_299 = arith.constant 0 : i32
      %636 = tpu.memref_slice %arg8[%571, %c0_i32_298, %c0_i32_299] : memref<30x8x256xf32, #tpu.memory_space<vmem>> -> memref<1x8x256xf32, #tpu.memory_space<vmem>>
      %637 = tpu.memref_squeeze %636 : memref<1x8x256xf32, #tpu.memory_space<vmem>> -> memref<8x256xf32, #tpu.memory_space<vmem>>
      %638 = tpu.memref_slice %arg9[%15] : memref<2x!tpu.dma_semaphore, #tpu.memory_space<semaphore_mem>> -> memref<1x!tpu.dma_semaphore, #tpu.memory_space<semaphore_mem>>
      %639 = tpu.memref_squeeze %638 : memref<1x!tpu.dma_semaphore, #tpu.memory_space<semaphore_mem>> -> memref<!tpu.dma_semaphore, #tpu.memory_space<semaphore_mem>>
      tpu.enqueue_dma source(%635 : memref<8x256xf32, #tpu.memory_space<any>>) target(%637 : memref<8x256xf32, #tpu.memory_space<vmem>>) target_semaphore(%639 : memref<!tpu.dma_semaphore, #tpu.memory_space<semaphore_mem>>)
      %640 = tpu.memref_slice %arg6[%5, %573] : memref<16x3840xf32, #tpu.memory_space<any>> -> memref<8x256xf32, #tpu.memory_space<any>>
      %c0_i32_300 = arith.constant 0 : i32
      %c0_i32_301 = arith.constant 0 : i32
      %641 = tpu.memref_slice %arg8[%575, %c0_i32_300, %c0_i32_301] : memref<30x8x256xf32, #tpu.memory_space<vmem>> -> memref<1x8x256xf32, #tpu.memory_space<vmem>>
      %642 = tpu.memref_squeeze %641 : memref<1x8x256xf32, #tpu.memory_space<vmem>> -> memref<8x256xf32, #tpu.memory_space<vmem>>
      %643 = tpu.memref_slice %arg9[%15] : memref<2x!tpu.dma_semaphore, #tpu.memory_space<semaphore_mem>> -> memref<1x!tpu.dma_semaphore, #tpu.memory_space<semaphore_mem>>
      %644 = tpu.memref_squeeze %643 : memref<1x!tpu.dma_semaphore, #tpu.memory_space<semaphore_mem>> -> memref<!tpu.dma_semaphore, #tpu.memory_space<semaphore_mem>>
      tpu.enqueue_dma source(%640 : memref<8x256xf32, #tpu.memory_space<any>>) target(%642 : memref<8x256xf32, #tpu.memory_space<vmem>>) target_semaphore(%644 : memref<!tpu.dma_semaphore, #tpu.memory_space<semaphore_mem>>)
      %645 = tpu.memref_slice %arg6[%5, %577] : memref<16x3840xf32, #tpu.memory_space<any>> -> memref<8x256xf32, #tpu.memory_space<any>>
      %c0_i32_302 = arith.constant 0 : i32
      %c0_i32_303 = arith.constant 0 : i32
      %646 = tpu.memref_slice %arg8[%579, %c0_i32_302, %c0_i32_303] : memref<30x8x256xf32, #tpu.memory_space<vmem>> -> memref<1x8x256xf32, #tpu.memory_space<vmem>>
      %647 = tpu.memref_squeeze %646 : memref<1x8x256xf32, #tpu.memory_space<vmem>> -> memref<8x256xf32, #tpu.memory_space<vmem>>
      %648 = tpu.memref_slice %arg9[%15] : memref<2x!tpu.dma_semaphore, #tpu.memory_space<semaphore_mem>> -> memref<1x!tpu.dma_semaphore, #tpu.memory_space<semaphore_mem>>
      %649 = tpu.memref_squeeze %648 : memref<1x!tpu.dma_semaphore, #tpu.memory_space<semaphore_mem>> -> memref<!tpu.dma_semaphore, #tpu.memory_space<semaphore_mem>>
      tpu.enqueue_dma source(%645 : memref<8x256xf32, #tpu.memory_space<any>>) target(%647 : memref<8x256xf32, #tpu.memory_space<vmem>>) target_semaphore(%649 : memref<!tpu.dma_semaphore, #tpu.memory_space<semaphore_mem>>)
      %650 = tpu.memref_slice %arg6[%5, %581] : memref<16x3840xf32, #tpu.memory_space<any>> -> memref<8x256xf32, #tpu.memory_space<any>>
      %c0_i32_304 = arith.constant 0 : i32
      %c0_i32_305 = arith.constant 0 : i32
      %651 = tpu.memref_slice %arg8[%583, %c0_i32_304, %c0_i32_305] : memref<30x8x256xf32, #tpu.memory_space<vmem>> -> memref<1x8x256xf32, #tpu.memory_space<vmem>>
      %652 = tpu.memref_squeeze %651 : memref<1x8x256xf32, #tpu.memory_space<vmem>> -> memref<8x256xf32, #tpu.memory_space<vmem>>
      %653 = tpu.memref_slice %arg9[%15] : memref<2x!tpu.dma_semaphore, #tpu.memory_space<semaphore_mem>> -> memref<1x!tpu.dma_semaphore, #tpu.memory_space<semaphore_mem>>
      %654 = tpu.memref_squeeze %653 : memref<1x!tpu.dma_semaphore, #tpu.memory_space<semaphore_mem>> -> memref<!tpu.dma_semaphore, #tpu.memory_space<semaphore_mem>>
      tpu.enqueue_dma source(%650 : memref<8x256xf32, #tpu.memory_space<any>>) target(%652 : memref<8x256xf32, #tpu.memory_space<vmem>>) target_semaphore(%654 : memref<!tpu.dma_semaphore, #tpu.memory_space<semaphore_mem>>)
      %655 = tpu.memref_slice %arg6[%5, %585] : memref<16x3840xf32, #tpu.memory_space<any>> -> memref<8x256xf32, #tpu.memory_space<any>>
      %c0_i32_306 = arith.constant 0 : i32
      %c0_i32_307 = arith.constant 0 : i32
      %656 = tpu.memref_slice %arg8[%587, %c0_i32_306, %c0_i32_307] : memref<30x8x256xf32, #tpu.memory_space<vmem>> -> memref<1x8x256xf32, #tpu.memory_space<vmem>>
      %657 = tpu.memref_squeeze %656 : memref<1x8x256xf32, #tpu.memory_space<vmem>> -> memref<8x256xf32, #tpu.memory_space<vmem>>
      %658 = tpu.memref_slice %arg9[%15] : memref<2x!tpu.dma_semaphore, #tpu.memory_space<semaphore_mem>> -> memref<1x!tpu.dma_semaphore, #tpu.memory_space<semaphore_mem>>
      %659 = tpu.memref_squeeze %658 : memref<1x!tpu.dma_semaphore, #tpu.memory_space<semaphore_mem>> -> memref<!tpu.dma_semaphore, #tpu.memory_space<semaphore_mem>>
      tpu.enqueue_dma source(%655 : memref<8x256xf32, #tpu.memory_space<any>>) target(%657 : memref<8x256xf32, #tpu.memory_space<vmem>>) target_semaphore(%659 : memref<!tpu.dma_semaphore, #tpu.memory_space<semaphore_mem>>)
      %660 = tpu.memref_slice %arg6[%5, %589] : memref<16x3840xf32, #tpu.memory_space<any>> -> memref<8x256xf32, #tpu.memory_space<any>>
      %c0_i32_308 = arith.constant 0 : i32
      %c0_i32_309 = arith.constant 0 : i32
      %661 = tpu.memref_slice %arg8[%591, %c0_i32_308, %c0_i32_309] : memref<30x8x256xf32, #tpu.memory_space<vmem>> -> memref<1x8x256xf32, #tpu.memory_space<vmem>>
      %662 = tpu.memref_squeeze %661 : memref<1x8x256xf32, #tpu.memory_space<vmem>> -> memref<8x256xf32, #tpu.memory_space<vmem>>
      %663 = tpu.memref_slice %arg9[%15] : memref<2x!tpu.dma_semaphore, #tpu.memory_space<semaphore_mem>> -> memref<1x!tpu.dma_semaphore, #tpu.memory_space<semaphore_mem>>
      %664 = tpu.memref_squeeze %663 : memref<1x!tpu.dma_semaphore, #tpu.memory_space<semaphore_mem>> -> memref<!tpu.dma_semaphore, #tpu.memory_space<semaphore_mem>>
      tpu.enqueue_dma source(%660 : memref<8x256xf32, #tpu.memory_space<any>>) target(%662 : memref<8x256xf32, #tpu.memory_space<vmem>>) target_semaphore(%664 : memref<!tpu.dma_semaphore, #tpu.memory_space<semaphore_mem>>)
      %665 = tpu.memref_slice %arg6[%5, %593] : memref<16x3840xf32, #tpu.memory_space<any>> -> memref<8x256xf32, #tpu.memory_space<any>>
      %c0_i32_310 = arith.constant 0 : i32
      %c0_i32_311 = arith.constant 0 : i32
      %666 = tpu.memref_slice %arg8[%595, %c0_i32_310, %c0_i32_311] : memref<30x8x256xf32, #tpu.memory_space<vmem>> -> memref<1x8x256xf32, #tpu.memory_space<vmem>>
      %667 = tpu.memref_squeeze %666 : memref<1x8x256xf32, #tpu.memory_space<vmem>> -> memref<8x256xf32, #tpu.memory_space<vmem>>
      %668 = tpu.memref_slice %arg9[%15] : memref<2x!tpu.dma_semaphore, #tpu.memory_space<semaphore_mem>> -> memref<1x!tpu.dma_semaphore, #tpu.memory_space<semaphore_mem>>
      %669 = tpu.memref_squeeze %668 : memref<1x!tpu.dma_semaphore, #tpu.memory_space<semaphore_mem>> -> memref<!tpu.dma_semaphore, #tpu.memory_space<semaphore_mem>>
      tpu.enqueue_dma source(%665 : memref<8x256xf32, #tpu.memory_space<any>>) target(%667 : memref<8x256xf32, #tpu.memory_space<vmem>>) target_semaphore(%669 : memref<!tpu.dma_semaphore, #tpu.memory_space<semaphore_mem>>)
      %670 = tpu.memref_slice %arg6[%5, %597] : memref<16x3840xf32, #tpu.memory_space<any>> -> memref<8x256xf32, #tpu.memory_space<any>>
      %c0_i32_312 = arith.constant 0 : i32
      %c0_i32_313 = arith.constant 0 : i32
      %671 = tpu.memref_slice %arg8[%599, %c0_i32_312, %c0_i32_313] : memref<30x8x256xf32, #tpu.memory_space<vmem>> -> memref<1x8x256xf32, #tpu.memory_space<vmem>>
      %672 = tpu.memref_squeeze %671 : memref<1x8x256xf32, #tpu.memory_space<vmem>> -> memref<8x256xf32, #tpu.memory_space<vmem>>
      %673 = tpu.memref_slice %arg9[%15] : memref<2x!tpu.dma_semaphore, #tpu.memory_space<semaphore_mem>> -> memref<1x!tpu.dma_semaphore, #tpu.memory_space<semaphore_mem>>
      %674 = tpu.memref_squeeze %673 : memref<1x!tpu.dma_semaphore, #tpu.memory_space<semaphore_mem>> -> memref<!tpu.dma_semaphore, #tpu.memory_space<semaphore_mem>>
      tpu.enqueue_dma source(%670 : memref<8x256xf32, #tpu.memory_space<any>>) target(%672 : memref<8x256xf32, #tpu.memory_space<vmem>>) target_semaphore(%674 : memref<!tpu.dma_semaphore, #tpu.memory_space<semaphore_mem>>)
    } else {
    }
    %c1_i32_6 = arith.constant 1 : i32
    %19 = arith.addi %arg2, %c1_i32_6 : i32
    %c1_i32_7 = arith.constant 1 : i32
    %20 = arith.cmpi slt, %19, %c1_i32_7 : i32
    %21 = arith.extui %20 : i1 to i32
    %c0_i32_8 = arith.constant 0 : i32
    %22 = arith.cmpi ne, %21, %c0_i32_8 : i32
    scf.if %22 {
      %c8_i32_239 = arith.constant 8 : i32
      %540 = arith.addi %5, %c8_i32_239 : i32
      %c1_i32_240 = arith.constant 1 : i32
      %541 = arith.subi %c1_i32_240, %15 : i32
      %c0_i32_241 = arith.constant 0 : i32
      %542 = arith.addi %c0_i32_241, %1 : i32
      %543 = tpu.assume_multiple %542, 128 : i32
      %c15_i32_242 = arith.constant 15 : i32
      %544 = arith.muli %541, %c15_i32_242 : i32
      %c0_i32_243 = arith.constant 0 : i32
      %545 = arith.addi %544, %c0_i32_243 : i32
      %c256_i32_244 = arith.constant 256 : i32
      %546 = arith.addi %c256_i32_244, %1 : i32
      %547 = tpu.assume_multiple %546, 128 : i32
      %c15_i32_245 = arith.constant 15 : i32
      %548 = arith.muli %541, %c15_i32_245 : i32
      %c1_i32_246 = arith.constant 1 : i32
      %549 = arith.addi %548, %c1_i32_246 : i32
      %c512_i32_247 = arith.constant 512 : i32
      %550 = arith.addi %c512_i32_247, %1 : i32
      %551 = tpu.assume_multiple %550, 128 : i32
      %c15_i32_248 = arith.constant 15 : i32
      %552 = arith.muli %541, %c15_i32_248 : i32
      %c2_i32_249 = arith.constant 2 : i32
      %553 = arith.addi %552, %c2_i32_249 : i32
      %c768_i32_250 = arith.constant 768 : i32
      %554 = arith.addi %c768_i32_250, %1 : i32
      %555 = tpu.assume_multiple %554, 128 : i32
      %c15_i32_251 = arith.constant 15 : i32
      %556 = arith.muli %541, %c15_i32_251 : i32
      %c3_i32_252 = arith.constant 3 : i32
      %557 = arith.addi %556, %c3_i32_252 : i32
      %c1024_i32_253 = arith.constant 1024 : i32
      %558 = arith.addi %c1024_i32_253, %1 : i32
      %559 = tpu.assume_multiple %558, 128 : i32
      %c15_i32_254 = arith.constant 15 : i32
      %560 = arith.muli %541, %c15_i32_254 : i32
      %c4_i32_255 = arith.constant 4 : i32
      %561 = arith.addi %560, %c4_i32_255 : i32
      %c1280_i32_256 = arith.constant 1280 : i32
      %562 = arith.addi %c1280_i32_256, %1 : i32
      %563 = tpu.assume_multiple %562, 128 : i32
      %c15_i32_257 = arith.constant 15 : i32
      %564 = arith.muli %541, %c15_i32_257 : i32
      %c5_i32_258 = arith.constant 5 : i32
      %565 = arith.addi %564, %c5_i32_258 : i32
      %c1536_i32_259 = arith.constant 1536 : i32
      %566 = arith.addi %c1536_i32_259, %1 : i32
      %567 = tpu.assume_multiple %566, 128 : i32
      %c15_i32_260 = arith.constant 15 : i32
      %568 = arith.muli %541, %c15_i32_260 : i32
      %c6_i32_261 = arith.constant 6 : i32
      %569 = arith.addi %568, %c6_i32_261 : i32
      %c1792_i32_262 = arith.constant 1792 : i32
      %570 = arith.addi %c1792_i32_262, %1 : i32
      %571 = tpu.assume_multiple %570, 128 : i32
      %c15_i32_263 = arith.constant 15 : i32
      %572 = arith.muli %541, %c15_i32_263 : i32
      %c7_i32_264 = arith.constant 7 : i32
      %573 = arith.addi %572, %c7_i32_264 : i32
      %c2048_i32_265 = arith.constant 2048 : i32
      %574 = arith.addi %c2048_i32_265, %1 : i32
      %575 = tpu.assume_multiple %574, 128 : i32
      %c15_i32_266 = arith.constant 15 : i32
      %576 = arith.muli %541, %c15_i32_266 : i32
      %c8_i32_267 = arith.constant 8 : i32
      %577 = arith.addi %576, %c8_i32_267 : i32
      %c2304_i32_268 = arith.constant 2304 : i32
      %578 = arith.addi %c2304_i32_268, %1 : i32
      %579 = tpu.assume_multiple %578, 128 : i32
      %c15_i32_269 = arith.constant 15 : i32
      %580 = arith.muli %541, %c15_i32_269 : i32
      %c9_i32_270 = arith.constant 9 : i32
      %581 = arith.addi %580, %c9_i32_270 : i32
      %c2560_i32_271 = arith.constant 2560 : i32
      %582 = arith.addi %c2560_i32_271, %1 : i32
      %583 = tpu.assume_multiple %582, 128 : i32
      %c15_i32_272 = arith.constant 15 : i32
      %584 = arith.muli %541, %c15_i32_272 : i32
      %c10_i32_273 = arith.constant 10 : i32
      %585 = arith.addi %584, %c10_i32_273 : i32
      %c2816_i32_274 = arith.constant 2816 : i32
      %586 = arith.addi %c2816_i32_274, %1 : i32
      %587 = tpu.assume_multiple %586, 128 : i32
      %c15_i32_275 = arith.constant 15 : i32
      %588 = arith.muli %541, %c15_i32_275 : i32
      %c11_i32_276 = arith.constant 11 : i32
      %589 = arith.addi %588, %c11_i32_276 : i32
      %c3072_i32_277 = arith.constant 3072 : i32
      %590 = arith.addi %c3072_i32_277, %1 : i32
      %591 = tpu.assume_multiple %590, 128 : i32
      %c15_i32_278 = arith.constant 15 : i32
      %592 = arith.muli %541, %c15_i32_278 : i32
      %c12_i32_279 = arith.constant 12 : i32
      %593 = arith.addi %592, %c12_i32_279 : i32
      %c3328_i32_280 = arith.constant 3328 : i32
      %594 = arith.addi %c3328_i32_280, %1 : i32
      %595 = tpu.assume_multiple %594, 128 : i32
      %c15_i32_281 = arith.constant 15 : i32
      %596 = arith.muli %541, %c15_i32_281 : i32
      %c13_i32_282 = arith.constant 13 : i32
      %597 = arith.addi %596, %c13_i32_282 : i32
      %c3584_i32_283 = arith.constant 3584 : i32
      %598 = arith.addi %c3584_i32_283, %1 : i32
      %599 = tpu.assume_multiple %598, 128 : i32
      %c15_i32_284 = arith.constant 15 : i32
      %600 = arith.muli %541, %c15_i32_284 : i32
      %c14_i32_285 = arith.constant 14 : i32
      %601 = arith.addi %600, %c14_i32_285 : i32
      %602 = tpu.memref_slice %arg6[%540, %543] : memref<16x3840xf32, #tpu.memory_space<any>> -> memref<8x256xf32, #tpu.memory_space<any>>
      %c0_i32_286 = arith.constant 0 : i32
      %c0_i32_287 = arith.constant 0 : i32
      %603 = tpu.memref_slice %arg8[%545, %c0_i32_286, %c0_i32_287] : memref<30x8x256xf32, #tpu.memory_space<vmem>> -> memref<1x8x256xf32, #tpu.memory_space<vmem>>
      %604 = tpu.memref_squeeze %603 : memref<1x8x256xf32, #tpu.memory_space<vmem>> -> memref<8x256xf32, #tpu.memory_space<vmem>>
      %605 = tpu.memref_slice %arg9[%541] : memref<2x!tpu.dma_semaphore, #tpu.memory_space<semaphore_mem>> -> memref<1x!tpu.dma_semaphore, #tpu.memory_space<semaphore_mem>>
      %606 = tpu.memref_squeeze %605 : memref<1x!tpu.dma_semaphore, #tpu.memory_space<semaphore_mem>> -> memref<!tpu.dma_semaphore, #tpu.memory_space<semaphore_mem>>
      tpu.enqueue_dma source(%602 : memref<8x256xf32, #tpu.memory_space<any>>) target(%604 : memref<8x256xf32, #tpu.memory_space<vmem>>) target_semaphore(%606 : memref<!tpu.dma_semaphore, #tpu.memory_space<semaphore_mem>>)
      %607 = tpu.memref_slice %arg6[%540, %547] : memref<16x3840xf32, #tpu.memory_space<any>> -> memref<8x256xf32, #tpu.memory_space<any>>
      %c0_i32_288 = arith.constant 0 : i32
      %c0_i32_289 = arith.constant 0 : i32
      %608 = tpu.memref_slice %arg8[%549, %c0_i32_288, %c0_i32_289] : memref<30x8x256xf32, #tpu.memory_space<vmem>> -> memref<1x8x256xf32, #tpu.memory_space<vmem>>
      %609 = tpu.memref_squeeze %608 : memref<1x8x256xf32, #tpu.memory_space<vmem>> -> memref<8x256xf32, #tpu.memory_space<vmem>>
      %610 = tpu.memref_slice %arg9[%541] : memref<2x!tpu.dma_semaphore, #tpu.memory_space<semaphore_mem>> -> memref<1x!tpu.dma_semaphore, #tpu.memory_space<semaphore_mem>>
      %611 = tpu.memref_squeeze %610 : memref<1x!tpu.dma_semaphore, #tpu.memory_space<semaphore_mem>> -> memref<!tpu.dma_semaphore, #tpu.memory_space<semaphore_mem>>
      tpu.enqueue_dma source(%607 : memref<8x256xf32, #tpu.memory_space<any>>) target(%609 : memref<8x256xf32, #tpu.memory_space<vmem>>) target_semaphore(%611 : memref<!tpu.dma_semaphore, #tpu.memory_space<semaphore_mem>>)
      %612 = tpu.memref_slice %arg6[%540, %551] : memref<16x3840xf32, #tpu.memory_space<any>> -> memref<8x256xf32, #tpu.memory_space<any>>
      %c0_i32_290 = arith.constant 0 : i32
      %c0_i32_291 = arith.constant 0 : i32
      %613 = tpu.memref_slice %arg8[%553, %c0_i32_290, %c0_i32_291] : memref<30x8x256xf32, #tpu.memory_space<vmem>> -> memref<1x8x256xf32, #tpu.memory_space<vmem>>
      %614 = tpu.memref_squeeze %613 : memref<1x8x256xf32, #tpu.memory_space<vmem>> -> memref<8x256xf32, #tpu.memory_space<vmem>>
      %615 = tpu.memref_slice %arg9[%541] : memref<2x!tpu.dma_semaphore, #tpu.memory_space<semaphore_mem>> -> memref<1x!tpu.dma_semaphore, #tpu.memory_space<semaphore_mem>>
      %616 = tpu.memref_squeeze %615 : memref<1x!tpu.dma_semaphore, #tpu.memory_space<semaphore_mem>> -> memref<!tpu.dma_semaphore, #tpu.memory_space<semaphore_mem>>
      tpu.enqueue_dma source(%612 : memref<8x256xf32, #tpu.memory_space<any>>) target(%614 : memref<8x256xf32, #tpu.memory_space<vmem>>) target_semaphore(%616 : memref<!tpu.dma_semaphore, #tpu.memory_space<semaphore_mem>>)
      %617 = tpu.memref_slice %arg6[%540, %555] : memref<16x3840xf32, #tpu.memory_space<any>> -> memref<8x256xf32, #tpu.memory_space<any>>
      %c0_i32_292 = arith.constant 0 : i32
      %c0_i32_293 = arith.constant 0 : i32
      %618 = tpu.memref_slice %arg8[%557, %c0_i32_292, %c0_i32_293] : memref<30x8x256xf32, #tpu.memory_space<vmem>> -> memref<1x8x256xf32, #tpu.memory_space<vmem>>
      %619 = tpu.memref_squeeze %618 : memref<1x8x256xf32, #tpu.memory_space<vmem>> -> memref<8x256xf32, #tpu.memory_space<vmem>>
      %620 = tpu.memref_slice %arg9[%541] : memref<2x!tpu.dma_semaphore, #tpu.memory_space<semaphore_mem>> -> memref<1x!tpu.dma_semaphore, #tpu.memory_space<semaphore_mem>>
      %621 = tpu.memref_squeeze %620 : memref<1x!tpu.dma_semaphore, #tpu.memory_space<semaphore_mem>> -> memref<!tpu.dma_semaphore, #tpu.memory_space<semaphore_mem>>
      tpu.enqueue_dma source(%617 : memref<8x256xf32, #tpu.memory_space<any>>) target(%619 : memref<8x256xf32, #tpu.memory_space<vmem>>) target_semaphore(%621 : memref<!tpu.dma_semaphore, #tpu.memory_space<semaphore_mem>>)
      %622 = tpu.memref_slice %arg6[%540, %559] : memref<16x3840xf32, #tpu.memory_space<any>> -> memref<8x256xf32, #tpu.memory_space<any>>
      %c0_i32_294 = arith.constant 0 : i32
      %c0_i32_295 = arith.constant 0 : i32
      %623 = tpu.memref_slice %arg8[%561, %c0_i32_294, %c0_i32_295] : memref<30x8x256xf32, #tpu.memory_space<vmem>> -> memref<1x8x256xf32, #tpu.memory_space<vmem>>
      %624 = tpu.memref_squeeze %623 : memref<1x8x256xf32, #tpu.memory_space<vmem>> -> memref<8x256xf32, #tpu.memory_space<vmem>>
      %625 = tpu.memref_slice %arg9[%541] : memref<2x!tpu.dma_semaphore, #tpu.memory_space<semaphore_mem>> -> memref<1x!tpu.dma_semaphore, #tpu.memory_space<semaphore_mem>>
      %626 = tpu.memref_squeeze %625 : memref<1x!tpu.dma_semaphore, #tpu.memory_space<semaphore_mem>> -> memref<!tpu.dma_semaphore, #tpu.memory_space<semaphore_mem>>
      tpu.enqueue_dma source(%622 : memref<8x256xf32, #tpu.memory_space<any>>) target(%624 : memref<8x256xf32, #tpu.memory_space<vmem>>) target_semaphore(%626 : memref<!tpu.dma_semaphore, #tpu.memory_space<semaphore_mem>>)
      %627 = tpu.memref_slice %arg6[%540, %563] : memref<16x3840xf32, #tpu.memory_space<any>> -> memref<8x256xf32, #tpu.memory_space<any>>
      %c0_i32_296 = arith.constant 0 : i32
      %c0_i32_297 = arith.constant 0 : i32
      %628 = tpu.memref_slice %arg8[%565, %c0_i32_296, %c0_i32_297] : memref<30x8x256xf32, #tpu.memory_space<vmem>> -> memref<1x8x256xf32, #tpu.memory_space<vmem>>
      %629 = tpu.memref_squeeze %628 : memref<1x8x256xf32, #tpu.memory_space<vmem>> -> memref<8x256xf32, #tpu.memory_space<vmem>>
      %630 = tpu.memref_slice %arg9[%541] : memref<2x!tpu.dma_semaphore, #tpu.memory_space<semaphore_mem>> -> memref<1x!tpu.dma_semaphore, #tpu.memory_space<semaphore_mem>>
      %631 = tpu.memref_squeeze %630 : memref<1x!tpu.dma_semaphore, #tpu.memory_space<semaphore_mem>> -> memref<!tpu.dma_semaphore, #tpu.memory_space<semaphore_mem>>
      tpu.enqueue_dma source(%627 : memref<8x256xf32, #tpu.memory_space<any>>) target(%629 : memref<8x256xf32, #tpu.memory_space<vmem>>) target_semaphore(%631 : memref<!tpu.dma_semaphore, #tpu.memory_space<semaphore_mem>>)
      %632 = tpu.memref_slice %arg6[%540, %567] : memref<16x3840xf32, #tpu.memory_space<any>> -> memref<8x256xf32, #tpu.memory_space<any>>
      %c0_i32_298 = arith.constant 0 : i32
      %c0_i32_299 = arith.constant 0 : i32
      %633 = tpu.memref_slice %arg8[%569, %c0_i32_298, %c0_i32_299] : memref<30x8x256xf32, #tpu.memory_space<vmem>> -> memref<1x8x256xf32, #tpu.memory_space<vmem>>
      %634 = tpu.memref_squeeze %633 : memref<1x8x256xf32, #tpu.memory_space<vmem>> -> memref<8x256xf32, #tpu.memory_space<vmem>>
      %635 = tpu.memref_slice %arg9[%541] : memref<2x!tpu.dma_semaphore, #tpu.memory_space<semaphore_mem>> -> memref<1x!tpu.dma_semaphore, #tpu.memory_space<semaphore_mem>>
      %636 = tpu.memref_squeeze %635 : memref<1x!tpu.dma_semaphore, #tpu.memory_space<semaphore_mem>> -> memref<!tpu.dma_semaphore, #tpu.memory_space<semaphore_mem>>
      tpu.enqueue_dma source(%632 : memref<8x256xf32, #tpu.memory_space<any>>) target(%634 : memref<8x256xf32, #tpu.memory_space<vmem>>) target_semaphore(%636 : memref<!tpu.dma_semaphore, #tpu.memory_space<semaphore_mem>>)
      %637 = tpu.memref_slice %arg6[%540, %571] : memref<16x3840xf32, #tpu.memory_space<any>> -> memref<8x256xf32, #tpu.memory_space<any>>
      %c0_i32_300 = arith.constant 0 : i32
      %c0_i32_301 = arith.constant 0 : i32
      %638 = tpu.memref_slice %arg8[%573, %c0_i32_300, %c0_i32_301] : memref<30x8x256xf32, #tpu.memory_space<vmem>> -> memref<1x8x256xf32, #tpu.memory_space<vmem>>
      %639 = tpu.memref_squeeze %638 : memref<1x8x256xf32, #tpu.memory_space<vmem>> -> memref<8x256xf32, #tpu.memory_space<vmem>>
      %640 = tpu.memref_slice %arg9[%541] : memref<2x!tpu.dma_semaphore, #tpu.memory_space<semaphore_mem>> -> memref<1x!tpu.dma_semaphore, #tpu.memory_space<semaphore_mem>>
      %641 = tpu.memref_squeeze %640 : memref<1x!tpu.dma_semaphore, #tpu.memory_space<semaphore_mem>> -> memref<!tpu.dma_semaphore, #tpu.memory_space<semaphore_mem>>
      tpu.enqueue_dma source(%637 : memref<8x256xf32, #tpu.memory_space<any>>) target(%639 : memref<8x256xf32, #tpu.memory_space<vmem>>) target_semaphore(%641 : memref<!tpu.dma_semaphore, #tpu.memory_space<semaphore_mem>>)
      %642 = tpu.memref_slice %arg6[%540, %575] : memref<16x3840xf32, #tpu.memory_space<any>> -> memref<8x256xf32, #tpu.memory_space<any>>
      %c0_i32_302 = arith.constant 0 : i32
      %c0_i32_303 = arith.constant 0 : i32
      %643 = tpu.memref_slice %arg8[%577, %c0_i32_302, %c0_i32_303] : memref<30x8x256xf32, #tpu.memory_space<vmem>> -> memref<1x8x256xf32, #tpu.memory_space<vmem>>
      %644 = tpu.memref_squeeze %643 : memref<1x8x256xf32, #tpu.memory_space<vmem>> -> memref<8x256xf32, #tpu.memory_space<vmem>>
      %645 = tpu.memref_slice %arg9[%541] : memref<2x!tpu.dma_semaphore, #tpu.memory_space<semaphore_mem>> -> memref<1x!tpu.dma_semaphore, #tpu.memory_space<semaphore_mem>>
      %646 = tpu.memref_squeeze %645 : memref<1x!tpu.dma_semaphore, #tpu.memory_space<semaphore_mem>> -> memref<!tpu.dma_semaphore, #tpu.memory_space<semaphore_mem>>
      tpu.enqueue_dma source(%642 : memref<8x256xf32, #tpu.memory_space<any>>) target(%644 : memref<8x256xf32, #tpu.memory_space<vmem>>) target_semaphore(%646 : memref<!tpu.dma_semaphore, #tpu.memory_space<semaphore_mem>>)
      %647 = tpu.memref_slice %arg6[%540, %579] : memref<16x3840xf32, #tpu.memory_space<any>> -> memref<8x256xf32, #tpu.memory_space<any>>
      %c0_i32_304 = arith.constant 0 : i32
      %c0_i32_305 = arith.constant 0 : i32
      %648 = tpu.memref_slice %arg8[%581, %c0_i32_304, %c0_i32_305] : memref<30x8x256xf32, #tpu.memory_space<vmem>> -> memref<1x8x256xf32, #tpu.memory_space<vmem>>
      %649 = tpu.memref_squeeze %648 : memref<1x8x256xf32, #tpu.memory_space<vmem>> -> memref<8x256xf32, #tpu.memory_space<vmem>>
      %650 = tpu.memref_slice %arg9[%541] : memref<2x!tpu.dma_semaphore, #tpu.memory_space<semaphore_mem>> -> memref<1x!tpu.dma_semaphore, #tpu.memory_space<semaphore_mem>>
      %651 = tpu.memref_squeeze %650 : memref<1x!tpu.dma_semaphore, #tpu.memory_space<semaphore_mem>> -> memref<!tpu.dma_semaphore, #tpu.memory_space<semaphore_mem>>
      tpu.enqueue_dma source(%647 : memref<8x256xf32, #tpu.memory_space<any>>) target(%649 : memref<8x256xf32, #tpu.memory_space<vmem>>) target_semaphore(%651 : memref<!tpu.dma_semaphore, #tpu.memory_space<semaphore_mem>>)
      %652 = tpu.memref_slice %arg6[%540, %583] : memref<16x3840xf32, #tpu.memory_space<any>> -> memref<8x256xf32, #tpu.memory_space<any>>
      %c0_i32_306 = arith.constant 0 : i32
      %c0_i32_307 = arith.constant 0 : i32
      %653 = tpu.memref_slice %arg8[%585, %c0_i32_306, %c0_i32_307] : memref<30x8x256xf32, #tpu.memory_space<vmem>> -> memref<1x8x256xf32, #tpu.memory_space<vmem>>
      %654 = tpu.memref_squeeze %653 : memref<1x8x256xf32, #tpu.memory_space<vmem>> -> memref<8x256xf32, #tpu.memory_space<vmem>>
      %655 = tpu.memref_slice %arg9[%541] : memref<2x!tpu.dma_semaphore, #tpu.memory_space<semaphore_mem>> -> memref<1x!tpu.dma_semaphore, #tpu.memory_space<semaphore_mem>>
      %656 = tpu.memref_squeeze %655 : memref<1x!tpu.dma_semaphore, #tpu.memory_space<semaphore_mem>> -> memref<!tpu.dma_semaphore, #tpu.memory_space<semaphore_mem>>
      tpu.enqueue_dma source(%652 : memref<8x256xf32, #tpu.memory_space<any>>) target(%654 : memref<8x256xf32, #tpu.memory_space<vmem>>) target_semaphore(%656 : memref<!tpu.dma_semaphore, #tpu.memory_space<semaphore_mem>>)
      %657 = tpu.memref_slice %arg6[%540, %587] : memref<16x3840xf32, #tpu.memory_space<any>> -> memref<8x256xf32, #tpu.memory_space<any>>
      %c0_i32_308 = arith.constant 0 : i32
      %c0_i32_309 = arith.constant 0 : i32
      %658 = tpu.memref_slice %arg8[%589, %c0_i32_308, %c0_i32_309] : memref<30x8x256xf32, #tpu.memory_space<vmem>> -> memref<1x8x256xf32, #tpu.memory_space<vmem>>
      %659 = tpu.memref_squeeze %658 : memref<1x8x256xf32, #tpu.memory_space<vmem>> -> memref<8x256xf32, #tpu.memory_space<vmem>>
      %660 = tpu.memref_slice %arg9[%541] : memref<2x!tpu.dma_semaphore, #tpu.memory_space<semaphore_mem>> -> memref<1x!tpu.dma_semaphore, #tpu.memory_space<semaphore_mem>>
      %661 = tpu.memref_squeeze %660 : memref<1x!tpu.dma_semaphore, #tpu.memory_space<semaphore_mem>> -> memref<!tpu.dma_semaphore, #tpu.memory_space<semaphore_mem>>
      tpu.enqueue_dma source(%657 : memref<8x256xf32, #tpu.memory_space<any>>) target(%659 : memref<8x256xf32, #tpu.memory_space<vmem>>) target_semaphore(%661 : memref<!tpu.dma_semaphore, #tpu.memory_space<semaphore_mem>>)
      %662 = tpu.memref_slice %arg6[%540, %591] : memref<16x3840xf32, #tpu.memory_space<any>> -> memref<8x256xf32, #tpu.memory_space<any>>
      %c0_i32_310 = arith.constant 0 : i32
      %c0_i32_311 = arith.constant 0 : i32
      %663 = tpu.memref_slice %arg8[%593, %c0_i32_310, %c0_i32_311] : memref<30x8x256xf32, #tpu.memory_space<vmem>> -> memref<1x8x256xf32, #tpu.memory_space<vmem>>
      %664 = tpu.memref_squeeze %663 : memref<1x8x256xf32, #tpu.memory_space<vmem>> -> memref<8x256xf32, #tpu.memory_space<vmem>>
      %665 = tpu.memref_slice %arg9[%541] : memref<2x!tpu.dma_semaphore, #tpu.memory_space<semaphore_mem>> -> memref<1x!tpu.dma_semaphore, #tpu.memory_space<semaphore_mem>>
      %666 = tpu.memref_squeeze %665 : memref<1x!tpu.dma_semaphore, #tpu.memory_space<semaphore_mem>> -> memref<!tpu.dma_semaphore, #tpu.memory_space<semaphore_mem>>
      tpu.enqueue_dma source(%662 : memref<8x256xf32, #tpu.memory_space<any>>) target(%664 : memref<8x256xf32, #tpu.memory_space<vmem>>) target_semaphore(%666 : memref<!tpu.dma_semaphore, #tpu.memory_space<semaphore_mem>>)
      %667 = tpu.memref_slice %arg6[%540, %595] : memref<16x3840xf32, #tpu.memory_space<any>> -> memref<8x256xf32, #tpu.memory_space<any>>
      %c0_i32_312 = arith.constant 0 : i32
      %c0_i32_313 = arith.constant 0 : i32
      %668 = tpu.memref_slice %arg8[%597, %c0_i32_312, %c0_i32_313] : memref<30x8x256xf32, #tpu.memory_space<vmem>> -> memref<1x8x256xf32, #tpu.memory_space<vmem>>
      %669 = tpu.memref_squeeze %668 : memref<1x8x256xf32, #tpu.memory_space<vmem>> -> memref<8x256xf32, #tpu.memory_space<vmem>>
      %670 = tpu.memref_slice %arg9[%541] : memref<2x!tpu.dma_semaphore, #tpu.memory_space<semaphore_mem>> -> memref<1x!tpu.dma_semaphore, #tpu.memory_space<semaphore_mem>>
      %671 = tpu.memref_squeeze %670 : memref<1x!tpu.dma_semaphore, #tpu.memory_space<semaphore_mem>> -> memref<!tpu.dma_semaphore, #tpu.memory_space<semaphore_mem>>
      tpu.enqueue_dma source(%667 : memref<8x256xf32, #tpu.memory_space<any>>) target(%669 : memref<8x256xf32, #tpu.memory_space<vmem>>) target_semaphore(%671 : memref<!tpu.dma_semaphore, #tpu.memory_space<semaphore_mem>>)
      %672 = tpu.memref_slice %arg6[%540, %599] : memref<16x3840xf32, #tpu.memory_space<any>> -> memref<8x256xf32, #tpu.memory_space<any>>
      %c0_i32_314 = arith.constant 0 : i32
      %c0_i32_315 = arith.constant 0 : i32
      %673 = tpu.memref_slice %arg8[%601, %c0_i32_314, %c0_i32_315] : memref<30x8x256xf32, #tpu.memory_space<vmem>> -> memref<1x8x256xf32, #tpu.memory_space<vmem>>
      %674 = tpu.memref_squeeze %673 : memref<1x8x256xf32, #tpu.memory_space<vmem>> -> memref<8x256xf32, #tpu.memory_space<vmem>>
      %675 = tpu.memref_slice %arg9[%541] : memref<2x!tpu.dma_semaphore, #tpu.memory_space<semaphore_mem>> -> memref<1x!tpu.dma_semaphore, #tpu.memory_space<semaphore_mem>>
      %676 = tpu.memref_squeeze %675 : memref<1x!tpu.dma_semaphore, #tpu.memory_space<semaphore_mem>> -> memref<!tpu.dma_semaphore, #tpu.memory_space<semaphore_mem>>
      tpu.enqueue_dma source(%672 : memref<8x256xf32, #tpu.memory_space<any>>) target(%674 : memref<8x256xf32, #tpu.memory_space<vmem>>) target_semaphore(%676 : memref<!tpu.dma_semaphore, #tpu.memory_space<semaphore_mem>>)
    } else {
    }
    %c0_i32_9 = arith.constant 0 : i32
    %23 = arith.addi %c0_i32_9, %1 : i32
    %24 = tpu.assume_multiple %23, 128 : i32
    %c15_i32 = arith.constant 15 : i32
    %25 = arith.muli %15, %c15_i32 : i32
    %c0_i32_10 = arith.constant 0 : i32
    %26 = arith.addi %25, %c0_i32_10 : i32
    %c256_i32_11 = arith.constant 256 : i32
    %27 = arith.addi %c256_i32_11, %1 : i32
    %28 = tpu.assume_multiple %27, 128 : i32
    %c15_i32_12 = arith.constant 15 : i32
    %29 = arith.muli %15, %c15_i32_12 : i32
    %c1_i32_13 = arith.constant 1 : i32
    %30 = arith.addi %29, %c1_i32_13 : i32
    %c512_i32 = arith.constant 512 : i32
    %31 = arith.addi %c512_i32, %1 : i32
    %32 = tpu.assume_multiple %31, 128 : i32
    %c15_i32_14 = arith.constant 15 : i32
    %33 = arith.muli %15, %c15_i32_14 : i32
    %c2_i32_15 = arith.constant 2 : i32
    %34 = arith.addi %33, %c2_i32_15 : i32
    %c768_i32 = arith.constant 768 : i32
    %35 = arith.addi %c768_i32, %1 : i32
    %36 = tpu.assume_multiple %35, 128 : i32
    %c15_i32_16 = arith.constant 15 : i32
    %37 = arith.muli %15, %c15_i32_16 : i32
    %c3_i32 = arith.constant 3 : i32
    %38 = arith.addi %37, %c3_i32 : i32
    %c1024_i32 = arith.constant 1024 : i32
    %39 = arith.addi %c1024_i32, %1 : i32
    %40 = tpu.assume_multiple %39, 128 : i32
    %c15_i32_17 = arith.constant 15 : i32
    %41 = arith.muli %15, %c15_i32_17 : i32
    %c4_i32 = arith.constant 4 : i32
    %42 = arith.addi %41, %c4_i32 : i32
    %c1280_i32 = arith.constant 1280 : i32
    %43 = arith.addi %c1280_i32, %1 : i32
    %44 = tpu.assume_multiple %43, 128 : i32
    %c15_i32_18 = arith.constant 15 : i32
    %45 = arith.muli %15, %c15_i32_18 : i32
    %c5_i32 = arith.constant 5 : i32
    %46 = arith.addi %45, %c5_i32 : i32
    %c1536_i32 = arith.constant 1536 : i32
    %47 = arith.addi %c1536_i32, %1 : i32
    %48 = tpu.assume_multiple %47, 128 : i32
    %c15_i32_19 = arith.constant 15 : i32
    %49 = arith.muli %15, %c15_i32_19 : i32
    %c6_i32 = arith.constant 6 : i32
    %50 = arith.addi %49, %c6_i32 : i32
    %c1792_i32 = arith.constant 1792 : i32
    %51 = arith.addi %c1792_i32, %1 : i32
    %52 = tpu.assume_multiple %51, 128 : i32
    %c15_i32_20 = arith.constant 15 : i32
    %53 = arith.muli %15, %c15_i32_20 : i32
    %c7_i32 = arith.constant 7 : i32
    %54 = arith.addi %53, %c7_i32 : i32
    %c2048_i32 = arith.constant 2048 : i32
    %55 = arith.addi %c2048_i32, %1 : i32
    %56 = tpu.assume_multiple %55, 128 : i32
    %c15_i32_21 = arith.constant 15 : i32
    %57 = arith.muli %15, %c15_i32_21 : i32
    %c8_i32_22 = arith.constant 8 : i32
    %58 = arith.addi %57, %c8_i32_22 : i32
    %c2304_i32 = arith.constant 2304 : i32
    %59 = arith.addi %c2304_i32, %1 : i32
    %60 = tpu.assume_multiple %59, 128 : i32
    %c15_i32_23 = arith.constant 15 : i32
    %61 = arith.muli %15, %c15_i32_23 : i32
    %c9_i32 = arith.constant 9 : i32
    %62 = arith.addi %61, %c9_i32 : i32
    %c2560_i32 = arith.constant 2560 : i32
    %63 = arith.addi %c2560_i32, %1 : i32
    %64 = tpu.assume_multiple %63, 128 : i32
    %c15_i32_24 = arith.constant 15 : i32
    %65 = arith.muli %15, %c15_i32_24 : i32
    %c10_i32 = arith.constant 10 : i32
    %66 = arith.addi %65, %c10_i32 : i32
    %c2816_i32 = arith.constant 2816 : i32
    %67 = arith.addi %c2816_i32, %1 : i32
    %68 = tpu.assume_multiple %67, 128 : i32
    %c15_i32_25 = arith.constant 15 : i32
    %69 = arith.muli %15, %c15_i32_25 : i32
    %c11_i32 = arith.constant 11 : i32
    %70 = arith.addi %69, %c11_i32 : i32
    %c3072_i32 = arith.constant 3072 : i32
    %71 = arith.addi %c3072_i32, %1 : i32
    %72 = tpu.assume_multiple %71, 128 : i32
    %c15_i32_26 = arith.constant 15 : i32
    %73 = arith.muli %15, %c15_i32_26 : i32
    %c12_i32 = arith.constant 12 : i32
    %74 = arith.addi %73, %c12_i32 : i32
    %c3328_i32 = arith.constant 3328 : i32
    %75 = arith.addi %c3328_i32, %1 : i32
    %76 = tpu.assume_multiple %75, 128 : i32
    %c15_i32_27 = arith.constant 15 : i32
    %77 = arith.muli %15, %c15_i32_27 : i32
    %c13_i32 = arith.constant 13 : i32
    %78 = arith.addi %77, %c13_i32 : i32
    %c3584_i32 = arith.constant 3584 : i32
    %79 = arith.addi %c3584_i32, %1 : i32
    %80 = tpu.assume_multiple %79, 128 : i32
    %c15_i32_28 = arith.constant 15 : i32
    %81 = arith.muli %15, %c15_i32_28 : i32
    %c14_i32 = arith.constant 14 : i32
    %82 = arith.addi %81, %c14_i32 : i32
    %83 = tpu.memref_slice %arg6[%5, %24] : memref<16x3840xf32, #tpu.memory_space<any>> -> memref<8x256xf32, #tpu.memory_space<any>>
    %c0_i32_29 = arith.constant 0 : i32
    %c0_i32_30 = arith.constant 0 : i32
    %84 = tpu.memref_slice %arg8[%26, %c0_i32_29, %c0_i32_30] : memref<30x8x256xf32, #tpu.memory_space<vmem>> -> memref<1x8x256xf32, #tpu.memory_space<vmem>>
    %85 = tpu.memref_squeeze %84 : memref<1x8x256xf32, #tpu.memory_space<vmem>> -> memref<8x256xf32, #tpu.memory_space<vmem>>
    %86 = tpu.memref_slice %arg9[%15] : memref<2x!tpu.dma_semaphore, #tpu.memory_space<semaphore_mem>> -> memref<1x!tpu.dma_semaphore, #tpu.memory_space<semaphore_mem>>
    %87 = tpu.memref_squeeze %86 : memref<1x!tpu.dma_semaphore, #tpu.memory_space<semaphore_mem>> -> memref<!tpu.dma_semaphore, #tpu.memory_space<semaphore_mem>>
    tpu.wait_dma2 semaphore(%87 : memref<!tpu.dma_semaphore, #tpu.memory_space<semaphore_mem>>) src(%83 : memref<8x256xf32, #tpu.memory_space<any>>) dst(%85 : memref<8x256xf32, #tpu.memory_space<vmem>>)
    %88 = tpu.memref_slice %arg6[%5, %28] : memref<16x3840xf32, #tpu.memory_space<any>> -> memref<8x256xf32, #tpu.memory_space<any>>
    %c0_i32_31 = arith.constant 0 : i32
    %c0_i32_32 = arith.constant 0 : i32
    %89 = tpu.memref_slice %arg8[%30, %c0_i32_31, %c0_i32_32] : memref<30x8x256xf32, #tpu.memory_space<vmem>> -> memref<1x8x256xf32, #tpu.memory_space<vmem>>
    %90 = tpu.memref_squeeze %89 : memref<1x8x256xf32, #tpu.memory_space<vmem>> -> memref<8x256xf32, #tpu.memory_space<vmem>>
    %91 = tpu.memref_slice %arg9[%15] : memref<2x!tpu.dma_semaphore, #tpu.memory_space<semaphore_mem>> -> memref<1x!tpu.dma_semaphore, #tpu.memory_space<semaphore_mem>>
    %92 = tpu.memref_squeeze %91 : memref<1x!tpu.dma_semaphore, #tpu.memory_space<semaphore_mem>> -> memref<!tpu.dma_semaphore, #tpu.memory_space<semaphore_mem>>
    tpu.wait_dma2 semaphore(%92 : memref<!tpu.dma_semaphore, #tpu.memory_space<semaphore_mem>>) src(%88 : memref<8x256xf32, #tpu.memory_space<any>>) dst(%90 : memref<8x256xf32, #tpu.memory_space<vmem>>)
    %93 = tpu.memref_slice %arg6[%5, %32] : memref<16x3840xf32, #tpu.memory_space<any>> -> memref<8x256xf32, #tpu.memory_space<any>>
    %c0_i32_33 = arith.constant 0 : i32
    %c0_i32_34 = arith.constant 0 : i32
    %94 = tpu.memref_slice %arg8[%34, %c0_i32_33, %c0_i32_34] : memref<30x8x256xf32, #tpu.memory_space<vmem>> -> memref<1x8x256xf32, #tpu.memory_space<vmem>>
    %95 = tpu.memref_squeeze %94 : memref<1x8x256xf32, #tpu.memory_space<vmem>> -> memref<8x256xf32, #tpu.memory_space<vmem>>
    %96 = tpu.memref_slice %arg9[%15] : memref<2x!tpu.dma_semaphore, #tpu.memory_space<semaphore_mem>> -> memref<1x!tpu.dma_semaphore, #tpu.memory_space<semaphore_mem>>
    %97 = tpu.memref_squeeze %96 : memref<1x!tpu.dma_semaphore, #tpu.memory_space<semaphore_mem>> -> memref<!tpu.dma_semaphore, #tpu.memory_space<semaphore_mem>>
    tpu.wait_dma2 semaphore(%97 : memref<!tpu.dma_semaphore, #tpu.memory_space<semaphore_mem>>) src(%93 : memref<8x256xf32, #tpu.memory_space<any>>) dst(%95 : memref<8x256xf32, #tpu.memory_space<vmem>>)
    %98 = tpu.memref_slice %arg6[%5, %36] : memref<16x3840xf32, #tpu.memory_space<any>> -> memref<8x256xf32, #tpu.memory_space<any>>
    %c0_i32_35 = arith.constant 0 : i32
    %c0_i32_36 = arith.constant 0 : i32
    %99 = tpu.memref_slice %arg8[%38, %c0_i32_35, %c0_i32_36] : memref<30x8x256xf32, #tpu.memory_space<vmem>> -> memref<1x8x256xf32, #tpu.memory_space<vmem>>
    %100 = tpu.memref_squeeze %99 : memref<1x8x256xf32, #tpu.memory_space<vmem>> -> memref<8x256xf32, #tpu.memory_space<vmem>>
    %101 = tpu.memref_slice %arg9[%15] : memref<2x!tpu.dma_semaphore, #tpu.memory_space<semaphore_mem>> -> memref<1x!tpu.dma_semaphore, #tpu.memory_space<semaphore_mem>>
    %102 = tpu.memref_squeeze %101 : memref<1x!tpu.dma_semaphore, #tpu.memory_space<semaphore_mem>> -> memref<!tpu.dma_semaphore, #tpu.memory_space<semaphore_mem>>
    tpu.wait_dma2 semaphore(%102 : memref<!tpu.dma_semaphore, #tpu.memory_space<semaphore_mem>>) src(%98 : memref<8x256xf32, #tpu.memory_space<any>>) dst(%100 : memref<8x256xf32, #tpu.memory_space<vmem>>)
    %103 = tpu.memref_slice %arg6[%5, %40] : memref<16x3840xf32, #tpu.memory_space<any>> -> memref<8x256xf32, #tpu.memory_space<any>>
    %c0_i32_37 = arith.constant 0 : i32
    %c0_i32_38 = arith.constant 0 : i32
    %104 = tpu.memref_slice %arg8[%42, %c0_i32_37, %c0_i32_38] : memref<30x8x256xf32, #tpu.memory_space<vmem>> -> memref<1x8x256xf32, #tpu.memory_space<vmem>>
    %105 = tpu.memref_squeeze %104 : memref<1x8x256xf32, #tpu.memory_space<vmem>> -> memref<8x256xf32, #tpu.memory_space<vmem>>
    %106 = tpu.memref_slice %arg9[%15] : memref<2x!tpu.dma_semaphore, #tpu.memory_space<semaphore_mem>> -> memref<1x!tpu.dma_semaphore, #tpu.memory_space<semaphore_mem>>
    %107 = tpu.memref_squeeze %106 : memref<1x!tpu.dma_semaphore, #tpu.memory_space<semaphore_mem>> -> memref<!tpu.dma_semaphore, #tpu.memory_space<semaphore_mem>>
    tpu.wait_dma2 semaphore(%107 : memref<!tpu.dma_semaphore, #tpu.memory_space<semaphore_mem>>) src(%103 : memref<8x256xf32, #tpu.memory_space<any>>) dst(%105 : memref<8x256xf32, #tpu.memory_space<vmem>>)
    %108 = tpu.memref_slice %arg6[%5, %44] : memref<16x3840xf32, #tpu.memory_space<any>> -> memref<8x256xf32, #tpu.memory_space<any>>
    %c0_i32_39 = arith.constant 0 : i32
    %c0_i32_40 = arith.constant 0 : i32
    %109 = tpu.memref_slice %arg8[%46, %c0_i32_39, %c0_i32_40] : memref<30x8x256xf32, #tpu.memory_space<vmem>> -> memref<1x8x256xf32, #tpu.memory_space<vmem>>
    %110 = tpu.memref_squeeze %109 : memref<1x8x256xf32, #tpu.memory_space<vmem>> -> memref<8x256xf32, #tpu.memory_space<vmem>>
    %111 = tpu.memref_slice %arg9[%15] : memref<2x!tpu.dma_semaphore, #tpu.memory_space<semaphore_mem>> -> memref<1x!tpu.dma_semaphore, #tpu.memory_space<semaphore_mem>>
    %112 = tpu.memref_squeeze %111 : memref<1x!tpu.dma_semaphore, #tpu.memory_space<semaphore_mem>> -> memref<!tpu.dma_semaphore, #tpu.memory_space<semaphore_mem>>
    tpu.wait_dma2 semaphore(%112 : memref<!tpu.dma_semaphore, #tpu.memory_space<semaphore_mem>>) src(%108 : memref<8x256xf32, #tpu.memory_space<any>>) dst(%110 : memref<8x256xf32, #tpu.memory_space<vmem>>)
    %113 = tpu.memref_slice %arg6[%5, %48] : memref<16x3840xf32, #tpu.memory_space<any>> -> memref<8x256xf32, #tpu.memory_space<any>>
    %c0_i32_41 = arith.constant 0 : i32
    %c0_i32_42 = arith.constant 0 : i32
    %114 = tpu.memref_slice %arg8[%50, %c0_i32_41, %c0_i32_42] : memref<30x8x256xf32, #tpu.memory_space<vmem>> -> memref<1x8x256xf32, #tpu.memory_space<vmem>>
    %115 = tpu.memref_squeeze %114 : memref<1x8x256xf32, #tpu.memory_space<vmem>> -> memref<8x256xf32, #tpu.memory_space<vmem>>
    %116 = tpu.memref_slice %arg9[%15] : memref<2x!tpu.dma_semaphore, #tpu.memory_space<semaphore_mem>> -> memref<1x!tpu.dma_semaphore, #tpu.memory_space<semaphore_mem>>
    %117 = tpu.memref_squeeze %116 : memref<1x!tpu.dma_semaphore, #tpu.memory_space<semaphore_mem>> -> memref<!tpu.dma_semaphore, #tpu.memory_space<semaphore_mem>>
    tpu.wait_dma2 semaphore(%117 : memref<!tpu.dma_semaphore, #tpu.memory_space<semaphore_mem>>) src(%113 : memref<8x256xf32, #tpu.memory_space<any>>) dst(%115 : memref<8x256xf32, #tpu.memory_space<vmem>>)
    %118 = tpu.memref_slice %arg6[%5, %52] : memref<16x3840xf32, #tpu.memory_space<any>> -> memref<8x256xf32, #tpu.memory_space<any>>
    %c0_i32_43 = arith.constant 0 : i32
    %c0_i32_44 = arith.constant 0 : i32
    %119 = tpu.memref_slice %arg8[%54, %c0_i32_43, %c0_i32_44] : memref<30x8x256xf32, #tpu.memory_space<vmem>> -> memref<1x8x256xf32, #tpu.memory_space<vmem>>
    %120 = tpu.memref_squeeze %119 : memref<1x8x256xf32, #tpu.memory_space<vmem>> -> memref<8x256xf32, #tpu.memory_space<vmem>>
    %121 = tpu.memref_slice %arg9[%15] : memref<2x!tpu.dma_semaphore, #tpu.memory_space<semaphore_mem>> -> memref<1x!tpu.dma_semaphore, #tpu.memory_space<semaphore_mem>>
    %122 = tpu.memref_squeeze %121 : memref<1x!tpu.dma_semaphore, #tpu.memory_space<semaphore_mem>> -> memref<!tpu.dma_semaphore, #tpu.memory_space<semaphore_mem>>
    tpu.wait_dma2 semaphore(%122 : memref<!tpu.dma_semaphore, #tpu.memory_space<semaphore_mem>>) src(%118 : memref<8x256xf32, #tpu.memory_space<any>>) dst(%120 : memref<8x256xf32, #tpu.memory_space<vmem>>)
    %123 = tpu.memref_slice %arg6[%5, %56] : memref<16x3840xf32, #tpu.memory_space<any>> -> memref<8x256xf32, #tpu.memory_space<any>>
    %c0_i32_45 = arith.constant 0 : i32
    %c0_i32_46 = arith.constant 0 : i32
    %124 = tpu.memref_slice %arg8[%58, %c0_i32_45, %c0_i32_46] : memref<30x8x256xf32, #tpu.memory_space<vmem>> -> memref<1x8x256xf32, #tpu.memory_space<vmem>>
    %125 = tpu.memref_squeeze %124 : memref<1x8x256xf32, #tpu.memory_space<vmem>> -> memref<8x256xf32, #tpu.memory_space<vmem>>
    %126 = tpu.memref_slice %arg9[%15] : memref<2x!tpu.dma_semaphore, #tpu.memory_space<semaphore_mem>> -> memref<1x!tpu.dma_semaphore, #tpu.memory_space<semaphore_mem>>
    %127 = tpu.memref_squeeze %126 : memref<1x!tpu.dma_semaphore, #tpu.memory_space<semaphore_mem>> -> memref<!tpu.dma_semaphore, #tpu.memory_space<semaphore_mem>>
    tpu.wait_dma2 semaphore(%127 : memref<!tpu.dma_semaphore, #tpu.memory_space<semaphore_mem>>) src(%123 : memref<8x256xf32, #tpu.memory_space<any>>) dst(%125 : memref<8x256xf32, #tpu.memory_space<vmem>>)
    %128 = tpu.memref_slice %arg6[%5, %60] : memref<16x3840xf32, #tpu.memory_space<any>> -> memref<8x256xf32, #tpu.memory_space<any>>
    %c0_i32_47 = arith.constant 0 : i32
    %c0_i32_48 = arith.constant 0 : i32
    %129 = tpu.memref_slice %arg8[%62, %c0_i32_47, %c0_i32_48] : memref<30x8x256xf32, #tpu.memory_space<vmem>> -> memref<1x8x256xf32, #tpu.memory_space<vmem>>
    %130 = tpu.memref_squeeze %129 : memref<1x8x256xf32, #tpu.memory_space<vmem>> -> memref<8x256xf32, #tpu.memory_space<vmem>>
    %131 = tpu.memref_slice %arg9[%15] : memref<2x!tpu.dma_semaphore, #tpu.memory_space<semaphore_mem>> -> memref<1x!tpu.dma_semaphore, #tpu.memory_space<semaphore_mem>>
    %132 = tpu.memref_squeeze %131 : memref<1x!tpu.dma_semaphore, #tpu.memory_space<semaphore_mem>> -> memref<!tpu.dma_semaphore, #tpu.memory_space<semaphore_mem>>
    tpu.wait_dma2 semaphore(%132 : memref<!tpu.dma_semaphore, #tpu.memory_space<semaphore_mem>>) src(%128 : memref<8x256xf32, #tpu.memory_space<any>>) dst(%130 : memref<8x256xf32, #tpu.memory_space<vmem>>)
    %133 = tpu.memref_slice %arg6[%5, %64] : memref<16x3840xf32, #tpu.memory_space<any>> -> memref<8x256xf32, #tpu.memory_space<any>>
    %c0_i32_49 = arith.constant 0 : i32
    %c0_i32_50 = arith.constant 0 : i32
    %134 = tpu.memref_slice %arg8[%66, %c0_i32_49, %c0_i32_50] : memref<30x8x256xf32, #tpu.memory_space<vmem>> -> memref<1x8x256xf32, #tpu.memory_space<vmem>>
    %135 = tpu.memref_squeeze %134 : memref<1x8x256xf32, #tpu.memory_space<vmem>> -> memref<8x256xf32, #tpu.memory_space<vmem>>
    %136 = tpu.memref_slice %arg9[%15] : memref<2x!tpu.dma_semaphore, #tpu.memory_space<semaphore_mem>> -> memref<1x!tpu.dma_semaphore, #tpu.memory_space<semaphore_mem>>
    %137 = tpu.memref_squeeze %136 : memref<1x!tpu.dma_semaphore, #tpu.memory_space<semaphore_mem>> -> memref<!tpu.dma_semaphore, #tpu.memory_space<semaphore_mem>>
    tpu.wait_dma2 semaphore(%137 : memref<!tpu.dma_semaphore, #tpu.memory_space<semaphore_mem>>) src(%133 : memref<8x256xf32, #tpu.memory_space<any>>) dst(%135 : memref<8x256xf32, #tpu.memory_space<vmem>>)
    %138 = tpu.memref_slice %arg6[%5, %68] : memref<16x3840xf32, #tpu.memory_space<any>> -> memref<8x256xf32, #tpu.memory_space<any>>
    %c0_i32_51 = arith.constant 0 : i32
    %c0_i32_52 = arith.constant 0 : i32
    %139 = tpu.memref_slice %arg8[%70, %c0_i32_51, %c0_i32_52] : memref<30x8x256xf32, #tpu.memory_space<vmem>> -> memref<1x8x256xf32, #tpu.memory_space<vmem>>
    %140 = tpu.memref_squeeze %139 : memref<1x8x256xf32, #tpu.memory_space<vmem>> -> memref<8x256xf32, #tpu.memory_space<vmem>>
    %141 = tpu.memref_slice %arg9[%15] : memref<2x!tpu.dma_semaphore, #tpu.memory_space<semaphore_mem>> -> memref<1x!tpu.dma_semaphore, #tpu.memory_space<semaphore_mem>>
    %142 = tpu.memref_squeeze %141 : memref<1x!tpu.dma_semaphore, #tpu.memory_space<semaphore_mem>> -> memref<!tpu.dma_semaphore, #tpu.memory_space<semaphore_mem>>
    tpu.wait_dma2 semaphore(%142 : memref<!tpu.dma_semaphore, #tpu.memory_space<semaphore_mem>>) src(%138 : memref<8x256xf32, #tpu.memory_space<any>>) dst(%140 : memref<8x256xf32, #tpu.memory_space<vmem>>)
    %143 = tpu.memref_slice %arg6[%5, %72] : memref<16x3840xf32, #tpu.memory_space<any>> -> memref<8x256xf32, #tpu.memory_space<any>>
    %c0_i32_53 = arith.constant 0 : i32
    %c0_i32_54 = arith.constant 0 : i32
    %144 = tpu.memref_slice %arg8[%74, %c0_i32_53, %c0_i32_54] : memref<30x8x256xf32, #tpu.memory_space<vmem>> -> memref<1x8x256xf32, #tpu.memory_space<vmem>>
    %145 = tpu.memref_squeeze %144 : memref<1x8x256xf32, #tpu.memory_space<vmem>> -> memref<8x256xf32, #tpu.memory_space<vmem>>
    %146 = tpu.memref_slice %arg9[%15] : memref<2x!tpu.dma_semaphore, #tpu.memory_space<semaphore_mem>> -> memref<1x!tpu.dma_semaphore, #tpu.memory_space<semaphore_mem>>
    %147 = tpu.memref_squeeze %146 : memref<1x!tpu.dma_semaphore, #tpu.memory_space<semaphore_mem>> -> memref<!tpu.dma_semaphore, #tpu.memory_space<semaphore_mem>>
    tpu.wait_dma2 semaphore(%147 : memref<!tpu.dma_semaphore, #tpu.memory_space<semaphore_mem>>) src(%143 : memref<8x256xf32, #tpu.memory_space<any>>) dst(%145 : memref<8x256xf32, #tpu.memory_space<vmem>>)
    %148 = tpu.memref_slice %arg6[%5, %76] : memref<16x3840xf32, #tpu.memory_space<any>> -> memref<8x256xf32, #tpu.memory_space<any>>
    %c0_i32_55 = arith.constant 0 : i32
    %c0_i32_56 = arith.constant 0 : i32
    %149 = tpu.memref_slice %arg8[%78, %c0_i32_55, %c0_i32_56] : memref<30x8x256xf32, #tpu.memory_space<vmem>> -> memref<1x8x256xf32, #tpu.memory_space<vmem>>
    %150 = tpu.memref_squeeze %149 : memref<1x8x256xf32, #tpu.memory_space<vmem>> -> memref<8x256xf32, #tpu.memory_space<vmem>>
    %151 = tpu.memref_slice %arg9[%15] : memref<2x!tpu.dma_semaphore, #tpu.memory_space<semaphore_mem>> -> memref<1x!tpu.dma_semaphore, #tpu.memory_space<semaphore_mem>>
    %152 = tpu.memref_squeeze %151 : memref<1x!tpu.dma_semaphore, #tpu.memory_space<semaphore_mem>> -> memref<!tpu.dma_semaphore, #tpu.memory_space<semaphore_mem>>
    tpu.wait_dma2 semaphore(%152 : memref<!tpu.dma_semaphore, #tpu.memory_space<semaphore_mem>>) src(%148 : memref<8x256xf32, #tpu.memory_space<any>>) dst(%150 : memref<8x256xf32, #tpu.memory_space<vmem>>)
    %153 = tpu.memref_slice %arg6[%5, %80] : memref<16x3840xf32, #tpu.memory_space<any>> -> memref<8x256xf32, #tpu.memory_space<any>>
    %c0_i32_57 = arith.constant 0 : i32
    %c0_i32_58 = arith.constant 0 : i32
    %154 = tpu.memref_slice %arg8[%82, %c0_i32_57, %c0_i32_58] : memref<30x8x256xf32, #tpu.memory_space<vmem>> -> memref<1x8x256xf32, #tpu.memory_space<vmem>>
    %155 = tpu.memref_squeeze %154 : memref<1x8x256xf32, #tpu.memory_space<vmem>> -> memref<8x256xf32, #tpu.memory_space<vmem>>
    %156 = tpu.memref_slice %arg9[%15] : memref<2x!tpu.dma_semaphore, #tpu.memory_space<semaphore_mem>> -> memref<1x!tpu.dma_semaphore, #tpu.memory_space<semaphore_mem>>
    %157 = tpu.memref_squeeze %156 : memref<1x!tpu.dma_semaphore, #tpu.memory_space<semaphore_mem>> -> memref<!tpu.dma_semaphore, #tpu.memory_space<semaphore_mem>>
    tpu.wait_dma2 semaphore(%157 : memref<!tpu.dma_semaphore, #tpu.memory_space<semaphore_mem>>) src(%153 : memref<8x256xf32, #tpu.memory_space<any>>) dst(%155 : memref<8x256xf32, #tpu.memory_space<vmem>>)
    %c15_i32_59 = arith.constant 15 : i32
    %158 = arith.muli %15, %c15_i32_59 : i32
    %c0 = arith.constant 0 : index
    %c0_60 = arith.constant 0 : index
    %159 = vector.load %arg3[%c0, %c0_60] : memref<3x256xf32, #tpu.memory_space<vmem>>, vector<1x256xf32>
    %c1 = arith.constant 1 : index
    %c0_61 = arith.constant 0 : index
    %160 = vector.load %arg3[%c1, %c0_61] : memref<3x256xf32, #tpu.memory_space<vmem>>, vector<1x256xf32>
    %c2 = arith.constant 2 : index
    %c0_62 = arith.constant 0 : index
    %161 = vector.load %arg3[%c2, %c0_62] : memref<3x256xf32, #tpu.memory_space<vmem>>, vector<1x256xf32>
    %c0_63 = arith.constant 0 : index
    %c0_64 = arith.constant 0 : index
    %c0_65 = arith.constant 0 : index
    %162 = vector.load %arg4[%c0_63, %c0_64, %c0_65] : memref<8x3x1xf32, #tpu.memory_space<vmem>>, vector<8x1x1xf32>
    %163 = vector.shape_cast %162 : vector<8x1x1xf32> to vector<8x1xf32>
    %c0_66 = arith.constant 0 : index
    %c1_67 = arith.constant 1 : index
    %c0_68 = arith.constant 0 : index
    %164 = vector.load %arg4[%c0_66, %c1_67, %c0_68] : memref<8x3x1xf32, #tpu.memory_space<vmem>>, vector<8x1x1xf32>
    %165 = vector.shape_cast %164 : vector<8x1x1xf32> to vector<8x1xf32>
    %c0_69 = arith.constant 0 : index
    %c2_70 = arith.constant 2 : index
    %c0_71 = arith.constant 0 : index
    %166 = vector.load %arg4[%c0_69, %c2_70, %c0_71] : memref<8x3x1xf32, #tpu.memory_space<vmem>>, vector<8x1x1xf32>
    %167 = vector.shape_cast %166 : vector<8x1x1xf32> to vector<8x1xf32>
    %168 = vector.broadcast %167 : vector<8x1xf32> to vector<8x256xf32>
    %169 = vector.broadcast %161 : vector<1x256xf32> to vector<8x256xf32>
    %170 = arith.mulf %168, %169 : vector<8x256xf32>
    %c0_i32_72 = arith.constant 0 : i32
    %171 = arith.addi %158, %c0_i32_72 : i32
    %172 = arith.index_cast %171 : i32 to index
    %c0_73 = arith.constant 0 : index
    %c0_74 = arith.constant 0 : index
    %173 = vector.load %arg8[%172, %c0_73, %c0_74] : memref<30x8x256xf32, #tpu.memory_space<vmem>>, vector<1x8x256xf32>
    %174 = vector.shape_cast %173 : vector<1x8x256xf32> to vector<8x256xf32>
    %175 = arith.negf %174 : vector<8x256xf32>
    %176 = math.exp %175 : vector<8x256xf32>
    %cst = arith.constant 1.000000e+00 : f32
    %177 = vector.broadcast %cst : f32 to vector<8x256xf32>
    %178 = arith.addf %177, %176 : vector<8x256xf32>
    %179 = arith.divf %177, %178 : vector<8x256xf32>
    %c1_i32_75 = arith.constant 1 : i32
    %180 = arith.addi %158, %c1_i32_75 : i32
    %181 = arith.index_cast %180 : i32 to index
    %c0_76 = arith.constant 0 : index
    %c0_77 = arith.constant 0 : index
    %182 = vector.load %arg8[%181, %c0_76, %c0_77] : memref<30x8x256xf32, #tpu.memory_space<vmem>>, vector<1x8x256xf32>
    %183 = vector.shape_cast %182 : vector<1x8x256xf32> to vector<8x256xf32>
    %184 = arith.negf %183 : vector<8x256xf32>
    %185 = math.exp %184 : vector<8x256xf32>
    %cst_78 = arith.constant 1.000000e+00 : f32
    %186 = vector.broadcast %cst_78 : f32 to vector<8x256xf32>
    %187 = arith.addf %186, %185 : vector<8x256xf32>
    %188 = arith.divf %186, %187 : vector<8x256xf32>
    %c2_i32_79 = arith.constant 2 : i32
    %189 = arith.addi %158, %c2_i32_79 : i32
    %190 = arith.index_cast %189 : i32 to index
    %c0_80 = arith.constant 0 : index
    %c0_81 = arith.constant 0 : index
    %191 = vector.load %arg8[%190, %c0_80, %c0_81] : memref<30x8x256xf32, #tpu.memory_space<vmem>>, vector<1x8x256xf32>
    %192 = vector.shape_cast %191 : vector<1x8x256xf32> to vector<8x256xf32>
    %193 = arith.negf %192 : vector<8x256xf32>
    %194 = math.exp %193 : vector<8x256xf32>
    %cst_82 = arith.constant 1.000000e+00 : f32
    %195 = vector.broadcast %cst_82 : f32 to vector<8x256xf32>
    %196 = arith.addf %195, %194 : vector<8x256xf32>
    %197 = arith.divf %195, %196 : vector<8x256xf32>
    %c3_i32_83 = arith.constant 3 : i32
    %198 = arith.addi %158, %c3_i32_83 : i32
    %199 = arith.index_cast %198 : i32 to index
    %c0_84 = arith.constant 0 : index
    %c0_85 = arith.constant 0 : index
    %200 = vector.load %arg8[%199, %c0_84, %c0_85] : memref<30x8x256xf32, #tpu.memory_space<vmem>>, vector<1x8x256xf32>
    %201 = vector.shape_cast %200 : vector<1x8x256xf32> to vector<8x256xf32>
    %202 = arith.negf %201 : vector<8x256xf32>
    %203 = math.exp %202 : vector<8x256xf32>
    %cst_86 = arith.constant 1.000000e+00 : f32
    %204 = vector.broadcast %cst_86 : f32 to vector<8x256xf32>
    %205 = arith.addf %204, %203 : vector<8x256xf32>
    %206 = arith.divf %204, %205 : vector<8x256xf32>
    %c4_i32_87 = arith.constant 4 : i32
    %207 = arith.addi %158, %c4_i32_87 : i32
    %208 = arith.index_cast %207 : i32 to index
    %c0_88 = arith.constant 0 : index
    %c0_89 = arith.constant 0 : index
    %209 = vector.load %arg8[%208, %c0_88, %c0_89] : memref<30x8x256xf32, #tpu.memory_space<vmem>>, vector<1x8x256xf32>
    %210 = vector.shape_cast %209 : vector<1x8x256xf32> to vector<8x256xf32>
    %cst_90 = arith.constant 2.000000e+00 : f32
    %211 = vector.broadcast %cst_90 : f32 to vector<8x256xf32>
    %212 = arith.mulf %179, %211 : vector<8x256xf32>
    %cst_91 = arith.constant 5.000000e-01 : f32
    %213 = vector.broadcast %cst_91 : f32 to vector<8x256xf32>
    %214 = arith.subf %212, %213 : vector<8x256xf32>
    %215 = vector.broadcast %159 : vector<1x256xf32> to vector<8x256xf32>
    %216 = arith.addf %214, %215 : vector<8x256xf32>
    %cst_92 = arith.constant 2.000000e+00 : f32
    %217 = vector.broadcast %cst_92 : f32 to vector<8x256xf32>
    %218 = arith.mulf %188, %217 : vector<8x256xf32>
    %cst_93 = arith.constant 5.000000e-01 : f32
    %219 = vector.broadcast %cst_93 : f32 to vector<8x256xf32>
    %220 = arith.subf %218, %219 : vector<8x256xf32>
    %221 = vector.broadcast %160 : vector<1x256xf32> to vector<8x256xf32>
    %222 = arith.addf %220, %221 : vector<8x256xf32>
    %cst_94 = arith.constant 2.000000e+00 : f32
    %223 = vector.broadcast %cst_94 : f32 to vector<8x256xf32>
    %224 = arith.mulf %197, %223 : vector<8x256xf32>
    %cst_95 = arith.constant 2.000000e+00 : f32
    %225 = vector.broadcast %cst_95 : f32 to vector<8x256xf32>
    %226 = arith.mulf %197, %225 : vector<8x256xf32>
    %227 = arith.mulf %224, %226 : vector<8x256xf32>
    %228 = vector.broadcast %163 : vector<8x1xf32> to vector<8x256xf32>
    %229 = arith.mulf %227, %228 : vector<8x256xf32>
    %cst_96 = arith.constant 2.000000e+00 : f32
    %230 = vector.broadcast %cst_96 : f32 to vector<8x256xf32>
    %231 = arith.mulf %206, %230 : vector<8x256xf32>
    %cst_97 = arith.constant 2.000000e+00 : f32
    %232 = vector.broadcast %cst_97 : f32 to vector<8x256xf32>
    %233 = arith.mulf %206, %232 : vector<8x256xf32>
    %234 = arith.mulf %231, %233 : vector<8x256xf32>
    %235 = vector.broadcast %165 : vector<8x1xf32> to vector<8x256xf32>
    %236 = arith.mulf %234, %235 : vector<8x256xf32>
    %c0_98 = arith.constant 0 : index
    %c0_99 = arith.constant 0 : index
    %c0_100 = arith.constant 0 : index
    %237 = vector.load %arg5[%c0_98, %c0_99, %c0_100] : memref<16x8x256xf32, #tpu.memory_space<vmem>>, vector<1x8x256xf32>
    %238 = vector.shape_cast %237 : vector<1x8x256xf32> to vector<8x256xf32>
    %c1_101 = arith.constant 1 : index
    %c0_102 = arith.constant 0 : index
    %c0_103 = arith.constant 0 : index
    %239 = vector.load %arg5[%c1_101, %c0_102, %c0_103] : memref<16x8x256xf32, #tpu.memory_space<vmem>>, vector<1x8x256xf32>
    %240 = vector.shape_cast %239 : vector<1x8x256xf32> to vector<8x256xf32>
    %c2_104 = arith.constant 2 : index
    %c0_105 = arith.constant 0 : index
    %c0_106 = arith.constant 0 : index
    %241 = vector.load %arg5[%c2_104, %c0_105, %c0_106] : memref<16x8x256xf32, #tpu.memory_space<vmem>>, vector<1x8x256xf32>
    %242 = vector.shape_cast %241 : vector<1x8x256xf32> to vector<8x256xf32>
    %c3 = arith.constant 3 : index
    %c0_107 = arith.constant 0 : index
    %c0_108 = arith.constant 0 : index
    %243 = vector.load %arg5[%c3, %c0_107, %c0_108] : memref<16x8x256xf32, #tpu.memory_space<vmem>>, vector<1x8x256xf32>
    %244 = vector.shape_cast %243 : vector<1x8x256xf32> to vector<8x256xf32>
    %c4 = arith.constant 4 : index
    %c0_109 = arith.constant 0 : index
    %c0_110 = arith.constant 0 : index
    %245 = vector.load %arg5[%c4, %c0_109, %c0_110] : memref<16x8x256xf32, #tpu.memory_space<vmem>>, vector<1x8x256xf32>
    %246 = vector.shape_cast %245 : vector<1x8x256xf32> to vector<8x256xf32>
    %c15 = arith.constant 15 : index
    %c0_111 = arith.constant 0 : index
    %c0_112 = arith.constant 0 : index
    %247 = vector.load %arg5[%c15, %c0_111, %c0_112] : memref<16x8x256xf32, #tpu.memory_space<vmem>>, vector<1x8x256xf32>
    %248 = vector.shape_cast %247 : vector<1x8x256xf32> to vector<8x256xf32>
    %cst_113 = arith.constant 5.000000e-01 : f32
    %249 = vector.broadcast %cst_113 : f32 to vector<8x256xf32>
    %250 = arith.mulf %229, %249 : vector<8x256xf32>
    %251 = arith.subf %216, %250 : vector<8x256xf32>
    %cst_114 = arith.constant 5.000000e-01 : f32
    %252 = vector.broadcast %cst_114 : f32 to vector<8x256xf32>
    %253 = arith.mulf %229, %252 : vector<8x256xf32>
    %254 = arith.addf %216, %253 : vector<8x256xf32>
    %cst_115 = arith.constant 5.000000e-01 : f32
    %255 = vector.broadcast %cst_115 : f32 to vector<8x256xf32>
    %256 = arith.mulf %236, %255 : vector<8x256xf32>
    %257 = arith.subf %222, %256 : vector<8x256xf32>
    %cst_116 = arith.constant 5.000000e-01 : f32
    %258 = vector.broadcast %cst_116 : f32 to vector<8x256xf32>
    %259 = arith.mulf %236, %258 : vector<8x256xf32>
    %260 = arith.addf %222, %259 : vector<8x256xf32>
    %cst_117 = arith.constant 5.000000e-01 : f32
    %261 = vector.broadcast %cst_117 : f32 to vector<8x256xf32>
    %262 = arith.mulf %242, %261 : vector<8x256xf32>
    %263 = arith.subf %238, %262 : vector<8x256xf32>
    %cst_118 = arith.constant 5.000000e-01 : f32
    %264 = vector.broadcast %cst_118 : f32 to vector<8x256xf32>
    %265 = arith.mulf %242, %264 : vector<8x256xf32>
    %266 = arith.addf %238, %265 : vector<8x256xf32>
    %cst_119 = arith.constant 5.000000e-01 : f32
    %267 = vector.broadcast %cst_119 : f32 to vector<8x256xf32>
    %268 = arith.mulf %244, %267 : vector<8x256xf32>
    %269 = arith.subf %240, %268 : vector<8x256xf32>
    %cst_120 = arith.constant 5.000000e-01 : f32
    %270 = vector.broadcast %cst_120 : f32 to vector<8x256xf32>
    %271 = arith.mulf %244, %270 : vector<8x256xf32>
    %272 = arith.addf %240, %271 : vector<8x256xf32>
    %273 = arith.minimumf %254, %266 : vector<8x256xf32>
    %274 = arith.maximumf %251, %263 : vector<8x256xf32>
    %275 = arith.subf %273, %274 : vector<8x256xf32>
    %cst_121 = arith.constant 0.000000e+00 : f32
    %276 = vector.broadcast %cst_121 : f32 to vector<8x256xf32>
    %277 = arith.maximumf %275, %276 : vector<8x256xf32>
    %278 = arith.minimumf %260, %272 : vector<8x256xf32>
    %279 = arith.maximumf %257, %269 : vector<8x256xf32>
    %280 = arith.subf %278, %279 : vector<8x256xf32>
    %cst_122 = arith.constant 0.000000e+00 : f32
    %281 = vector.broadcast %cst_122 : f32 to vector<8x256xf32>
    %282 = arith.maximumf %280, %281 : vector<8x256xf32>
    %283 = arith.mulf %277, %282 : vector<8x256xf32>
    %284 = arith.mulf %229, %236 : vector<8x256xf32>
    %285 = arith.mulf %242, %244 : vector<8x256xf32>
    %286 = arith.addf %284, %285 : vector<8x256xf32>
    %287 = arith.subf %286, %283 : vector<8x256xf32>
    %288 = arith.maximumf %254, %266 : vector<8x256xf32>
    %289 = arith.minimumf %251, %263 : vector<8x256xf32>
    %290 = arith.subf %288, %289 : vector<8x256xf32>
    %cst_123 = arith.constant 0.000000e+00 : f32
    %291 = vector.broadcast %cst_123 : f32 to vector<8x256xf32>
    %292 = arith.maximumf %290, %291 : vector<8x256xf32>
    %293 = arith.maximumf %260, %272 : vector<8x256xf32>
    %294 = arith.minimumf %257, %269 : vector<8x256xf32>
    %295 = arith.subf %293, %294 : vector<8x256xf32>
    %cst_124 = arith.constant 0.000000e+00 : f32
    %296 = vector.broadcast %cst_124 : f32 to vector<8x256xf32>
    %297 = arith.maximumf %295, %296 : vector<8x256xf32>
    %298 = arith.mulf %292, %297 : vector<8x256xf32>
    %cst_125 = arith.constant 9.99999971E-10 : f32
    %299 = vector.broadcast %cst_125 : f32 to vector<8x256xf32>
    %300 = arith.addf %287, %299 : vector<8x256xf32>
    %301 = tpu.reciprocal %300 {approx = true} : vector<8x256xf32> -> vector<8x256xf32>
    %cst_126 = arith.constant 9.99999971E-10 : f32
    %302 = vector.broadcast %cst_126 : f32 to vector<8x256xf32>
    %303 = arith.addf %298, %302 : vector<8x256xf32>
    %304 = tpu.reciprocal %303 {approx = true} : vector<8x256xf32> -> vector<8x256xf32>
    %305 = arith.mulf %283, %301 : vector<8x256xf32>
    %306 = arith.subf %298, %287 : vector<8x256xf32>
    %307 = arith.mulf %306, %304 : vector<8x256xf32>
    %308 = arith.subf %305, %307 : vector<8x256xf32>
    %cst_127 = arith.constant 1.000000e+00 : f32
    %309 = vector.broadcast %cst_127 : f32 to vector<8x256xf32>
    %310 = arith.cmpf oeq, %246, %309 : vector<8x256xf32>
    %cst_128 = arith.constant 0.000000e+00 : f32
    %311 = vector.broadcast %cst_128 : f32 to vector<8x256xf32>
    %312 = arith.select %310, %170, %311 : vector<8x256xi1>, vector<8x256xf32>
    %cst_129 = arith.constant 0.000000e+00 : f32
    %313 = vector.broadcast %cst_129 : f32 to vector<8x256xf32>
    %314 = arith.cmpf oeq, %248, %313 : vector<8x256xf32>
    %cst_130 = arith.constant 0.000000e+00 : f32
    %315 = vector.broadcast %cst_130 : f32 to vector<8x256xf32>
    %316 = arith.select %314, %170, %315 : vector<8x256xi1>, vector<8x256xf32>
    %cst_131 = arith.constant 0.000000e+00 : f32
    %317 = vector.broadcast %cst_131 : f32 to vector<8x256xf32>
    %c5_i32_132 = arith.constant 5 : i32
    %318 = arith.addi %158, %c5_i32_132 : i32
    %c0_i32_133 = arith.constant 0 : i32
    %319 = arith.addi %318, %c0_i32_133 : i32
    %320 = arith.index_cast %319 : i32 to index
    %c0_134 = arith.constant 0 : index
    %c0_135 = arith.constant 0 : index
    %321 = vector.load %arg8[%320, %c0_134, %c0_135] : memref<30x8x256xf32, #tpu.memory_space<vmem>>, vector<1x8x256xf32>
    %322 = vector.shape_cast %321 : vector<1x8x256xf32> to vector<8x256xf32>
    %c5 = arith.constant 5 : index
    %c0_136 = arith.constant 0 : index
    %c0_137 = arith.constant 0 : index
    %323 = vector.load %arg5[%c5, %c0_136, %c0_137] : memref<16x8x256xf32, #tpu.memory_space<vmem>>, vector<1x8x256xf32>
    %324 = vector.shape_cast %323 : vector<1x8x256xf32> to vector<8x256xf32>
    %325 = arith.subf %322, %324 : vector<8x256xf32>
    %326 = math.absf %325 : vector<8x256xf32>
    %cst_138 = arith.constant 1.000000e+00 : f32
    %327 = vector.broadcast %cst_138 : f32 to vector<8x256xf32>
    %328 = arith.cmpf olt, %326, %327 : vector<8x256xf32>
    %cst_139 = arith.constant 5.000000e-01 : f32
    %329 = vector.broadcast %cst_139 : f32 to vector<8x256xf32>
    %330 = arith.mulf %329, %325 : vector<8x256xf32>
    %331 = arith.mulf %330, %325 : vector<8x256xf32>
    %cst_140 = arith.constant 5.000000e-01 : f32
    %332 = vector.broadcast %cst_140 : f32 to vector<8x256xf32>
    %333 = arith.subf %326, %332 : vector<8x256xf32>
    %334 = arith.select %328, %331, %333 : vector<8x256xi1>, vector<8x256xf32>
    %335 = arith.addf %317, %334 : vector<8x256xf32>
    %c5_i32_141 = arith.constant 5 : i32
    %336 = arith.addi %158, %c5_i32_141 : i32
    %c1_i32_142 = arith.constant 1 : i32
    %337 = arith.addi %336, %c1_i32_142 : i32
    %338 = arith.index_cast %337 : i32 to index
    %c0_143 = arith.constant 0 : index
    %c0_144 = arith.constant 0 : index
    %339 = vector.load %arg8[%338, %c0_143, %c0_144] : memref<30x8x256xf32, #tpu.memory_space<vmem>>, vector<1x8x256xf32>
    %340 = vector.shape_cast %339 : vector<1x8x256xf32> to vector<8x256xf32>
    %c6 = arith.constant 6 : index
    %c0_145 = arith.constant 0 : index
    %c0_146 = arith.constant 0 : index
    %341 = vector.load %arg5[%c6, %c0_145, %c0_146] : memref<16x8x256xf32, #tpu.memory_space<vmem>>, vector<1x8x256xf32>
    %342 = vector.shape_cast %341 : vector<1x8x256xf32> to vector<8x256xf32>
    %343 = arith.subf %340, %342 : vector<8x256xf32>
    %344 = math.absf %343 : vector<8x256xf32>
    %cst_147 = arith.constant 1.000000e+00 : f32
    %345 = vector.broadcast %cst_147 : f32 to vector<8x256xf32>
    %346 = arith.cmpf olt, %344, %345 : vector<8x256xf32>
    %cst_148 = arith.constant 5.000000e-01 : f32
    %347 = vector.broadcast %cst_148 : f32 to vector<8x256xf32>
    %348 = arith.mulf %347, %343 : vector<8x256xf32>
    %349 = arith.mulf %348, %343 : vector<8x256xf32>
    %cst_149 = arith.constant 5.000000e-01 : f32
    %350 = vector.broadcast %cst_149 : f32 to vector<8x256xf32>
    %351 = arith.subf %344, %350 : vector<8x256xf32>
    %352 = arith.select %346, %349, %351 : vector<8x256xi1>, vector<8x256xf32>
    %353 = arith.addf %335, %352 : vector<8x256xf32>
    %c5_i32_150 = arith.constant 5 : i32
    %354 = arith.addi %158, %c5_i32_150 : i32
    %c2_i32_151 = arith.constant 2 : i32
    %355 = arith.addi %354, %c2_i32_151 : i32
    %356 = arith.index_cast %355 : i32 to index
    %c0_152 = arith.constant 0 : index
    %c0_153 = arith.constant 0 : index
    %357 = vector.load %arg8[%356, %c0_152, %c0_153] : memref<30x8x256xf32, #tpu.memory_space<vmem>>, vector<1x8x256xf32>
    %358 = vector.shape_cast %357 : vector<1x8x256xf32> to vector<8x256xf32>
    %c7 = arith.constant 7 : index
    %c0_154 = arith.constant 0 : index
    %c0_155 = arith.constant 0 : index
    %359 = vector.load %arg5[%c7, %c0_154, %c0_155] : memref<16x8x256xf32, #tpu.memory_space<vmem>>, vector<1x8x256xf32>
    %360 = vector.shape_cast %359 : vector<1x8x256xf32> to vector<8x256xf32>
    %361 = arith.subf %358, %360 : vector<8x256xf32>
    %362 = math.absf %361 : vector<8x256xf32>
    %cst_156 = arith.constant 1.000000e+00 : f32
    %363 = vector.broadcast %cst_156 : f32 to vector<8x256xf32>
    %364 = arith.cmpf olt, %362, %363 : vector<8x256xf32>
    %cst_157 = arith.constant 5.000000e-01 : f32
    %365 = vector.broadcast %cst_157 : f32 to vector<8x256xf32>
    %366 = arith.mulf %365, %361 : vector<8x256xf32>
    %367 = arith.mulf %366, %361 : vector<8x256xf32>
    %cst_158 = arith.constant 5.000000e-01 : f32
    %368 = vector.broadcast %cst_158 : f32 to vector<8x256xf32>
    %369 = arith.subf %362, %368 : vector<8x256xf32>
    %370 = arith.select %364, %367, %369 : vector<8x256xi1>, vector<8x256xf32>
    %371 = arith.addf %353, %370 : vector<8x256xf32>
    %c5_i32_159 = arith.constant 5 : i32
    %372 = arith.addi %158, %c5_i32_159 : i32
    %c3_i32_160 = arith.constant 3 : i32
    %373 = arith.addi %372, %c3_i32_160 : i32
    %374 = arith.index_cast %373 : i32 to index
    %c0_161 = arith.constant 0 : index
    %c0_162 = arith.constant 0 : index
    %375 = vector.load %arg8[%374, %c0_161, %c0_162] : memref<30x8x256xf32, #tpu.memory_space<vmem>>, vector<1x8x256xf32>
    %376 = vector.shape_cast %375 : vector<1x8x256xf32> to vector<8x256xf32>
    %c8 = arith.constant 8 : index
    %c0_163 = arith.constant 0 : index
    %c0_164 = arith.constant 0 : index
    %377 = vector.load %arg5[%c8, %c0_163, %c0_164] : memref<16x8x256xf32, #tpu.memory_space<vmem>>, vector<1x8x256xf32>
    %378 = vector.shape_cast %377 : vector<1x8x256xf32> to vector<8x256xf32>
    %379 = arith.subf %376, %378 : vector<8x256xf32>
    %380 = math.absf %379 : vector<8x256xf32>
    %cst_165 = arith.constant 1.000000e+00 : f32
    %381 = vector.broadcast %cst_165 : f32 to vector<8x256xf32>
    %382 = arith.cmpf olt, %380, %381 : vector<8x256xf32>
    %cst_166 = arith.constant 5.000000e-01 : f32
    %383 = vector.broadcast %cst_166 : f32 to vector<8x256xf32>
    %384 = arith.mulf %383, %379 : vector<8x256xf32>
    %385 = arith.mulf %384, %379 : vector<8x256xf32>
    %cst_167 = arith.constant 5.000000e-01 : f32
    %386 = vector.broadcast %cst_167 : f32 to vector<8x256xf32>
    %387 = arith.subf %380, %386 : vector<8x256xf32>
    %388 = arith.select %382, %385, %387 : vector<8x256xi1>, vector<8x256xf32>
    %389 = arith.addf %371, %388 : vector<8x256xf32>
    %c5_i32_168 = arith.constant 5 : i32
    %390 = arith.addi %158, %c5_i32_168 : i32
    %c4_i32_169 = arith.constant 4 : i32
    %391 = arith.addi %390, %c4_i32_169 : i32
    %392 = arith.index_cast %391 : i32 to index
    %c0_170 = arith.constant 0 : index
    %c0_171 = arith.constant 0 : index
    %393 = vector.load %arg8[%392, %c0_170, %c0_171] : memref<30x8x256xf32, #tpu.memory_space<vmem>>, vector<1x8x256xf32>
    %394 = vector.shape_cast %393 : vector<1x8x256xf32> to vector<8x256xf32>
    %c9 = arith.constant 9 : index
    %c0_172 = arith.constant 0 : index
    %c0_173 = arith.constant 0 : index
    %395 = vector.load %arg5[%c9, %c0_172, %c0_173] : memref<16x8x256xf32, #tpu.memory_space<vmem>>, vector<1x8x256xf32>
    %396 = vector.shape_cast %395 : vector<1x8x256xf32> to vector<8x256xf32>
    %397 = arith.subf %394, %396 : vector<8x256xf32>
    %398 = math.absf %397 : vector<8x256xf32>
    %cst_174 = arith.constant 1.000000e+00 : f32
    %399 = vector.broadcast %cst_174 : f32 to vector<8x256xf32>
    %400 = arith.cmpf olt, %398, %399 : vector<8x256xf32>
    %cst_175 = arith.constant 5.000000e-01 : f32
    %401 = vector.broadcast %cst_175 : f32 to vector<8x256xf32>
    %402 = arith.mulf %401, %397 : vector<8x256xf32>
    %403 = arith.mulf %402, %397 : vector<8x256xf32>
    %cst_176 = arith.constant 5.000000e-01 : f32
    %404 = vector.broadcast %cst_176 : f32 to vector<8x256xf32>
    %405 = arith.subf %398, %404 : vector<8x256xf32>
    %406 = arith.select %400, %403, %405 : vector<8x256xi1>, vector<8x256xf32>
    %407 = arith.addf %389, %406 : vector<8x256xf32>
    %c5_i32_177 = arith.constant 5 : i32
    %408 = arith.addi %158, %c5_i32_177 : i32
    %c5_i32_178 = arith.constant 5 : i32
    %409 = arith.addi %408, %c5_i32_178 : i32
    %410 = arith.index_cast %409 : i32 to index
    %c0_179 = arith.constant 0 : index
    %c0_180 = arith.constant 0 : index
    %411 = vector.load %arg8[%410, %c0_179, %c0_180] : memref<30x8x256xf32, #tpu.memory_space<vmem>>, vector<1x8x256xf32>
    %412 = vector.shape_cast %411 : vector<1x8x256xf32> to vector<8x256xf32>
    %c10 = arith.constant 10 : index
    %c0_181 = arith.constant 0 : index
    %c0_182 = arith.constant 0 : index
    %413 = vector.load %arg5[%c10, %c0_181, %c0_182] : memref<16x8x256xf32, #tpu.memory_space<vmem>>, vector<1x8x256xf32>
    %414 = vector.shape_cast %413 : vector<1x8x256xf32> to vector<8x256xf32>
    %415 = arith.subf %412, %414 : vector<8x256xf32>
    %416 = math.absf %415 : vector<8x256xf32>
    %cst_183 = arith.constant 1.000000e+00 : f32
    %417 = vector.broadcast %cst_183 : f32 to vector<8x256xf32>
    %418 = arith.cmpf olt, %416, %417 : vector<8x256xf32>
    %cst_184 = arith.constant 5.000000e-01 : f32
    %419 = vector.broadcast %cst_184 : f32 to vector<8x256xf32>
    %420 = arith.mulf %419, %415 : vector<8x256xf32>
    %421 = arith.mulf %420, %415 : vector<8x256xf32>
    %cst_185 = arith.constant 5.000000e-01 : f32
    %422 = vector.broadcast %cst_185 : f32 to vector<8x256xf32>
    %423 = arith.subf %416, %422 : vector<8x256xf32>
    %424 = arith.select %418, %421, %423 : vector<8x256xi1>, vector<8x256xf32>
    %425 = arith.addf %407, %424 : vector<8x256xf32>
    %c5_i32_186 = arith.constant 5 : i32
    %426 = arith.addi %158, %c5_i32_186 : i32
    %c6_i32_187 = arith.constant 6 : i32
    %427 = arith.addi %426, %c6_i32_187 : i32
    %428 = arith.index_cast %427 : i32 to index
    %c0_188 = arith.constant 0 : index
    %c0_189 = arith.constant 0 : index
    %429 = vector.load %arg8[%428, %c0_188, %c0_189] : memref<30x8x256xf32, #tpu.memory_space<vmem>>, vector<1x8x256xf32>
    %430 = vector.shape_cast %429 : vector<1x8x256xf32> to vector<8x256xf32>
    %c11 = arith.constant 11 : index
    %c0_190 = arith.constant 0 : index
    %c0_191 = arith.constant 0 : index
    %431 = vector.load %arg5[%c11, %c0_190, %c0_191] : memref<16x8x256xf32, #tpu.memory_space<vmem>>, vector<1x8x256xf32>
    %432 = vector.shape_cast %431 : vector<1x8x256xf32> to vector<8x256xf32>
    %433 = arith.subf %430, %432 : vector<8x256xf32>
    %434 = math.absf %433 : vector<8x256xf32>
    %cst_192 = arith.constant 1.000000e+00 : f32
    %435 = vector.broadcast %cst_192 : f32 to vector<8x256xf32>
    %436 = arith.cmpf olt, %434, %435 : vector<8x256xf32>
    %cst_193 = arith.constant 5.000000e-01 : f32
    %437 = vector.broadcast %cst_193 : f32 to vector<8x256xf32>
    %438 = arith.mulf %437, %433 : vector<8x256xf32>
    %439 = arith.mulf %438, %433 : vector<8x256xf32>
    %cst_194 = arith.constant 5.000000e-01 : f32
    %440 = vector.broadcast %cst_194 : f32 to vector<8x256xf32>
    %441 = arith.subf %434, %440 : vector<8x256xf32>
    %442 = arith.select %436, %439, %441 : vector<8x256xi1>, vector<8x256xf32>
    %443 = arith.addf %425, %442 : vector<8x256xf32>
    %c5_i32_195 = arith.constant 5 : i32
    %444 = arith.addi %158, %c5_i32_195 : i32
    %c7_i32_196 = arith.constant 7 : i32
    %445 = arith.addi %444, %c7_i32_196 : i32
    %446 = arith.index_cast %445 : i32 to index
    %c0_197 = arith.constant 0 : index
    %c0_198 = arith.constant 0 : index
    %447 = vector.load %arg8[%446, %c0_197, %c0_198] : memref<30x8x256xf32, #tpu.memory_space<vmem>>, vector<1x8x256xf32>
    %448 = vector.shape_cast %447 : vector<1x8x256xf32> to vector<8x256xf32>
    %c12 = arith.constant 12 : index
    %c0_199 = arith.constant 0 : index
    %c0_200 = arith.constant 0 : index
    %449 = vector.load %arg5[%c12, %c0_199, %c0_200] : memref<16x8x256xf32, #tpu.memory_space<vmem>>, vector<1x8x256xf32>
    %450 = vector.shape_cast %449 : vector<1x8x256xf32> to vector<8x256xf32>
    %451 = arith.subf %448, %450 : vector<8x256xf32>
    %452 = math.absf %451 : vector<8x256xf32>
    %cst_201 = arith.constant 1.000000e+00 : f32
    %453 = vector.broadcast %cst_201 : f32 to vector<8x256xf32>
    %454 = arith.cmpf olt, %452, %453 : vector<8x256xf32>
    %cst_202 = arith.constant 5.000000e-01 : f32
    %455 = vector.broadcast %cst_202 : f32 to vector<8x256xf32>
    %456 = arith.mulf %455, %451 : vector<8x256xf32>
    %457 = arith.mulf %456, %451 : vector<8x256xf32>
    %cst_203 = arith.constant 5.000000e-01 : f32
    %458 = vector.broadcast %cst_203 : f32 to vector<8x256xf32>
    %459 = arith.subf %452, %458 : vector<8x256xf32>
    %460 = arith.select %454, %457, %459 : vector<8x256xi1>, vector<8x256xf32>
    %461 = arith.addf %443, %460 : vector<8x256xf32>
    %c5_i32_204 = arith.constant 5 : i32
    %462 = arith.addi %158, %c5_i32_204 : i32
    %c8_i32_205 = arith.constant 8 : i32
    %463 = arith.addi %462, %c8_i32_205 : i32
    %464 = arith.index_cast %463 : i32 to index
    %c0_206 = arith.constant 0 : index
    %c0_207 = arith.constant 0 : index
    %465 = vector.load %arg8[%464, %c0_206, %c0_207] : memref<30x8x256xf32, #tpu.memory_space<vmem>>, vector<1x8x256xf32>
    %466 = vector.shape_cast %465 : vector<1x8x256xf32> to vector<8x256xf32>
    %c13 = arith.constant 13 : index
    %c0_208 = arith.constant 0 : index
    %c0_209 = arith.constant 0 : index
    %467 = vector.load %arg5[%c13, %c0_208, %c0_209] : memref<16x8x256xf32, #tpu.memory_space<vmem>>, vector<1x8x256xf32>
    %468 = vector.shape_cast %467 : vector<1x8x256xf32> to vector<8x256xf32>
    %469 = arith.subf %466, %468 : vector<8x256xf32>
    %470 = math.absf %469 : vector<8x256xf32>
    %cst_210 = arith.constant 1.000000e+00 : f32
    %471 = vector.broadcast %cst_210 : f32 to vector<8x256xf32>
    %472 = arith.cmpf olt, %470, %471 : vector<8x256xf32>
    %cst_211 = arith.constant 5.000000e-01 : f32
    %473 = vector.broadcast %cst_211 : f32 to vector<8x256xf32>
    %474 = arith.mulf %473, %469 : vector<8x256xf32>
    %475 = arith.mulf %474, %469 : vector<8x256xf32>
    %cst_212 = arith.constant 5.000000e-01 : f32
    %476 = vector.broadcast %cst_212 : f32 to vector<8x256xf32>
    %477 = arith.subf %470, %476 : vector<8x256xf32>
    %478 = arith.select %472, %475, %477 : vector<8x256xi1>, vector<8x256xf32>
    %479 = arith.addf %461, %478 : vector<8x256xf32>
    %c5_i32_213 = arith.constant 5 : i32
    %480 = arith.addi %158, %c5_i32_213 : i32
    %c9_i32_214 = arith.constant 9 : i32
    %481 = arith.addi %480, %c9_i32_214 : i32
    %482 = arith.index_cast %481 : i32 to index
    %c0_215 = arith.constant 0 : index
    %c0_216 = arith.constant 0 : index
    %483 = vector.load %arg8[%482, %c0_215, %c0_216] : memref<30x8x256xf32, #tpu.memory_space<vmem>>, vector<1x8x256xf32>
    %484 = vector.shape_cast %483 : vector<1x8x256xf32> to vector<8x256xf32>
    %c14 = arith.constant 14 : index
    %c0_217 = arith.constant 0 : index
    %c0_218 = arith.constant 0 : index
    %485 = vector.load %arg5[%c14, %c0_217, %c0_218] : memref<16x8x256xf32, #tpu.memory_space<vmem>>, vector<1x8x256xf32>
    %486 = vector.shape_cast %485 : vector<1x8x256xf32> to vector<8x256xf32>
    %487 = arith.subf %484, %486 : vector<8x256xf32>
    %488 = math.absf %487 : vector<8x256xf32>
    %cst_219 = arith.constant 1.000000e+00 : f32
    %489 = vector.broadcast %cst_219 : f32 to vector<8x256xf32>
    %490 = arith.cmpf olt, %488, %489 : vector<8x256xf32>
    %cst_220 = arith.constant 5.000000e-01 : f32
    %491 = vector.broadcast %cst_220 : f32 to vector<8x256xf32>
    %492 = arith.mulf %491, %487 : vector<8x256xf32>
    %493 = arith.mulf %492, %487 : vector<8x256xf32>
    %cst_221 = arith.constant 5.000000e-01 : f32
    %494 = vector.broadcast %cst_221 : f32 to vector<8x256xf32>
    %495 = arith.subf %488, %494 : vector<8x256xf32>
    %496 = arith.select %490, %493, %495 : vector<8x256xi1>, vector<8x256xf32>
    %497 = arith.addf %479, %496 : vector<8x256xf32>
    %498 = arith.mulf %497, %316 : vector<8x256xf32>
    %cst_222 = arith.constant 0.000000e+00 : f32
    %499 = vector.broadcast %cst_222 : f32 to vector<8x256xf32>
    %500 = arith.maximumf %308, %499 : vector<8x256xf32>
    %cst_223 = arith.constant 0.000000e+00 : f32
    %501 = vector.broadcast %cst_223 : f32 to vector<8x256xf32>
    %502 = arith.select %310, %500, %501 : vector<8x256xi1>, vector<8x256xf32>
    %cst_224 = arith.constant -16.1180954 : f32
    %cst_225 = arith.constant 16.1180954 : f32
    %503 = vector.broadcast %cst_224 : f32 to vector<8x256xf32>
    %504 = arith.maximumf %503, %210 : vector<8x256xf32>
    %505 = vector.broadcast %cst_225 : f32 to vector<8x256xf32>
    %506 = arith.minimumf %505, %504 : vector<8x256xf32>
    %cst_226 = arith.constant 0.000000e+00 : f32
    %507 = vector.broadcast %cst_226 : f32 to vector<8x256xf32>
    %508 = arith.maximumf %506, %507 : vector<8x256xf32>
    %509 = arith.mulf %506, %502 : vector<8x256xf32>
    %510 = arith.subf %508, %509 : vector<8x256xf32>
    %511 = math.absf %506 : vector<8x256xf32>
    %cst_227 = arith.constant 0.000000e+00 : f32
    %512 = vector.broadcast %cst_227 : f32 to vector<8x256xf32>
    %513 = arith.subf %512, %511 : vector<8x256xf32>
    %514 = math.exp %513 : vector<8x256xf32>
    %cst_228 = arith.constant 1.000000e+00 : f32
    %515 = vector.broadcast %cst_228 : f32 to vector<8x256xf32>
    %516 = arith.addf %515, %514 : vector<8x256xf32>
    %517 = math.log %516 : vector<8x256xf32>
    %518 = arith.addf %510, %517 : vector<8x256xf32>
    %519 = arith.mulf %518, %170 : vector<8x256xf32>
    %cst_229 = arith.constant 1.000000e+00 : f32
    %520 = vector.broadcast %cst_229 : f32 to vector<8x256xf32>
    %521 = arith.subf %520, %308 : vector<8x256xf32>
    %522 = arith.mulf %312, %521 : vector<8x256xf32>
    %cst_230 = arith.constant dense<0.000000e+00> : vector<256xf32>
    %523 = vector.multi_reduction <add>, %522, %cst_230 [0] : vector<8x256xf32> to vector<256xf32>
    %524 = vector.shape_cast %523 : vector<256xf32> to vector<1x256xf32>
    %cst_231 = arith.constant dense<0.000000e+00> : vector<256xf32>
    %525 = vector.multi_reduction <add>, %312, %cst_231 [0] : vector<8x256xf32> to vector<256xf32>
    %526 = vector.shape_cast %525 : vector<256xf32> to vector<1x256xf32>
    %cst_232 = arith.constant dense<0.000000e+00> : vector<256xf32>
    %527 = vector.multi_reduction <add>, %498, %cst_232 [0] : vector<8x256xf32> to vector<256xf32>
    %528 = vector.shape_cast %527 : vector<256xf32> to vector<1x256xf32>
    %cst_233 = arith.constant dense<0.000000e+00> : vector<256xf32>
    %529 = vector.multi_reduction <add>, %316, %cst_233 [0] : vector<8x256xf32> to vector<256xf32>
    %530 = vector.shape_cast %529 : vector<256xf32> to vector<1x256xf32>
    %cst_234 = arith.constant dense<0.000000e+00> : vector<256xf32>
    %531 = vector.multi_reduction <add>, %519, %cst_234 [0] : vector<8x256xf32> to vector<256xf32>
    %532 = vector.shape_cast %531 : vector<256xf32> to vector<1x256xf32>
    %533 = tpu.concatenate %524, %526, %528, %530, %532 in 0 : vector<1x256xf32>, vector<1x256xf32>, vector<1x256xf32>, vector<1x256xf32>, vector<1x256xf32> -> vector<5x256xf32>
    %c0_i32_235 = arith.constant 0 : i32
    %534 = arith.cmpi eq, %arg2, %c0_i32_235 : i32
    %535 = arith.extui %534 : i1 to i32
    %c0_i32_236 = arith.constant 0 : i32
    %536 = arith.cmpi ne, %535, %c0_i32_236 : i32
    scf.if %536 {
      %c0_239 = arith.constant 0 : index
      %c0_240 = arith.constant 0 : index
      %c0_241 = arith.constant 0 : index
      %540 = vector.load %arg7[%c0_239, %c0_240, %c0_241] : memref<1x5x256xf32, #tpu.memory_space<vmem>>, vector<1x5x256xf32>
      %541 = vector.shape_cast %540 : vector<1x5x256xf32> to vector<5x256xf32>
      %542 = vector.shape_cast %533 : vector<5x256xf32> to vector<1x5x256xf32>
      tpu.vector_store %arg7[%c0_239, %c0_240, %c0_241], %542 {strides = array<i32>} : memref<1x5x256xf32, #tpu.memory_space<vmem>>, vector<1x5x256xf32>,
    } else {
    }
    %c0_i32_237 = arith.constant 0 : i32
    %537 = arith.cmpi sgt, %arg2, %c0_i32_237 : i32
    %538 = arith.extui %537 : i1 to i32
    %c0_i32_238 = arith.constant 0 : i32
    %539 = arith.cmpi ne, %538, %c0_i32_238 : i32
    scf.if %539 {
      %c0_239 = arith.constant 0 : index
      %c0_240 = arith.constant 0 : index
      %c0_241 = arith.constant 0 : index
      %540 = vector.load %arg7[%c0_239, %c0_240, %c0_241] : memref<1x5x256xf32, #tpu.memory_space<vmem>>, vector<1x5x256xf32>
      %541 = vector.shape_cast %540 : vector<1x5x256xf32> to vector<5x256xf32>
      %542 = arith.addf %541, %533 : vector<5x256xf32>
      %c0_242 = arith.constant 0 : index
      %c0_243 = arith.constant 0 : index
      %c0_244 = arith.constant 0 : index
      %543 = vector.load %arg7[%c0_242, %c0_243, %c0_244] : memref<1x5x256xf32, #tpu.memory_space<vmem>>, vector<1x5x256xf32>
      %544 = vector.shape_cast %543 : vector<1x5x256xf32> to vector<5x256xf32>
      %545 = vector.shape_cast %542 : vector<5x256xf32> to vector<1x5x256xf32>
      tpu.vector_store %arg7[%c0_242, %c0_243, %c0_244], %545 {strides = array<i32>} : memref<1x5x256xf32, #tpu.memory_space<vmem>>, vector<1x5x256xf32>,
    } else {
    }
    return
  }
  func.func @transform_0(%arg0: i32, %arg1: i32, %arg2: i32) -> (i32, i32) {
    %c0_i32 = arith.constant 0 : i32
    %c0_i32_0 = arith.constant 0 : i32
    return %c0_i32, %arg1 : i32, i32
  }
  func.func @transform_1(%arg0: i32, %arg1: i32, %arg2: i32) -> (i32, i32, i32) {
    %c1_i32 = arith.constant 1 : i32
    %0 = arith.muli %arg0, %c1_i32 : i32
    %1 = arith.addi %0, %arg2 : i32
    %c0_i32 = arith.constant 0 : i32
    %c0_i32_0 = arith.constant 0 : i32
    %c0_i32_1 = arith.constant 0 : i32
    return %1, %c0_i32, %c0_i32_0 : i32, i32, i32
  }
  func.func @transform_2(%arg0: i32, %arg1: i32, %arg2: i32) -> (i32, i32, i32) {
    %c1_i32 = arith.constant 1 : i32
    %0 = arith.muli %arg0, %c1_i32 : i32
    %1 = arith.addi %0, %arg2 : i32
    %c0_i32 = arith.constant 0 : i32
    %c0_i32_0 = arith.constant 0 : i32
    return %c0_i32, %1, %arg1 : i32, i32, i32
  }
  func.func @transform_4(%arg0: i32, %arg1: i32, %arg2: i32) -> (i32, i32, i32) {
    %c0_i32 = arith.constant 0 : i32
    %c0_i32_0 = arith.constant 0 : i32
    return %arg0, %c0_i32, %arg1 : i32, i32, i32
  }
}

</mosaic_0001>

<bundles_post_ra>
// kernel: tpu_custom_call.1
= control target key start
LH: loop header
LB: loop body
LE: loop exit
PB: predicated region body
PF: predicated region fallthrough
CT: control target
= control target key end

     0   :  { %s4010_s0 = inlined_call_operand.vmem [shape: f32[3,256], index: 0, kind: input, shape index: {}]   ;;  %s4011_s1 = inlined_call_operand.vmem [shape: f32[16,3,1], index: 1, kind: input, shape index: {}]   ;;  %s4012_s2 = inlined_call_operand.hbm [shape: f32[16,16,256], index: 2, kind: input, shape index: {}]   ;;  %s4013_s3 = inlined_call_operand.hbm [shape: f32[16,3840], index: 3, kind: input, shape index: {}]   ;;  %s4014_s4 = inlined_call_operand.vmem [shape: f32[2,5,256], index: 4, kind: output, shape index: {}]  }
   0x1   :  { %4019 = sst [smem:[#allocation72_spill]] %s4011_s1 }
   0x2   :  { %9 = vsyncpa [#allocation5], 0 }
   0x3   :  { %11 = vsyncpa [#allocation5 + $0x1], 0  ;;  %s3094_s15 = smov 0   ;;  %s3096_s16 = smov 0  }
   0x4   :  { %s3098_s17 = smov 0   ;;  %s3100_s18 = smov 0  }
   0x5   :  { %s3102_s19 = smov 0   ;;  %s3104_s20 = smov 0  }
   0x6 LB: > { %s2278_s21 = sadd.s32 4294967295, %s3061_s20   ;;  %s36_s22 = sadd.s32 1, %s3057_s19  ;;  %s3061_s20 = sphi %s3104_s20, %s17_s20   ;;  %s3057_s19 = sphi %s3102_s19, %s4076_s19   ;;  %s3053_s18 = sphi %s3100_s18, %s4075_s18   ;;  %s3049_s17 = sphi %s3098_s17, %s4074_s17   ;;  %s3045_s16 = sphi %s3096_s16, %s4073_s16   ;;  %s3041_s15 = sphi %s3094_s15, %s4072_s15  }
   0x7   : > { %p38_p0 = scmp.ge.s32.totalorder %s36_s22, 2  ;;  %s101_s23 = sadd.s32 1, %s3049_s17 }
   0x8   : > { %p108_p1 = scmp.ne.s32.totalorder %s3049_s17, %s3045_s16  ;;  %p109_p2 = scmp.eq.s32.totalorder %s3061_s20, 0 }
   0x9   : > { %s4078_s22 = smov (%p38_p0, %s36_s22), 0  ;;  %p114_p4 = scmp.ne.s32.totalorder %s3045_s16, %s3041_s15 }
   0xa   : > { %p3130_p3 = por %p109_p2, %p108_p1  ;;  %s96_s25 = ssub.s32 %s3057_s19, %s4078_s22 }
   0xb   : > { %p115_p5 = scmp.eq.s32.totalorder %s2278_s21, 0  ;;  %p99_p6 = scmp.eq.s32.totalorder %s96_s25, 0 }
   0xc   : > { %p2515_p8 = scmp.lt.s32.totalorder %s3061_s20, 2  ;;  %s186_s28 = sand.u32 1, %s3049_s17  }
   0xd   : > { %p3137_p7 = por %p115_p5, %p114_p4  ;;  %s2435_s29 = sshll.u32 %s3057_s19, 8 }
   0xe   : > { %s3143_s27 = scalar_select %p99_p6, %s3049_s17, %s101_s23  }
   0xf   : > { %s2283_s30 = sshll.u32 %s186_s28, 8  ;;  %s3150_s7 = scalar_lea.hbm %s4012_s2, %s2435_s29 }
  0x10   : > { %s190_s8 = scalar_lea.vmem [#allocation4], %s2283_s30  ;;  %p3154_p9 = pnand %p2515_p8, %p3130_p3 }
  0x11   : > { %s200_s9 = sshll.u32 %s190_s8, 4  ;;  %s3161_s11 = scalar_lea.sflag [#allocation5], %s186_s28  ;;  %s3158_s9 = int_to_ptr.vmem [resolvable:$true] %s200_s9 }
  0x12   : > { %s2619_s12 = scalar_lea.hbm %s3150_s7, 4096  ;;  %p2621_p12 = pneg %p3154_p9 }
  0x13   : > { %p2620_p11 = scmp.ne.s32.totalorder %s3150_s7, %s2619_s12  ;;  %s2624_s15 = scalar_lea.hbm %s4012_s2, 8192 }
  0x14   : > { %p2625_p1 = scmp.lt.u32.totalorder %s3150_s7, %s4012_s2  ;;  %p2626_p2 = scmp.lt.u32.totalorder %s2624_s15, %s2619_s12 }
  0x15   : > { %p2622_p13 = pnand %p2621_p12, %p2620_p11  ;;  %p2628_p4 = scmp.lt.u32.totalorder %s2619_s12, %s3150_s7 }
  0x16   : > { %p2627_p3 = por %p2626_p2, %p2625_p1 }
  0x17   : > { %p2623_p0 = pneg %p2622_p13 }
  0x18   : > { %p2629_p5 = por %p2628_p4, %p2627_p3 }
  0x1a   : > { %p2630_p6 = pnand %p2629_p5, %p2623_p0 }
  0x1c   : > { %2633 = shalt.err (!%p2630_p6)
}
  0x1d   : > { %s2634_s24 = scalar_lea.vmem %s3158_s9, 4096  ;;  %s3063_s25 = smov [#allocation4]  }
  0x1e   : > { %p2635_p8 = scmp.ne.s32.totalorder %s3158_s9, %s2634_s24  ;;  %s2639_s28 = sshll.u32 %s3063_s25, 4  ;;  %s2640_s28 = int_to_ptr.vmem [resolvable:$false] %s2639_s28 }
  0x1f   : > { %s2641_s29 = scalar_lea.vmem %s2640_s28, 8192  ;;  %p2642_p10 = scmp.lt.s32.totalorder %s3158_s9, %s2640_s28 }
  0x20   : > { %p2637_p11 = pnand %p2635_p8, %p2621_p12  ;;  %p2643_p1 = scmp.lt.s32.totalorder %s2641_s29, %s2634_s24 }
  0x22   : > { %p2638_p13 = pneg %p2637_p11  ;;  %p2644_p2 = por %p2643_p1, %p2642_p10 }
  0x24   : > { %p2645_p3 = pnand %p2644_p2, %p2638_p13 }
  0x26   : > { %2648 = shalt.err (!%p2645_p3)
}
  0x27   : > { %s3064_s30 = smov 512   ;;  %s3065_s5 = smov 256  }
  0x28   : > { %s3066_s6 = smov 16   ;;  %p208_p12 = scmp.lt.s32.totalorder %s3061_s20, 3 }
  0x29   : > { %2514 = dma.hbm_to_vmem [thread:$0]  (!%p3154_p9), %s3150_s7, 4096, %s3158_s9, %s3161_s11, %s3064_s30, %s3065_s5, %s3066_s6  }
  0x2a   : > { %p4023_p0 = scmp.ge.s32.totalorder %s3061_s20, 1 }
  0x2c   : > { %p209_p4 = pnand %p4023_p0, %p208_p12 }
  0x2e   : > { %212 = sbr.rel (%p209_p4) target bundleno = 611 (0x263), region = 32 }
  0x35   : > { %s214_s8 = sand.u32 1, %s3045_s16  }
  0x36   : > { %s2287_s12 = sshll.u32 %s214_s8, 8  ;;  %s215_s13 = scalar_lea.sflag [#allocation5], %s214_s8 }
  0x37   : > { %s3193_s14 = scalar_lea.vmem [#allocation4], %s2287_s12 }
  0x38   : > { %3034 = dma.done.wait (%p3137_p7), %s215_s13, 4096  }
  0x39   : > { %3036 = vsyncadd (%p3137_p7), %s215_s13, 4294963200  ;;  %s2288_s7 = sshll.u32 %s3053_s18, 3  ;;  %p273_p9 = scmp.lt.s32.totalorder %s3053_s18, 1 }
  0x3a   : > { %p264_p10 = scmp.lt.s32.totalorder %s2288_s7, 15  ;;  %s332_s9 = sshra.s32 %s2288_s7, 3 }
  0x3b   : > { %s4080_s18 = smov (!%p273_p9, %s3053_s18), 1  ;;  %s3202_s11 = smul.u32 3840, %s332_s9 }
  0x3c   : > { %s4082_s7 = smov (!%p264_p10, %s2288_s7), 15  ;;  %s2436_s10 = sshll.u32 %s4080_s18, 4 }
  0x3d   : > { %s2289_s15 = sshll.u32 %s4082_s7, 2  ;;  %s3207_s26 = scalar_lea.vmem %s4014_s4, %s2436_s10 }
  0x3e   : > { %s4024_s1 = sld [smem:[#allocation72_spill]]  ;;  %s337_s5 = scalar_lea.hbm %s4013_s3, %s3202_s11 }
  0x3f   : > { %s2439_s18 = sadd.s32 256, %s3202_s11  ;;  %s3067_s6 = smov [#allocation2]  }
  0x40   : > { %s349_s8 = sshll.u32 %s3067_s6, 4  ;;  %s3223_s7 = scalar_lea.hbm %s4013_s3, %s2439_s18  ;;  %s3225_s8 = int_to_ptr.vmem [resolvable:$true] %s349_s8 }
  0x41   : > { %s1937_s9 = scalar_lea.vmem %s3067_s6, 16  ;;  %s2649_s10 = scalar_lea.hbm %s337_s5, 256 }
  0x42   : > { %p2650_p7 = scmp.ne.s32.totalorder %s337_s5, %s2649_s10  ;;  %s3231_s23 = scalar_lea.hbm %s4013_s3, 7680 }
  0x43   : > { %p2652_p5 = scmp.lt.u32.totalorder %s337_s5, %s4013_s3  ;;  %p2653_p6 = scmp.lt.u32.totalorder %s3231_s23, %s2649_s10 }
  0x44   : > { %s3212_s28 = scalar_lea.vmem %s4024_s1, %s2289_s15  ;;  %p2655_p11 = scmp.lt.u32.totalorder %s2649_s10, %s337_s5 }
  0x45   : > { %p2654_p8 = por %p2653_p6, %p2652_p5 }
  0x47   : > { %p2656_p13 = por %p2655_p11, %p2654_p8 }
  0x49   : > { %p2657_p1 = pnand %p2656_p13, %p2650_p7 }
  0x4b   : > { %2660 = shalt.err (!%p2657_p1)  }
  0x4c   : > { %s2661_s29 = scalar_lea.vmem %s3225_s8, 256  ;;  %s3240_s30 = scalar_lea.vmem %s3225_s8, 7680 }
  0x4d   : > { %p2662_p2 = scmp.ne.s32.totalorder %s3225_s8, %s2661_s29  ;;  %p2666_p3 = scmp.lt.s32.totalorder %s3225_s8, %s3225_s8 }
  0x4e   : > { %p2667_p12 = scmp.lt.s32.totalorder %s3240_s30, %s2661_s29 }
  0x50   : > { %p2668_p0 = por %p2667_p12, %p2666_p3 }
  0x52   : > { %p2669_p4 = pnand %p2668_p0, %p2662_p2 }
  0x54   : > { %2672 = shalt.err (!%p2669_p4)  }
  0x55   : > { %352 = dma.hbm_to_vmem [thread:$0]  %s337_s5, 256, %s3225_s8, [#allocation3] }
  0x56   : > { %s368_s18 = sshll.u32 %s1937_s9, 4  ;;  %s2441_s12 = sadd.s32 512, %s3202_s11  ;;  %s369_s18 = int_to_ptr.vmem [resolvable:$true] %s368_s18 }
  0x57   : > { %s3250_s15 = scalar_lea.hbm %s4013_s3, %s2441_s12  ;;  %s2673_s21 = scalar_lea.hbm %s3223_s7, 256 }
  0x58   : > { %p2674_p9 = scmp.ne.s32.totalorder %s3223_s7, %s2673_s21  ;;  %p2676_p10 = scmp.lt.u32.totalorder %s3223_s7, %s4013_s3 }
  0x59   : > { %p2677_p7 = scmp.lt.u32.totalorder %s3231_s23, %s2673_s21  ;;  %p2679_p6 = scmp.lt.u32.totalorder %s2673_s21, %s3223_s7 }
  0x5b   : > { %p2678_p5 = por %p2677_p7, %p2676_p10 }
  0x5d   : > { %p2680_p8 = por %p2679_p6, %p2678_p5 }
  0x5f   : > { %p2681_p11 = pnand %p2680_p8, %p2674_p9 }
  0x61   : > { %2684 = shalt.err (!%p2681_p11)  }
  0x62   : > { %s2685_s5 = scalar_lea.vmem %s369_s18, 256  ;;  %p2690_p1 = scmp.lt.s32.totalorder %s369_s18, %s3225_s8 }
  0x63   : > { %p2686_p13 = scmp.ne.s32.totalorder %s369_s18, %s2685_s5  ;;  %p2691_p2 = scmp.lt.s32.totalorder %s3240_s30, %s2685_s5 }
  0x65   : > { %p2692_p3 = por %p2691_p2, %p2690_p1 }
  0x67   : > { %p2693_p12 = pnand %p2692_p3, %p2686_p13 }
  0x69   : > { %2696 = shalt.err (!%p2693_p12)  }
  0x6a   : > { %371 = dma.hbm_to_vmem [thread:$0]  %s3223_s7, 256, %s369_s18, [#allocation3] }
  0x6b   : > { %s1945_s9 = scalar_lea.vmem %s3067_s6, 32  ;;  %s2443_s29 = sadd.s32 768, %s3202_s11 }
  0x6c   : > { %s387_s12 = sshll.u32 %s1945_s9, 4  ;;  %s3268_s21 = scalar_lea.hbm %s4013_s3, %s2443_s29  ;;  %s388_s12 = int_to_ptr.vmem [resolvable:$true] %s387_s12 }
  0x6d   : > { %s1953_s24 = scalar_lea.vmem %s3067_s6, 48  ;;  %s2697_s25 = scalar_lea.hbm %s3250_s15, 256 }
  0x6e   : > { %p2698_p0 = scmp.ne.s32.totalorder %s3250_s15, %s2697_s25  ;;  %p2700_p4 = scmp.lt.u32.totalorder %s3250_s15, %s4013_s3 }
  0x6f   : > { %p2701_p9 = scmp.lt.u32.totalorder %s3231_s23, %s2697_s25  ;;  %p2703_p7 = scmp.lt.u32.totalorder %s2697_s25, %s3250_s15 }
  0x71   : > { %p2702_p10 = por %p2701_p9, %p2700_p4 }
  0x73   : > { %p2704_p5 = por %p2703_p7, %p2702_p10 }
  0x75   : > { %p2705_p6 = pnand %p2704_p5, %p2698_p0 }
  0x77   : > { %2708 = shalt.err (!%p2705_p6)  }
  0x78   : > { %s2709_s7 = scalar_lea.vmem %s388_s12, 256  ;;  %p2714_p11 = scmp.lt.s32.totalorder %s388_s12, %s3225_s8 }
  0x79   : > { %p2710_p8 = scmp.ne.s32.totalorder %s388_s12, %s2709_s7  ;;  %p2715_p13 = scmp.lt.s32.totalorder %s3240_s30, %s2709_s7 }
  0x7b   : > { %p2716_p1 = por %p2715_p13, %p2714_p11 }
  0x7d   : > { %p2717_p2 = pnand %p2716_p1, %p2710_p8 }
  0x7f   : > { %2720 = shalt.err (!%p2717_p2)  }
  0x80   : > { %390 = dma.hbm_to_vmem [thread:$0]  %s3250_s15, 256, %s388_s12, [#allocation3] }
  0x81   : > { %s406_s1 = sshll.u32 %s1953_s24, 4  ;;  %s2445_s18 = sadd.s32 1024, %s3202_s11  ;;  %s407_s1 = int_to_ptr.vmem [resolvable:$true] %s406_s1 }
  0x82   : > { %s3286_s13 = scalar_lea.hbm %s4013_s3, %s2445_s18  ;;  %s2721_s10 = scalar_lea.hbm %s3268_s21, 256 }
  0x83   : > { %p2722_p3 = scmp.ne.s32.totalorder %s3268_s21, %s2721_s10  ;;  %p2724_p12 = scmp.lt.u32.totalorder %s3268_s21, %s4013_s3 }
  0x84   : > { %p2725_p0 = scmp.lt.u32.totalorder %s3231_s23, %s2721_s10  ;;  %p2727_p9 = scmp.lt.u32.totalorder %s2721_s10, %s3268_s21 }
  0x86   : > { %p2726_p4 = por %p2725_p0, %p2724_p12 }
  0x88   : > { %p2728_p10 = por %p2727_p9, %p2726_p4 }
  0x8a   : > { %p2729_p7 = pnand %p2728_p10, %p2722_p3 }
  0x8c   : > { %2732 = shalt.err (!%p2729_p7)  }
  0x8d   : > { %s2733_s15 = scalar_lea.vmem %s407_s1, 256  ;;  %p2738_p6 = scmp.lt.s32.totalorder %s407_s1, %s3225_s8 }
  0x8e   : > { %p2734_p5 = scmp.ne.s32.totalorder %s407_s1, %s2733_s15  ;;  %p2739_p8 = scmp.lt.s32.totalorder %s3240_s30, %s2733_s15 }
  0x90   : > { %p2740_p11 = por %p2739_p8, %p2738_p6 }
  0x92   : > { %p2741_p13 = pnand %p2740_p11, %p2734_p5 }
  0x94   : > { %2744 = shalt.err (!%p2741_p13)  }
  0x95   : > { %409 = dma.hbm_to_vmem [thread:$0]  %s3268_s21, 256, %s407_s1, [#allocation3] }
  0x96   : > { %s1961_s12 = scalar_lea.vmem %s3067_s6, 64  ;;  %s2447_s24 = sadd.s32 1280, %s3202_s11 }
  0x97   : > { %s425_s7 = sshll.u32 %s1961_s12, 4  ;;  %s3304_s29 = scalar_lea.hbm %s4013_s3, %s2447_s24  ;;  %s426_s7 = int_to_ptr.vmem [resolvable:$true] %s425_s7 }
  0x98   : > { %s1969_s10 = scalar_lea.vmem %s3067_s6, 80  ;;  %s2745_s25 = scalar_lea.hbm %s3286_s13, 256 }
  0x99   : > { %p2746_p1 = scmp.ne.s32.totalorder %s3286_s13, %s2745_s25  ;;  %p2748_p2 = scmp.lt.u32.totalorder %s3286_s13, %s4013_s3 }
  0x9a   : > { %p2749_p3 = scmp.lt.u32.totalorder %s3231_s23, %s2745_s25  ;;  %p2751_p0 = scmp.lt.u32.totalorder %s2745_s25, %s3286_s13 }
  0x9c   : > { %p2750_p12 = por %p2749_p3, %p2748_p2 }
  0x9e   : > { %p2752_p4 = por %p2751_p0, %p2750_p12 }
  0xa0   : > { %p2753_p9 = pnand %p2752_p4, %p2746_p1 }
  0xa2   : > { %2756 = shalt.err (!%p2753_p9)  }
  0xa3   : > { %s2757_s21 = scalar_lea.vmem %s426_s7, 256  ;;  %p2762_p7 = scmp.lt.s32.totalorder %s426_s7, %s3225_s8 }
  0xa4   : > { %p2758_p10 = scmp.ne.s32.totalorder %s426_s7, %s2757_s21  ;;  %p2763_p5 = scmp.lt.s32.totalorder %s3240_s30, %s2757_s21 }
  0xa6   : > { %p2764_p6 = por %p2763_p5, %p2762_p7 }
  0xa8   : > { %p2765_p8 = pnand %p2764_p6, %p2758_p10 }
  0xaa   : > { %2768 = shalt.err (!%p2765_p8)  }
  0xab   : > { %428 = dma.hbm_to_vmem [thread:$0]  %s3286_s13, 256, %s426_s7, [#allocation3] }
  0xac   : > { %s444_s1 = sshll.u32 %s1969_s10, 4  ;;  %s2449_s12 = sadd.s32 1536, %s3202_s11  ;;  %s445_s1 = int_to_ptr.vmem [resolvable:$true] %s444_s1 }
  0xad   : > { %s3322_s9 = scalar_lea.hbm %s4013_s3, %s2449_s12  ;;  %s2769_s25 = scalar_lea.hbm %s3304_s29, 256 }
  0xae   : > { %p2770_p11 = scmp.ne.s32.totalorder %s3304_s29, %s2769_s25  ;;  %p2772_p13 = scmp.lt.u32.totalorder %s3304_s29, %s4013_s3 }
  0xaf   : > { %p2773_p1 = scmp.lt.u32.totalorder %s3231_s23, %s2769_s25  ;;  %p2775_p3 = scmp.lt.u32.totalorder %s2769_s25, %s3304_s29 }
  0xb1   : > { %p2774_p2 = por %p2773_p1, %p2772_p13 }
  0xb3   : > { %p2776_p12 = por %p2775_p3, %p2774_p2 }
  0xb5   : > { %p2777_p0 = pnand %p2776_p12, %p2770_p11 }
  0xb7   : > { %2780 = shalt.err (!%p2777_p0)  }
  0xb8   : > { %s2781_s13 = scalar_lea.vmem %s445_s1, 256  ;;  %p2786_p9 = scmp.lt.s32.totalorder %s445_s1, %s3225_s8 }
  0xb9   : > { %p2782_p4 = scmp.ne.s32.totalorder %s445_s1, %s2781_s13  ;;  %p2787_p10 = scmp.lt.s32.totalorder %s3240_s30, %s2781_s13 }
  0xbb   : > { %p2788_p7 = por %p2787_p10, %p2786_p9 }
  0xbd   : > { %p2789_p5 = pnand %p2788_p7, %p2782_p4 }
  0xbf   : > { %2792 = shalt.err (!%p2789_p5)  }
  0xc0   : > { %447 = dma.hbm_to_vmem [thread:$0]  %s3304_s29, 256, %s445_s1, [#allocation3] }
  0xc1   : > { %s1977_s7 = scalar_lea.vmem %s3067_s6, 96  ;;  %s2451_s10 = sadd.s32 1792, %s3202_s11 }
  0xc2   : > { %s463_s21 = sshll.u32 %s1977_s7, 4  ;;  %s3340_s18 = scalar_lea.hbm %s4013_s3, %s2451_s10  ;;  %s464_s21 = int_to_ptr.vmem [resolvable:$true] %s463_s21 }
  0xc3   : > { %s1985_s25 = scalar_lea.vmem %s3067_s6, 112  ;;  %s2793_s5 = scalar_lea.hbm %s3322_s9, 256 }
  0xc4   : > { %p2794_p6 = scmp.ne.s32.totalorder %s3322_s9, %s2793_s5  ;;  %p2796_p8 = scmp.lt.u32.totalorder %s3322_s9, %s4013_s3 }
  0xc5   : > { %p2797_p11 = scmp.lt.u32.totalorder %s3231_s23, %s2793_s5  ;;  %p2799_p1 = scmp.lt.u32.totalorder %s2793_s5, %s3322_s9 }
  0xc7   : > { %p2798_p13 = por %p2797_p11, %p2796_p8 }
  0xc9   : > { %p2800_p2 = por %p2799_p1, %p2798_p13 }
  0xcb   : > { %p2801_p3 = pnand %p2800_p2, %p2794_p6 }
  0xcd   : > { %2804 = shalt.err (!%p2801_p3)  }
  0xce   : > { %s2805_s29 = scalar_lea.vmem %s464_s21, 256  ;;  %p2810_p0 = scmp.lt.s32.totalorder %s464_s21, %s3225_s8 }
  0xcf   : > { %p2806_p12 = scmp.ne.s32.totalorder %s464_s21, %s2805_s29  ;;  %p2811_p4 = scmp.lt.s32.totalorder %s3240_s30, %s2805_s29 }
  0xd1   : > { %p2812_p9 = por %p2811_p4, %p2810_p0 }
  0xd3   : > { %p2813_p10 = pnand %p2812_p9, %p2806_p12 }
  0xd5   : > { %2816 = shalt.err (!%p2813_p10)  }
  0xd6   : > { %466 = dma.hbm_to_vmem [thread:$0]  %s3322_s9, 256, %s464_s21, [#allocation3] }
  0xd7   : > { %s482_s1 = sshll.u32 %s1985_s25, 4  ;;  %s2453_s7 = sadd.s32 2048, %s3202_s11  ;;  %s483_s1 = int_to_ptr.vmem [resolvable:$true] %s482_s1 }
  0xd8   : > { %s3358_s24 = scalar_lea.hbm %s4013_s3, %s2453_s7  ;;  %s2817_s5 = scalar_lea.hbm %s3340_s18, 256 }
  0xd9   : > { %p2818_p7 = scmp.ne.s32.totalorder %s3340_s18, %s2817_s5  ;;  %p2820_p5 = scmp.lt.u32.totalorder %s3340_s18, %s4013_s3 }
  0xda   : > { %p2821_p6 = scmp.lt.u32.totalorder %s3231_s23, %s2817_s5  ;;  %p2823_p11 = scmp.lt.u32.totalorder %s2817_s5, %s3340_s18 }
  0xdc   : > { %p2822_p8 = por %p2821_p6, %p2820_p5 }
  0xde   : > { %p2824_p13 = por %p2823_p11, %p2822_p8 }
  0xe0   : > { %p2825_p1 = pnand %p2824_p13, %p2818_p7 }
  0xe2   : > { %2828 = shalt.err (!%p2825_p1)  }
  0xe3   : > { %s2829_s9 = scalar_lea.vmem %s483_s1, 256  ;;  %p2834_p3 = scmp.lt.s32.totalorder %s483_s1, %s3225_s8 }
  0xe4   : > { %p2830_p2 = scmp.ne.s32.totalorder %s483_s1, %s2829_s9  ;;  %p2835_p12 = scmp.lt.s32.totalorder %s3240_s30, %s2829_s9 }
  0xe6   : > { %p2836_p0 = por %p2835_p12, %p2834_p3 }
  0xe8   : > { %p2837_p4 = pnand %p2836_p0, %p2830_p2 }
  0xea   : > { %2840 = shalt.err (!%p2837_p4)  }
  0xeb   : > { %485 = dma.hbm_to_vmem [thread:$0]  %s3340_s18, 256, %s483_s1, [#allocation3] }
  0xec   : > { %s1993_s21 = scalar_lea.vmem %s3067_s6, 128  ;;  %s2455_s25 = sadd.s32 2304, %s3202_s11 }
  0xed   : > { %s501_s29 = sshll.u32 %s1993_s21, 4  ;;  %s3376_s12 = scalar_lea.hbm %s4013_s3, %s2455_s25  ;;  %s502_s29 = int_to_ptr.vmem [resolvable:$true] %s501_s29 }
  0xee   : > { %s2001_s5 = scalar_lea.vmem %s3067_s6, 144  ;;  %s2841_s15 = scalar_lea.hbm %s3358_s24, 256 }
  0xef   : > { %p2842_p9 = scmp.ne.s32.totalorder %s3358_s24, %s2841_s15  ;;  %p2844_p10 = scmp.lt.u32.totalorder %s3358_s24, %s4013_s3 }
  0xf0   : > { %p2845_p7 = scmp.lt.u32.totalorder %s3231_s23, %s2841_s15  ;;  %p2847_p6 = scmp.lt.u32.totalorder %s2841_s15, %s3358_s24 }
  0xf2   : > { %p2846_p5 = por %p2845_p7, %p2844_p10 }
  0xf4   : > { %p2848_p8 = por %p2847_p6, %p2846_p5 }
  0xf6   : > { %p2849_p11 = pnand %p2848_p8, %p2842_p9 }
  0xf8   : > { %2852 = shalt.err (!%p2849_p11)  }
  0xf9   : > { %s2853_s18 = scalar_lea.vmem %s502_s29, 256  ;;  %p2858_p1 = scmp.lt.s32.totalorder %s502_s29, %s3225_s8 }
  0xfa   : > { %p2854_p13 = scmp.ne.s32.totalorder %s502_s29, %s2853_s18  ;;  %p2859_p2 = scmp.lt.s32.totalorder %s3240_s30, %s2853_s18 }
  0xfc   : > { %p2860_p3 = por %p2859_p2, %p2858_p1 }
  0xfe   : > { %p2861_p12 = pnand %p2860_p3, %p2854_p13 }
 0x100   : > { %2864 = shalt.err (!%p2861_p12)  }
 0x101   : > { %504 = dma.hbm_to_vmem [thread:$0]  %s3358_s24, 256, %s502_s29, [#allocation3] }
 0x102   : > { %s520_s1 = sshll.u32 %s2001_s5, 4  ;;  %s2457_s21 = sadd.s32 2560, %s3202_s11  ;;  %s521_s1 = int_to_ptr.vmem [resolvable:$true] %s520_s1 }
 0x103   : > { %s3394_s10 = scalar_lea.hbm %s4013_s3, %s2457_s21  ;;  %s2865_s15 = scalar_lea.hbm %s3376_s12, 256 }
 0x104   : > { %p2866_p0 = scmp.ne.s32.totalorder %s3376_s12, %s2865_s15  ;;  %p2868_p4 = scmp.lt.u32.totalorder %s3376_s12, %s4013_s3 }
 0x105   : > { %p2869_p9 = scmp.lt.u32.totalorder %s3231_s23, %s2865_s15  ;;  %p2871_p7 = scmp.lt.u32.totalorder %s2865_s15, %s3376_s12 }
 0x107   : > { %p2870_p10 = por %p2869_p9, %p2868_p4 }
 0x109   : > { %p2872_p5 = por %p2871_p7, %p2870_p10 }
 0x10b   : > { %p2873_p6 = pnand %p2872_p5, %p2866_p0 }
 0x10d   : > { %2876 = shalt.err (!%p2873_p6)  }
 0x10e   : > { %s2877_s24 = scalar_lea.vmem %s521_s1, 256  ;;  %p2882_p11 = scmp.lt.s32.totalorder %s521_s1, %s3225_s8 }
 0x10f   : > { %p2878_p8 = scmp.ne.s32.totalorder %s521_s1, %s2877_s24  ;;  %p2883_p13 = scmp.lt.s32.totalorder %s3240_s30, %s2877_s24 }
 0x111   : > { %p2884_p1 = por %p2883_p13, %p2882_p11 }
 0x113   : > { %p2885_p2 = pnand %p2884_p1, %p2878_p8 }
 0x115   : > { %2888 = shalt.err (!%p2885_p2)  }
 0x116   : > { %523 = dma.hbm_to_vmem [thread:$0]  %s3376_s12, 256, %s521_s1, [#allocation3] }
 0x117   : > { %s2009_s29 = scalar_lea.vmem %s3067_s6, 160  ;;  %s2459_s5 = sadd.s32 2816, %s3202_s11 }
 0x118   : > { %s539_s18 = sshll.u32 %s2009_s29, 4  ;;  %s3412_s7 = scalar_lea.hbm %s4013_s3, %s2459_s5  ;;  %s540_s18 = int_to_ptr.vmem [resolvable:$true] %s539_s18 }
 0x119   : > { %s2017_s15 = scalar_lea.vmem %s3067_s6, 176  ;;  %s2889_s13 = scalar_lea.hbm %s3394_s10, 256 }
 0x11a   : > { %p2890_p3 = scmp.ne.s32.totalorder %s3394_s10, %s2889_s13  ;;  %p2892_p12 = scmp.lt.u32.totalorder %s3394_s10, %s4013_s3 }
 0x11b   : > { %p2893_p0 = scmp.lt.u32.totalorder %s3231_s23, %s2889_s13  ;;  %p2895_p9 = scmp.lt.u32.totalorder %s2889_s13, %s3394_s10 }
 0x11d   : > { %p2894_p4 = por %p2893_p0, %p2892_p12 }
 0x11f   : > { %p2896_p10 = por %p2895_p9, %p2894_p4 }
 0x121   : > { %p2897_p7 = pnand %p2896_p10, %p2890_p3 }
 0x123   : > { %2900 = shalt.err (!%p2897_p7)  }
 0x124   : > { %s2901_s12 = scalar_lea.vmem %s540_s18, 256  ;;  %p2906_p6 = scmp.lt.s32.totalorder %s540_s18, %s3225_s8 }
 0x125   : > { %p2902_p5 = scmp.ne.s32.totalorder %s540_s18, %s2901_s12  ;;  %p2907_p8 = scmp.lt.s32.totalorder %s3240_s30, %s2901_s12 }
 0x127   : > { %p2908_p11 = por %p2907_p8, %p2906_p6 }
 0x129   : > { %p2909_p13 = pnand %p2908_p11, %p2902_p5 }
 0x12b   : > { %2912 = shalt.err (!%p2909_p13)  }
 0x12c   : > { %542 = dma.hbm_to_vmem [thread:$0]  %s3394_s10, 256, %s540_s18, [#allocation3] }
 0x12d   : > { %s558_s1 = sshll.u32 %s2017_s15, 4  ;;  %s2461_s29 = sadd.s32 3072, %s3202_s11  ;;  %s559_s1 = int_to_ptr.vmem [resolvable:$true] %s558_s1 }
 0x12e   : > { %s3430_s25 = scalar_lea.hbm %s4013_s3, %s2461_s29  ;;  %s2913_s13 = scalar_lea.hbm %s3412_s7, 256 }
 0x12f   : > { %p2914_p1 = scmp.ne.s32.totalorder %s3412_s7, %s2913_s13  ;;  %p2916_p2 = scmp.lt.u32.totalorder %s3412_s7, %s4013_s3 }
 0x130   : > { %p2917_p3 = scmp.lt.u32.totalorder %s3231_s23, %s2913_s13  ;;  %p2919_p0 = scmp.lt.u32.totalorder %s2913_s13, %s3412_s7 }
 0x132   : > { %p2918_p12 = por %p2917_p3, %p2916_p2 }
 0x134   : > { %p2920_p4 = por %p2919_p0, %p2918_p12 }
 0x136   : > { %p2921_p9 = pnand %p2920_p4, %p2914_p1 }
 0x138   : > { %2924 = shalt.err (!%p2921_p9)  }
 0x139   : > { %s2925_s10 = scalar_lea.vmem %s559_s1, 256  ;;  %p2930_p7 = scmp.lt.s32.totalorder %s559_s1, %s3225_s8 }
 0x13a   : > { %p2926_p10 = scmp.ne.s32.totalorder %s559_s1, %s2925_s10  ;;  %p2931_p5 = scmp.lt.s32.totalorder %s3240_s30, %s2925_s10 }
 0x13c   : > { %p2932_p6 = por %p2931_p5, %p2930_p7 }
 0x13e   : > { %p2933_p8 = pnand %p2932_p6, %p2926_p10 }
 0x140   : > { %2936 = shalt.err (!%p2933_p8)  }
 0x141   : > { %561 = dma.hbm_to_vmem [thread:$0]  %s3412_s7, 256, %s559_s1, [#allocation3] }
 0x142   : > { %s2025_s18 = scalar_lea.vmem %s3067_s6, 192  ;;  %s2463_s15 = sadd.s32 3328, %s3202_s11 }
 0x143   : > { %s577_s12 = sshll.u32 %s2025_s18, 4  ;;  %s3448_s21 = scalar_lea.hbm %s4013_s3, %s2463_s15  ;;  %s578_s12 = int_to_ptr.vmem [resolvable:$true] %s577_s12 }
 0x144   : > { %s2033_s13 = scalar_lea.vmem %s3067_s6, 208  ;;  %s2937_s9 = scalar_lea.hbm %s3430_s25, 256 }
 0x145   : > { %p2938_p11 = scmp.ne.s32.totalorder %s3430_s25, %s2937_s9  ;;  %p2940_p13 = scmp.lt.u32.totalorder %s3430_s25, %s4013_s3 }
 0x146   : > { %p2941_p1 = scmp.lt.u32.totalorder %s3231_s23, %s2937_s9  ;;  %p2943_p3 = scmp.lt.u32.totalorder %s2937_s9, %s3430_s25 }
 0x148   : > { %p2942_p2 = por %p2941_p1, %p2940_p13 }
 0x14a   : > { %p2944_p12 = por %p2943_p3, %p2942_p2 }
 0x14c   : > { %p2945_p0 = pnand %p2944_p12, %p2938_p11 }
 0x14e   : > { %2948 = shalt.err (!%p2945_p0)  }
 0x14f   : > { %s2949_s7 = scalar_lea.vmem %s578_s12, 256  ;;  %p2954_p9 = scmp.lt.s32.totalorder %s578_s12, %s3225_s8 }
 0x150   : > { %p2950_p4 = scmp.ne.s32.totalorder %s578_s12, %s2949_s7  ;;  %p2955_p10 = scmp.lt.s32.totalorder %s3240_s30, %s2949_s7 }
 0x152   : > { %p2956_p7 = por %p2955_p10, %p2954_p9 }
 0x154   : > { %p2957_p5 = pnand %p2956_p7, %p2950_p4 }
 0x156   : > { %2960 = shalt.err (!%p2957_p5)  }
 0x157   : > { %580 = dma.hbm_to_vmem [thread:$0]  %s3430_s25, 256, %s578_s12, [#allocation3] }
 0x158   : > { %s596_s1 = sshll.u32 %s2033_s13, 4  ;;  %s2465_s18 = sadd.s32 3584, %s3202_s11  ;;  %s597_s1 = int_to_ptr.vmem [resolvable:$true] %s596_s1 }
 0x159   : > { %s2961_s15 = scalar_lea.hbm %s3448_s21, 256  ;;  %p2964_p8 = scmp.lt.u32.totalorder %s3448_s21, %s4013_s3 }
 0x15a   : > { %p2962_p6 = scmp.ne.s32.totalorder %s3448_s21, %s2961_s15  ;;  %p2965_p11 = scmp.lt.u32.totalorder %s3231_s23, %s2961_s15 }
 0x15b   : > { %p2967_p1 = scmp.lt.u32.totalorder %s2961_s15, %s3448_s21 }
 0x15c   : > { %p2966_p13 = por %p2965_p11, %p2964_p8 }
 0x15e   : > { %p2968_p2 = por %p2967_p1, %p2966_p13 }
 0x160   : > { %p2969_p3 = pnand %p2968_p2, %p2962_p6 }
 0x162   : > { %2972 = shalt.err (!%p2969_p3)  }
 0x163   : > { %s2973_s9 = scalar_lea.vmem %s597_s1, 256  ;;  %p2978_p0 = scmp.lt.s32.totalorder %s597_s1, %s3225_s8 }
 0x164   : > { %p2974_p12 = scmp.ne.s32.totalorder %s597_s1, %s2973_s9  ;;  %p2979_p4 = scmp.lt.s32.totalorder %s3240_s30, %s2973_s9 }
 0x166   : > { %p2980_p9 = por %p2979_p4, %p2978_p0 }
 0x168   : > { %p2981_p10 = pnand %p2980_p9, %p2974_p12 }
 0x16a   : > { %2984 = shalt.err (!%p2981_p10)  }
 0x16b   : > { %599 = dma.hbm_to_vmem [thread:$0]  %s3448_s21, 256, %s597_s1, [#allocation3] }
 0x16c   : > { %s604_s12 = scalar_lea.hbm %s4013_s3, %s2465_s18  ;;  %s2041_s13 = scalar_lea.vmem %s3067_s6, 224 }
 0x16d   : > { %s615_s24 = sshll.u32 %s2041_s13, 4  ;;  %s2985_s10 = scalar_lea.hbm %s604_s12, 256  ;;  %s616_s24 = int_to_ptr.vmem [resolvable:$true] %s615_s24 }
 0x16e   : > { %p2986_p7 = scmp.ne.s32.totalorder %s604_s12, %s2985_s10  ;;  %p2988_p5 = scmp.lt.u32.totalorder %s604_s12, %s4013_s3 }
 0x16f   : > { %p2989_p6 = scmp.lt.u32.totalorder %s3231_s23, %s2985_s10  ;;  %p2991_p11 = scmp.lt.u32.totalorder %s2985_s10, %s604_s12 }
 0x171   : > { %p2990_p8 = por %p2989_p6, %p2988_p5 }
 0x173   : > { %p2992_p13 = por %p2991_p11, %p2990_p8 }
 0x175   : > { %p2993_p1 = pnand %p2992_p13, %p2986_p7 }
 0x177   : > { %2996 = shalt.err (!%p2993_p1)  }
 0x178   : > { %s2997_s21 = scalar_lea.vmem %s616_s24, 256  ;;  %p3002_p3 = scmp.lt.s32.totalorder %s616_s24, %s3225_s8 }
 0x179   : > { %p2998_p2 = scmp.ne.s32.totalorder %s616_s24, %s2997_s21  ;;  %p3003_p12 = scmp.lt.s32.totalorder %s3240_s30, %s2997_s21 }
 0x17b   : > { %p3004_p0 = por %p3003_p12, %p3002_p3 }
 0x17d   : > { %p3005_p4 = pnand %p3004_p0, %p2998_p2 }
 0x17f   : > { %3008 = shalt.err (!%p3005_p4)  }
 0x180   : > { %618 = dma.hbm_to_vmem [thread:$0]  %s604_s12, 256, %s616_s24, [#allocation3] }
 0x181   : > { %3037 = dma.done.wait [#allocation3], 3840 }
 0x182   : > { %3038 = vsyncadd [#allocation3], 4294963456  ;;  %v3068_v0 = vmov 0   ;;  %v1058_v1 = vld [vmem:[%s3212_s28 + $0x8] sm:$0x1]  ;;  %v2341_v25 = vld [vmem:[#allocation2 + $0x10] sm:$0xff]  ;;  %v1121_v45 = vlaneseq }
 0x183   : > { %2570 = vset.pattern.permute.xlu1 %v3068_v0  ;;  %2569 = vset.pattern.permute.xlu0 %v3068_v0  ;;  %v1057_v2 = vld [vmem:[%s3212_s28 + $0x4] sm:$0x1]  ;;  %v1066_v3 = vld [vmem:[%s3212_s28 + $0x9] sm:$0x1]  ;;  %v1065_v4 = vld [vmem:[%s3212_s28 + $0x5] sm:$0x1] }
 0x184   : > { %1253 = vperm.xlu1 %2570, %v1058_v1   ;;  %1249 = vperm.xlu0 %2569, %v1057_v2   ;;  %v1059_v5 = vld [vmem:[%s3212_s28 + $0xc] sm:$0x1]  ;;  %v1056_v6 = vld [vmem:[%s3212_s28] sm:$0x1]  ;;  %v1067_v7 = vld [vmem:[%s3212_s28 + $0xd] sm:$0x1] }
 0x185   : > { %v1064_v8 = vld [vmem:[%s3212_s28 + $0x1] sm:$0x1]  ;;  %v1068_v9 = vld [vmem:[%s3212_s28 + $0x11] sm:$0x1]  ;;  %v1060_v10 = vld [vmem:[%s3212_s28 + $0x10] sm:$0x1] }
 0x186   : > { %v1069_v11 = vld [vmem:[%s3212_s28 + $0x15] sm:$0x1]  ;;  %v1061_v12 = vld [vmem:[%s3212_s28 + $0x14] sm:$0x1]  ;;  %v1070_v13 = vld [vmem:[%s3212_s28 + $0x19] sm:$0x1] }
 0x187   : > { %v1062_v14 = vld [vmem:[%s3212_s28 + $0x18] sm:$0x1]  ;;  %v1071_v15 = vld [vmem:[%s3212_s28 + $0x1d] sm:$0x1]  ;;  %v1063_v16 = vld [vmem:[%s3212_s28 + $0x1c] sm:$0x1] }
 0x188   : > { %1313 = vperm.xlu1 %2570, %v1066_v3   ;;  %1309 = vperm.xlu0 %2569, %v1065_v4   ;;  %v1074_v17 = vld [vmem:[%s3212_s28 + $0xa] sm:$0x1]  ;;  %v1073_v18 = vld [vmem:[%s3212_s28 + $0x6] sm:$0x1]  ;;  %v1075_v19 = vld [vmem:[%s3212_s28 + $0xe] sm:$0x1] }
 0x189   : > { %v1072_v20 = vld [vmem:[%s3212_s28 + $0x2] sm:$0x1]  ;;  %v1077_v21 = vld [vmem:[%s3212_s28 + $0x16] sm:$0x1]  ;;  %v1076_v22 = vld [vmem:[%s3212_s28 + $0x12] sm:$0x1] }
 0x18a   : > { %v1079_v23 = vld [vmem:[%s3212_s28 + $0x1e] sm:$0x1]  ;;  %v1078_v24 = vld [vmem:[%s3212_s28 + $0x1a] sm:$0x1]  ;;  %v2349_v27 = vld [vmem:[#allocation2 + $0x30] sm:$0xff]  ;;  %v1122_v58 = vshrl.u32 %v1121_v45, 7 }
 0x18b   : > { %v2342_v26 = vld [vmem:[#allocation2 + $0x18] sm:$0xff]  ;;  %v2343_v28 = vmul.f32 -1.442695, %v2341_v25  ;;  %v1147_v31 = vld [vmem:[#allocation2] sm:$0xff]  ;;  %v2351_v32 = vmul.f32 -1.442695, %v2349_v27 }
 0x18c   : > { %1257 = vperm.xlu1 %2570, %v1059_v5   ;;  %1245 = vperm.xlu0 %2569, %v1056_v6   ;;  %v2350_v29 = vld [vmem:[#allocation2 + $0x38] sm:$0xff]  ;;  %v2344_v30 = vmul.f32 -1.442695, %v2342_v26  ;;  %v1148_v33 = vld [vmem:[#allocation2 + $0x8] sm:$0xff]  ;;  %v2345_v35 = vld [vmem:[#allocation2 + $0x20] sm:$0xff]  ;;  %vm1276_vm14 = vcmask 1041409  }
 0x18d   : > { %v2352_v34 = vmul.f32 -1.442695, %v2350_v29  ;;  %2571 = vpow2.f32 %v2343_v28  ;;  %v2339_v36 = vmul.f32 -1.442695, %v1147_v31  ;;  %v2340_v37 = vmul.f32 -1.442695, %v1148_v33 }
 0x18e   : > { %2573 = vpow2.f32 %v2344_v30  ;;  %v2346_v38 = vld [vmem:[#allocation2 + $0x28] sm:$0xff]  ;;  %v2347_v39 = vmul.f32 -1.442695, %v2345_v35  ;;  %v3509_v51 = vld [vmem:[%s3193_s14 + $0x30] sm:$0xff]  ;;  %v2370_v56 = vld [vmem:[#allocation2 + $0x58] sm:$0xff] }
 0x18f   : > { %2575 = vpow2.f32 %v2351_v32  ;;  %v2348_v40 = vmul.f32 -1.442695, %v2346_v38  ;;  %v2369_v52 = vld [vmem:[#allocation2 + $0x50] sm:$0xff]  ;;  %v2372_v57 = vld [vmem:[%s3193_s14 + $0x58] sm:$0xff]  ;;  %v2375_v61 = vld [vmem:[#allocation2 + $0x60] sm:$0xff]  ;;  %v1387_v63 = vmul.f32 0.5, %v3509_v51 }
 0x190   : > { %1317 = vperm.xlu1 %2570, %v1067_v7   ;;  %1305 = vperm.xlu0 %2569, %v1064_v8   ;;  %2577 = vpow2.f32 %v2352_v34  ;;  %v2371_v53 = vld [vmem:[%s3193_s14 + $0x50] sm:$0xff]  ;;  %v3514_v59 = vld [vmem:[%s3193_s14 + $0x38] sm:$0xff]  ;;  %v2377_v62 = vld [vmem:[%s3193_s14 + $0x60] sm:$0xff]  ;;  %v1513_v7 = vsub.f32 %v2370_v56, %v2372_v57 }
 0x191   : > { %2579 = vpow2.f32 %v2339_v36  ;;  %v1512_v1 = vsub.f32 %v2369_v52, %v2371_v53  ;;  %v2376_v2 = vld [vmem:[#allocation2 + $0x68] sm:$0xff]  ;;  %v2359_v5 = vld [vmem:[%s3193_s14 + $0x10] sm:$0xff]  ;;  %v1388_v8 = vmul.f32 0.5, %v3514_v59  ;;  %v3542_v33 = vld [vmem:[%s4010_s0 + $0x1] ss:$4 sm:$0x3] }
 0x192   : > { %2581 = vpow2.f32 %v2340_v37  ;;  %v2378_v3 = vld [vmem:[%s3193_s14 + $0x68] sm:$0xff]  ;;  %v1519_v26 = vmul.f32 0.5, %v1513_v7  ;;  %v2389_v45 = vld [vmem:[%s3193_s14 + $0x80] sm:$0xff] }
 0x193   : > { %2583 = vpow2.f32 %v2347_v39  ;;  %v3553_v39 = vld [vmem:[%s4010_s0] ss:$4 sm:$0x3]  ;;  %v2388_v52 = vld [vmem:[#allocation2 + $0x88] sm:$0xff] }
 0x194   : > { %1321 = vperm.xlu1 %2570, %v1068_v9   ;;  %1261 = vperm.xlu0 %2569, %v1060_v10   ;;  %2585 = vpow2.f32 %v2348_v40  ;;  %v1533_v9 = vsub.f32 %v2375_v61, %v2377_v62  ;;  %v3521_v10 = vsub.s32 0, %v1122_v58  ;;  %v2390_v53 = vld [vmem:[%s3193_s14 + $0x88] sm:$0xff] }
 0x196   : > { %v1535_v27 = vand.u32 2147483647, %v1533_v9  ;;  %v1539_v28 = vmul.f32 0.5, %v1533_v9 }
 0x197   : > { %v2572_v41 = vpop.eup %2571 }
 0x198   : > { %1325 = vperm.xlu1 %2570, %v1069_v11   ;;  %1265 = vperm.xlu0 %2569, %v1061_v12   ;;  %v2574_v42 = vpop.eup %2573  ;;  %v1169_v46 = vadd.f32 1.0, %v2572_v41  ;;  %v3523_v11 = vsub.s32 1, %v1122_v58  ;;  %v2360_v12 = vld [vmem:[%s3193_s14 + $0x18] sm:$0xff]  ;;  %vm3566_vm2 = vcmp.lt.f32.partialorder %v1535_v27, 1.0 }
 0x199   : > { %v2576_v43 = vpop.eup %2575  ;;  %v1170_v48 = vadd.f32 1.0, %v2574_v42  ;;  %v3535_v25 = vsub.f32 %v2360_v12, %v1388_v8  ;;  %v3537_v29 = vadd.f32 %v2360_v12, %v1388_v8  ;;  %v2393_v12 = vld [vmem:[#allocation2 + $0x90] sm:$0xff] }
 0x19a   : > { %v2578_v44 = vpop.eup %2577  ;;  %v1197_v50 = vadd.f32 1.0, %v2576_v43  ;;  %2587 = vrcp.f32 %v1169_v46 }
 0x19b   : > { %v2580_v47 = vpop.eup %2579  ;;  %v1198_v55 = vadd.f32 1.0, %v2578_v44  ;;  %2589 = vrcp.f32 %v1170_v48  ;;  %v2387_v44 = vld [vmem:[#allocation2 + $0x80] sm:$0xff] }
 0x19c   : > { %1329 = vperm.xlu1 %2570, %v1070_v13   ;;  %1269 = vperm.xlu0 %2569, %v1062_v14   ;;  %v2582_v49 = vpop.eup %2581  ;;  %v1155_v60 = vadd.f32 1.0, %v2580_v47  ;;  %2591 = vrcp.f32 %v1197_v50  ;;  %v2338_v13 = vld [vmem:[%s4010_s0 + $0x2] ss:$4 sm:$0x3]  ;;  %v1534_v14 = vsub.f32 %v2376_v2, %v2378_v3  ;;  %v1521_v47 = vmul.f32 %v1519_v26, %v1513_v7 }
 0x19d   : > { %v2584_v54 = vpop.eup %2583  ;;  %v1156_v0 = vadd.f32 1.0, %v2582_v49  ;;  %2593 = vrcp.f32 %v1198_v55  ;;  %v3545_v34 = vrot.slane %v2338_v13, %v3521_v10  ;;  %v3548_v35 = vrot.slane %v2338_v13, %v3523_v11  ;;  %v2395_v13 = vld [vmem:[%s3193_s14 + $0x90] sm:$0xff] }
 0x19e   : > { %v2586_v4 = vpop.eup %2585  ;;  %v1183_v6 = vadd.f32 1.0, %v2584_v54  ;;  %2595 = vrcp.f32 %v1155_v60  ;;  %v1536_v30 = vand.u32 2147483647, %v1534_v14  ;;  %v1540_v31 = vmul.f32 0.5, %v1534_v14 }
 0x19f   : > { %2597 = vrcp.f32 %v1156_v0  ;;  %v1541_v49 = vmul.f32 %v1539_v28, %v1533_v9  ;;  %v2379_v50 = vadd.f32 -0.5, %v1535_v27  ;;  %v1575_v0 = vsub.f32 %v2387_v44, %v2389_v45 }
 0x1a0   : > { %1333 = vperm.xlu1 %2570, %v1071_v15   ;;  %1273 = vperm.xlu0 %2569, %v1063_v16   ;;  %v3529_v15 = vsub.f32 %v2359_v5, %v1387_v63  ;;  %v1184_v16 = vadd.f32 1.0, %v2586_v4  ;;  %2599 = vrcp.f32 %v1183_v6  ;;  %v1542_v55 = vmul.f32 %v1540_v31, %v1534_v14  ;;  %v2408_v31 = vld [vmem:[%s3193_s14 + $0xb8] sm:$0xff] }
 0x1a1   : > { %v2380_v56 = vadd.f32 -0.5, %v1536_v30  ;;  %vm3575_vm3 = vcmp.lt.f32.partialorder %v1536_v30, 1.0  ;;  %v1230_v2 = vrot.slane %v3542_v33, %v3521_v10  ;;  %v1576_v4 = vsub.f32 %v2388_v52, %v2390_v53 }
 0x1a2   : > { %2601 = vrcp.f32 %v1184_v16  ;;  %v1545_v9 = vsel %vm3566_vm2, %v1541_v49, %v2379_v50  ;;  %v2361_v16 = vld [vmem:[%s3193_s14 + $0x20] sm:$0xff]  ;;  %v1577_v28 = vand.u32 2147483647, %v1575_v0  ;;  %v1581_v30 = vmul.f32 0.5, %v1575_v0 }
 0x1a3   : > { %v1582_v40 = vmul.f32 0.5, %v1576_v4  ;;  %v1596_v41 = vsub.f32 %v2393_v12, %v2395_v13  ;;  %v2399_v49 = vld [vmem:[#allocation2 + $0xa0] sm:$0xff]  ;;  %vm1282_vm2 = vcmask 1043459  }
 0x1a4   : > { %1092 = vperm.xlu1 %2570, %v1074_v17   ;;  %1087 = vperm.xlu0 %2569, %v1073_v18   ;;  %v1518_v17 = vmul.f32 0.5, %v1512_v1  ;;  %v2381_v18 = vld [vmem:[#allocation2 + $0x70] sm:$0xff]  ;;  %v2588_v38 = vpop.eup %2587  ;;  %v2401_v50 = vld [vmem:[%s3193_s14 + $0xa0] sm:$0xff]  ;;  %vm3622_vm6 = vcmp.lt.f32.partialorder %v1577_v28, 1.0  ;;  %v1583_v53 = vmul.f32 %v1581_v30, %v1575_v0  ;;  %v3647_v30 = vld [vmem:[%s3193_s14 + $0x8] sm:$0xff] }
 0x1a5   : > { %v3564_v46 = vpop.eup %2589  ;;  %v1617_v12 = vsub.f32 %v2399_v49, %v2401_v50 }
 0x1a6   : > { %v1520_v36 = vmul.f32 %v1518_v17, %v1512_v1  ;;  %v3571_v54 = vpop.eup %2591  ;;  %v1546_v17 = vsel %vm3575_vm3, %v1542_v55, %v2380_v56  ;;  %v2391_v55 = vadd.f32 -0.5, %v1577_v28  ;;  %v2400_v56 = vld [vmem:[#allocation2 + $0xa8] sm:$0xff]  ;;  %v1223_v0 = vmul.f32 2.0, %v3564_v46  ;;  %v2407_v28 = vld [vmem:[%s3193_s14 + $0xb0] sm:$0xff] }
 0x1a7   : > { %v3573_v60 = vpop.eup %2593  ;;  %vm1285_vm3 = vcmask 1044484  }
 0x1a8   : > { %1097 = vperm.xlu1 %2570, %v1075_v19   ;;  %1082 = vperm.xlu0 %2569, %v1072_v20   ;;  %v2383_v19 = vld [vmem:[%s3193_s14 + $0x70] sm:$0xff]  ;;  %v3532_v20 = vadd.f32 %v2359_v5, %v1387_v63 }
 0x1a9   : > { %v1554_v32 = vsub.f32 %v2381_v18, %v2383_v19 }
 0x1ab   : > { %v1556_v57 = vand.u32 2147483647, %v1554_v32  ;;  %v1560_v58 = vmul.f32 0.5, %v1554_v32 }
 0x1ac   : > { %1107 = vperm.xlu1 %2570, %v1077_v21   ;;  %1102 = vperm.xlu0 %2569, %v1076_v22   ;;  %v1514_v21 = vand.u32 2147483647, %v1512_v1  ;;  %v1515_v22 = vand.u32 2147483647, %v1513_v7  ;;  %v3579_v1 = vpop.eup %2595 }
 0x1ad   : > { %v3585_v5 = vpop.eup %2597  ;;  %vm3601_vm4 = vcmp.lt.f32.partialorder %v1556_v57, 1.0  ;;  %v1562_v19 = vmul.f32 %v1560_v58, %v1554_v32  ;;  %v1584_v58 = vmul.f32 %v1582_v40, %v1576_v4 }
 0x1ae   : > { %vm3555_vm0 = vcmp.lt.f32.partialorder %v1514_v21, 1.0  ;;  %vm3559_vm1 = vcmp.lt.f32.partialorder %v1515_v22, 1.0  ;;  %v2373_v42 = vadd.f32 -0.5, %v1514_v21  ;;  %v2374_v43 = vadd.f32 -0.5, %v1515_v22  ;;  %v3596_v14 = vpop.eup %2599  ;;  %v2394_v22 = vld [vmem:[#allocation2 + $0x98] sm:$0xff] }
 0x1af   : > { %v2385_v21 = vadd.f32 -0.5, %v1556_v57  ;;  %v2402_v57 = vld [vmem:[%s3193_s14 + $0xa8] sm:$0xff]  ;;  %v3631_v13 = vpop.eup %2601 }
 0x1b0   : > { %1117 = vperm.xlu1 %2570, %v1079_v23   ;;  %1112 = vperm.xlu0 %2569, %v1078_v24   ;;  %v2382_v23 = vld [vmem:[#allocation2 + $0x78] sm:$0xff]  ;;  %v1524_v7 = vsel %vm3555_vm0, %v1520_v36, %v2373_v42  ;;  %v1525_v8 = vsel %vm3559_vm1, %v1521_v47, %v2374_v43  ;;  %v1578_v36 = vand.u32 2147483647, %v1576_v4  ;;  %v1222_v42 = vmul.f32 2.0, %v2588_v38 }
 0x1b1   : > { %v2384_v24 = vld [vmem:[%s3193_s14 + $0x78] sm:$0xff]  ;;  %v3611_v43 = vmul.f32 0.5, %v2361_v16  ;;  %v1547_v45 = vadd.f32 %v1545_v9, %v1524_v7  ;;  %v1548_v47 = vadd.f32 %v1546_v17, %v1525_v8  ;;  %v1566_v48 = vsel %vm3601_vm4, %v1562_v19, %v2385_v21  ;;  %v1352_v21 = vld [vmem:[%s3193_s14] sm:$0xff] }
 0x1b2   : > { %v1555_v37 = vsub.f32 %v2382_v23, %v2384_v24  ;;  %v2396_v23 = vld [vmem:[%s3193_s14 + $0x98] sm:$0xff]  ;;  %v2362_v24 = vld [vmem:[%s3193_s14 + $0x28] sm:$0xff]  ;;  %v2392_v61 = vadd.f32 -0.5, %v1578_v36  ;;  %vm3627_vm7 = vcmp.lt.f32.partialorder %v1578_v36, 1.0  ;;  %v3635_v17 = vmul.f32 %v3509_v51, %v2361_v16 }
 0x1b3   : > { %v1597_v44 = vsub.f32 %v2394_v22, %v2396_v23  ;;  %v3638_v4 = vmul.f32 %v3514_v59, %v2362_v24  ;;  %v1618_v18 = vsub.f32 %v2400_v56, %v2402_v57  ;;  %v3640_v19 = vadd.f32 -0.5, %v1222_v42 }
 0x1b4   : > { %v1557_v62 = vand.u32 2147483647, %v1555_v37  ;;  %v1561_v63 = vmul.f32 0.5, %v1555_v37  ;;  %v1568_v22 = vadd.f32 %v1566_v48, %v1547_v45  ;;  %v1588_v51 = vsel %vm3627_vm7, %v1584_v58, %v2392_v61  ;;  %v2411_v58 = vld [vmem:[#allocation2 + $0xc0] sm:$0xff] }
 0x1b5   : > { %v1599_v8 = vand.u32 2147483647, %v1597_v44  ;;  %v1603_v9 = vmul.f32 0.5, %v1597_v44  ;;  %v1619_v42 = vand.u32 2147483647, %v1617_v12  ;;  %v1623_v45 = vmul.f32 0.5, %v1617_v12 }
 0x1b6   : > { %v1563_v26 = vmul.f32 %v1561_v63, %v1555_v37  ;;  %v2386_v27 = vadd.f32 -0.5, %v1557_v62  ;;  %vm3607_vm5 = vcmp.lt.f32.partialorder %v1557_v62, 1.0  ;;  %v3615_v37 = vmul.f32 0.5, %v2362_v24  ;;  %v2406_v24 = vld [vmem:[#allocation2 + $0xb8] sm:$0xff]  ;;  %v2413_v61 = vld [vmem:[%s3193_s14 + $0xc0] sm:$0xff] }
 0x1b7   : > { %v1598_v62 = vand.u32 2147483647, %v1596_v41  ;;  %v1602_v63 = vmul.f32 0.5, %v1596_v41  ;;  %v1605_v36 = vmul.f32 %v1603_v9, %v1597_v44  ;;  %v2398_v40 = vadd.f32 -0.5, %v1599_v8 }
 0x1b8   : > { %v1567_v52 = vsel %vm3607_vm5, %v1563_v26, %v2386_v27  ;;  %v1587_v26 = vsel %vm3622_vm6, %v1583_v53, %v2391_v55  ;;  %v2405_v27 = vld [vmem:[#allocation2 + $0xb0] sm:$0xff]  ;;  %vm3656_vm9 = vcmp.lt.f32.partialorder %v1599_v8, 1.0  ;;  %v1620_v48 = vand.u32 2147483647, %v1618_v18 }
 0x1b9   : > { %v1569_v23 = vadd.f32 %v1567_v52, %v1548_v47  ;;  %vm3651_vm8 = vcmp.lt.f32.partialorder %v1598_v62, 1.0  ;;  %v1604_v59 = vmul.f32 %v1602_v63, %v1596_v41  ;;  %v2397_v16 = vadd.f32 -0.5, %v1598_v62  ;;  %v2353_v63 = vld [vmem:[#allocation2 + $0x40] sm:$0xff] }
 0x1ba   : > { %v1624_v49 = vmul.f32 0.5, %v1618_v18  ;;  %v1638_v50 = vsub.f32 %v2405_v27, %v2407_v28  ;;  %v1299_v52 = vmul.f32 2.0, %v3571_v54  ;;  %v3662_v38 = vsub.f32 %v1352_v21, %v3611_v43 }
 0x1bb   : > { %v3666_v41 = vsub.f32 %v3647_v30, %v3615_v37  ;;  %v1639_v44 = vsub.f32 %v2406_v24, %v2408_v31  ;;  %v3668_v53 = vadd.f32 -0.5, %v1223_v0  ;;  %v1589_v55 = vadd.f32 %v1587_v26, %v1568_v22  ;;  %v2412_v22 = vld [vmem:[#allocation2 + $0xc8] sm:$0xff] }
 0x1bc   : > { %v1590_v56 = vadd.f32 %v1588_v51, %v1569_v23  ;;  %v1608_v57 = vsel %vm3651_vm8, %v1604_v59, %v2397_v16  ;;  %v1609_v7 = vsel %vm3656_vm9, %v1605_v36, %v2398_v40  ;;  %vm3679_vm10 = vcmp.lt.f32.partialorder %v1619_v42, 1.0  ;;  %v2414_v23 = vld [vmem:[%s3193_s14 + $0xc8] sm:$0xff] }
 0x1bd   : > { %v1625_v9 = vmul.f32 %v1623_v45, %v1617_v12  ;;  %v2403_v0 = vadd.f32 -0.5, %v1619_v42  ;;  %v2354_v26 = vld [vmem:[#allocation2 + $0x48] sm:$0xff]  ;;  %v1626_v27 = vmul.f32 %v1624_v49, %v1618_v18  ;;  %v2404_v28 = vadd.f32 -0.5, %v1620_v48 }
 0x1be   : > { %v1640_v51 = vand.u32 2147483647, %v1638_v50  ;;  %v1644_v46 = vmul.f32 0.5, %v1638_v50  ;;  %vm3684_vm11 = vcmp.lt.f32.partialorder %v1620_v48, 1.0  ;;  %v1641_v16 = vand.u32 2147483647, %v1639_v44 }
 0x1bf   : > { %v1645_v24 = vmul.f32 0.5, %v1639_v44  ;;  %v1659_v31 = vsub.f32 %v2411_v58, %v2413_v61  ;;  %v1300_v36 = vmul.f32 2.0, %v3573_v60  ;;  %v3690_v40 = vadd.f32 %v3611_v43, %v1352_v21 }
 0x1c0   : > { %v1660_v12 = vsub.f32 %v2412_v22, %v2414_v23  ;;  %v3692_v42 = vclamps-f32 %v2353_v63, 16.118095  ;;  %v1610_v47 = vadd.f32 %v1608_v57, %v1589_v55  ;;  %v1611_v48 = vadd.f32 %v1609_v7, %v1590_v56  ;;  %v2417_v55 = vld [vmem:[#allocation2 + $0xd0] sm:$0xff] }
 0x1c1   : > { %v1629_v49 = vsel %vm3679_vm10, %v1625_v9, %v2403_v0  ;;  %v3700_v32 = vclamps-f32 %v2354_v26, 16.118095  ;;  %v1630_v60 = vsel %vm3684_vm11, %v1626_v27, %v2404_v28  ;;  %vm3704_vm12 = vcmp.lt.f32.partialorder %v1640_v51, 1.0  ;;  %v2419_v56 = vld [vmem:[%s3193_s14 + $0xd0] sm:$0xff] }
 0x1c2   : > { %4049 = vst [vmem:[#allocation70_spill] sm:$0xff] %v3692_v42  ;;  %v1646_v21 = vmul.f32 %v1644_v46, %v1638_v50  ;;  %v2409_v58 = vadd.f32 -0.5, %v1640_v51  ;;  %v1647_v61 = vmul.f32 %v1645_v24, %v1639_v44  ;;  %v2410_v63 = vadd.f32 -0.5, %v1641_v16  ;;  %v2420_v24 = vld [vmem:[%s3193_s14 + $0xd8] sm:$0xff] }
 0x1c3   : > { %4050 = vst [vmem:[#allocation71_spill] sm:$0xff] %v3700_v32  ;;  %v1661_v22 = vand.u32 2147483647, %v1659_v31  ;;  %v1665_v23 = vmul.f32 0.5, %v1659_v31  ;;  %vm3709_vm13 = vcmp.lt.f32.partialorder %v1641_v16, 1.0  ;;  %v1666_v8 = vmul.f32 0.5, %v1660_v12 }
 0x1c4   : > { %v1662_v7 = vand.u32 2147483647, %v1660_v12  ;;  %v1733_v9 = vand.u32 2147483647, %v3692_v42  ;;  %v3718_v50 = vmul.f32 %v1299_v52, %v1299_v52  ;;  %v3724_v44 = vadd.f32 %v3640_v19, %v1230_v2  ;;  %v2418_v52 = vld [vmem:[#allocation2 + $0xd8] sm:$0xff] }
 0x1c5   : > { %v3728_v27 = vadd.f32 %v3615_v37, %v3647_v30  ;;  %v1734_v28 = vand.u32 2147483647, %v3700_v32  ;;  %v1205_v51 = vmul.f32 2.0, %v3579_v1  ;;  %v1206_v46 = vmul.f32 2.0, %v3585_v5 }
 0x1c6   : > { %v1631_v59 = vadd.f32 %v1629_v49, %v1610_v47  ;;  %v1632_v16 = vadd.f32 %v1630_v60, %v1611_v48  ;;  %v1650_v6 = vsel %vm3704_vm12, %v1646_v21, %v2409_v58  ;;  %v1651_v2 = vsel %vm3709_vm13, %v1647_v61, %v2410_v63 }
 0x1c7   : > { %v1667_v19 = vmul.f32 %v1665_v23, %v1659_v31  ;;  %v1680_v37 = vsub.f32 %v2417_v55, %v2419_v56  ;;  %v1668_v30 = vmul.f32 %v1666_v8, %v1660_v12  ;;  %v2415_v3 = vadd.f32 -0.5, %v1661_v22  ;;  %v2423_v55 = vld [vmem:[#allocation2 + $0xe0] sm:$0xff]  ;;  %v2424_v56 = vld [vmem:[#allocation2 + $0xe8] sm:$0xff] }
 0x1c8   : > { %v2416_v32 = vadd.f32 -0.5, %v1662_v7  ;;  %v1735_v42 = vsub.f32 0.0, %v1733_v9  ;;  %vm3740_vm15 = vcmp.lt.f32.partialorder %v1661_v22, 1.0  ;;  %vm3744_vm0 = vcmp.lt.f32.partialorder %v1662_v7, 1.0 }
 0x1c9   : > { %v1681_v49 = vsub.f32 %v2418_v52, %v2420_v24  ;;  %v1736_v60 = vsub.f32 0.0, %v1734_v28  ;;  %vm1279_vm1 = vcmask 1042434   ;;  %v2355_v31 = vadd.f32 -0.5, %v1205_v51 }
 0x1ca   : > { %v2356_v12 = vadd.f32 -0.5, %v1206_v46  ;;  %v1239_v43 = vmul.f32 2.0, %v3596_v14  ;;  %v1240_v21 = vmul.f32 2.0, %v3631_v13  ;;  %v3750_v58 = vmul.f32 %v1300_v36, %v1300_v36  ;;  %v2425_v13 = vld [vmem:[%s3193_s14 + $0xe0] sm:$0xff]  ;;  %v2426_v36 = vld [vmem:[%s3193_s14 + $0xe8] sm:$0xff] }
 0x1cb   : > { %v4059_v61 = vrot.slane %v3542_v33, %v3523_v11  ;;  %v1652_v22 = vadd.f32 %v1650_v6, %v1631_v59  ;;  %v1653_v23 = vadd.f32 %v1651_v2, %v1632_v16  ;;  %v1671_v57 = vsel %vm3740_vm15, %v1667_v19, %v2415_v3 }
 0x1cc   : > { %v1672_v14 = vsel %vm3744_vm0, %v1668_v30, %v2416_v32  ;;  %v1682_v7 = vand.u32 2147483647, %v1680_v37  ;;  %v1737_v8 = vmul.f32 1.442695, %v1735_v42  ;;  %v1683_v28 = vand.u32 2147483647, %v1681_v49 }
 0x1cd   : > { %v3756_v63 = vadd.f32 %v3668_v53, %v4059_v61  ;;  %v1686_v53 = vmul.f32 0.5, %v1680_v37  ;;  %v1687_v51 = vmul.f32 0.5, %v1681_v49  ;;  %v1739_v6 = vmul.f32 1.442695, %v1736_v60 }
 0x1ce   : > { %v3764_v46 = vmul.f32 %v1239_v43, %v1239_v43  ;;  %v3766_v59 = vmul.f32 %v1240_v21, %v1240_v21  ;;  %v4060_v3 = vrot.slane %v3553_v39, %v3521_v10  ;;  %v4061_v42 = vrot.slane %v3553_v39, %v3523_v11 }
 0x1cf   : > { %vm1288_vm4 = vcmask 1045509   ;;  %v1673_v52 = vadd.f32 %v1671_v57, %v1652_v22  ;;  %v1674_v24 = vadd.f32 %v1672_v14, %v1653_v23  ;;  %v1701_v2 = vsub.f32 %v2423_v55, %v2425_v13 }
 0x1d0   : > { %v3771_v32 = vadd.f32 %v2355_v31, %v4060_v3  ;;  %v3776_v16 = vadd.f32 %v2356_v12, %v4061_v42  ;;  %v1702_v19 = vsub.f32 %v2424_v56, %v2426_v36  ;;  %vm1291_vm5 = vcmask 1046534  }
 0x1d1   : > { %vm3780_vm6 = vcmp.lt.f32.partialorder %v1682_v7, 1.0  ;;  %2603 = vpow2.f32 %v1737_v8  ;;  %vm1294_vm7 = vcmask 1047559   ;;  %vm3784_vm8 = vcmp.lt.f32.partialorder %v1683_v28, 1.0 }
 0x1d2   : > { %v1688_v39 = vmul.f32 %v1686_v53, %v1680_v37  ;;  %v1689_v31 = vmul.f32 %v1687_v51, %v1681_v49  ;;  %2605 = vpow2.f32 %v1739_v6  ;;  %v2421_v12 = vadd.f32 -0.5, %v1682_v7 }
 0x1d3   : > { %v2422_v43 = vadd.f32 -0.5, %v1683_v28  ;;  %v1707_v22 = vmul.f32 0.5, %v1701_v2  ;;  %v1708_v23 = vmul.f32 0.5, %v1702_v19  ;;  %v1703_v37 = vand.u32 2147483647, %v1701_v2 }
 0x1d4   : > { %v1704_v49 = vand.u32 2147483647, %v1702_v19  ;;  %vm1815_vm15 = vcmask 1040384   ;;  %vm1818_vm0 = vcmask 1041408  }
 0x1d5   : > { %v3801_v28 = vmul.f32 %v1707_v22, %v1701_v2  ;;  %v3803_v53 = vmul.f32 %v1708_v23, %v1702_v19  ;;  %vm3813_vm9 = vcmp.lt.f32.partialorder %v1703_v37, 1.0 }
 0x1d6   : > { %v3809_v6 = vadd.f32 -0.5, %v1704_v49  ;;  %vm3817_vm10 = vcmp.lt.f32.partialorder %v1704_v49, 1.0 }
 0x1d8   : > { %v1714_v23 = vsel %vm3817_vm10, %v3803_v53, %v3809_v6 }
 0x1db   : > { %v2604_v19 = vpop.eup %2603 }
 0x203   : > { %v3673_v62 = vpop.permute.xlu1 %1253  ;;  %v3675_v54 = vpop.permute.xlu0 %1249 }
 0x204   : > { %v1275_v30 = vrot.slane %v3675_v54, 7  ;;  %v1278_v21 = vrot.slane %v3673_v62, 6 }
 0x207   : > { %v3694_v18 = vpop.permute.xlu1 %1313  ;;  %v3696_v45 = vpop.permute.xlu0 %1309 }
 0x208   : > { %v1335_v47 = vrot.slane %v3696_v45, 7  ;;  %v1337_v61 = vrot.slane %v3694_v18, 6  ;;  %v1692_v18 = vsel %vm3780_vm6, %v1688_v39, %v2421_v12 }
 0x209   : > { %v3825_v12 = vadd.f32 %v1692_v18, %v1673_v52 }
 0x20b   : > { %v3714_v0 = vpop.permute.xlu1 %1257  ;;  %v3716_v26 = vpop.permute.xlu0 %1245 }
 0x20c   : > { %v1277_v54 = vsel %vm1276_vm14, %v1275_v30, %v3716_v26  ;;  %v1281_v55 = vrot.slane %v3714_v0, 5  ;;  %v1693_v0 = vsel %vm3784_vm8, %v1689_v31, %v2422_v43  ;;  %v2606_v31 = vpop.eup %2605 }
 0x20d   : > { %v1280_v57 = vsel %vm1279_vm1, %v1278_v21, %v1277_v54  ;;  %v3827_v43 = vadd.f32 %v1693_v0, %v1674_v24 }
 0x20e   : > { %v1283_v51 = vsel %vm1282_vm2, %v1281_v55, %v1280_v57 }
 0x20f   : > { %v3738_v1 = vpop.permute.xlu1 %1317  ;;  %v1306_v5 = vpop.permute.xlu0 %1305 }
 0x210   : > { %v1336_v45 = vsel %vm1276_vm14, %v1335_v47, %v1306_v5  ;;  %v1339_v56 = vrot.slane %v3738_v1, 5 }
 0x211   : > { %v1338_v26 = vsel %vm1279_vm1, %v1337_v61, %v1336_v45 }
 0x213   : > { %v1322_v9 = vpop.permute.xlu1 %1321  ;;  %v1262_v33 = vpop.permute.xlu0 %1261 }
 0x214   : > { %v1341_v14 = vrot.slane %v1322_v9, 4  ;;  %v1284_v5 = vrot.slane %v1262_v33, 4  ;;  %v1340_v9 = vsel %vm1282_vm2, %v1339_v56, %v1338_v26  ;;  %v3807_v33 = vadd.f32 -0.5, %v1703_v37 }
 0x216   : > { %v1342_v3 = vsel %vm1285_vm3, %v1341_v14, %v1340_v9  ;;  %v1286_v42 = vsel %vm1285_vm3, %v1284_v5, %v1283_v51  ;;  %v1713_v22 = vsel %vm3813_vm9, %v3801_v28, %v3807_v33  ;;  %v3849_v14 = vadd.f32 1.0, %v2604_v19 }
 0x217   : > { %v1326_v10 = vpop.permute.xlu1 %1325  ;;  %v1266_v60 = vpop.permute.xlu0 %1265  ;;  %v3851_v5 = vadd.f32 1.0, %v2606_v31 }
 0x218   : > { %v1343_v36 = vrot.slane %v1326_v10, 3  ;;  %v1287_v62 = vrot.slane %v1266_v60, 3  ;;  %2607 = vlog2.f32 %v3849_v14 }
 0x21a   : > { %v1344_v10 = vsel %vm1288_vm4, %v1343_v36, %v1342_v3  ;;  %v1289_v60 = vsel %vm1288_vm4, %v1287_v62, %v1286_v42 }
 0x21b   : > { %v1330_v7 = vpop.permute.xlu1 %1329  ;;  %v1270_v13 = vpop.permute.xlu0 %1269 }
 0x21c   : > { %v1345_v8 = vrot.slane %v1330_v7, 2  ;;  %v1290_v1 = vrot.slane %v1270_v13, 2 }
 0x21e   : > { %v1346_v54 = vsel %vm1291_vm5, %v1345_v8, %v1344_v10  ;;  %v1292_v45 = vsel %vm1291_vm5, %v1290_v1, %v1289_v60 }
 0x21f   : > { %v1334_v30 = vpop.permute.xlu1 %1333  ;;  %v1274_v47 = vpop.permute.xlu0 %1273 }
 0x220   : > { %v1347_v11 = vrot.slane %v1334_v30, 1  ;;  %v1293_v39 = vrot.slane %v1274_v47, 1 }
 0x222   : > { %v1348_v21 = vsel %vm1294_vm7, %v1347_v11, %v1346_v54  ;;  %v1295_v61 = vsel %vm1294_vm7, %v1293_v39, %v1292_v45  ;;  %v2608_v48 = vpop.eup %2607 }
 0x223   : > { %v1350_v55 = vmul.f32 %v1348_v21, %v3718_v50  ;;  %v1351_v52 = vmul.f32 %v1348_v21, %v3750_v58  ;;  %v1297_v24 = vmul.f32 %v1295_v61, %v3764_v46  ;;  %v1298_v56 = vmul.f32 %v1295_v61, %v3766_v59  ;;  %v1093_v37 = vpop.permute.xlu1 %1092  ;;  %v1088_v49 = vpop.permute.xlu0 %1087 }
 0x224   : > { %v3844_v57 = vmul.f32 %v3545_v34, %v1093_v37  ;;  %v3847_v26 = vmul.f32 %v3548_v35, %v1093_v37  ;;  %v3854_v59 = vmul.f32 %v3545_v34, %v1088_v49  ;;  %v3857_v62 = vmul.f32 %v3548_v35, %v1088_v49 }
 0x225   : > { %v1375_v7 = vmul.f32 0.5, %v1350_v55  ;;  %v1376_v50 = vmul.f32 0.5, %v1351_v52  ;;  %v1369_v13 = vmul.f32 0.5, %v1297_v24  ;;  %v1370_v58 = vmul.f32 0.5, %v1298_v56 }
 0x226   : > { %v1411_v36 = vmul.f32 %v1350_v55, %v1297_v24  ;;  %v1412_v46 = vmul.f32 %v1351_v52, %v1298_v56 }
 0x227   : > { %v1377_v18 = vsub.f32 %v3724_v44, %v1375_v7  ;;  %v1378_v0 = vsub.f32 %v3756_v63, %v1376_v50  ;;  %v1379_v8 = vadd.f32 %v1375_v7, %v3724_v44  ;;  %v1380_v1 = vadd.f32 %v1376_v50, %v3756_v63  ;;  %v1098_v54 = vpop.permute.xlu1 %1097 }
 0x228   : > { %v1371_v51 = vsub.f32 %v3771_v32, %v1369_v13  ;;  %v1372_v9 = vsub.f32 %v3776_v16, %v1370_v58  ;;  %v1373_v3 = vadd.f32 %v1369_v13, %v3771_v32  ;;  %v1374_v42 = vadd.f32 %v1370_v58, %v3776_v16 }
 0x229   : > { %v1401_v30 = vmin.f32 %v1379_v8, %v3532_v20  ;;  %v1402_v47 = vmin.f32 %v1380_v1, %v3537_v29  ;;  %v1403_v19 = vmax.f32 %v1377_v18, %v3529_v15  ;;  %v1404_v10 = vmax.f32 %v1378_v0, %v3535_v25 }
 0x22a   : > { %v1427_v44 = vmax.f32 %v1379_v8, %v3532_v20  ;;  %v1428_v63 = vmax.f32 %v1380_v1, %v3537_v29  ;;  %v1429_v60 = vmin.f32 %v1377_v18, %v3529_v15  ;;  %v1430_v11 = vmin.f32 %v1378_v0, %v3535_v25  ;;  %v1083_v20 = vpop.permute.xlu0 %1082 }
 0x22b   : > { %v1405_v39 = vsub.f32 %v1401_v30, %v1403_v19  ;;  %v1406_v32 = vsub.f32 %v1402_v47, %v1404_v10  ;;  %v1393_v16 = vmin.f32 %v1373_v3, %v3690_v40  ;;  %v1394_v31 = vmin.f32 %v1374_v42, %v3728_v27  ;;  %v3898_v30 = vld [vmem:[%s3193_s14 + $0x40] sm:$0xff] }
 0x22c   : > { %v1431_v45 = vsub.f32 %v1427_v44, %v1429_v60  ;;  %v1432_v21 = vsub.f32 %v1428_v63, %v1430_v11  ;;  %v1395_v61 = vmax.f32 %v1371_v51, %v3662_v38  ;;  %v1396_v55 = vmax.f32 %v1372_v9, %v3666_v41 }
 0x22d   : > { %v1407_v52 = vmax.f32 %v1405_v39, 0.0  ;;  %v1408_v29 = vmax.f32 %v1406_v32, 0.0  ;;  %v1473_v15 = vrot.slane %v3844_v57, 6  ;;  %v1487_v25 = vrot.slane %v3847_v26, 6 }
 0x22e   : > { %v1397_v24 = vsub.f32 %v1393_v16, %v1395_v61  ;;  %v1398_v56 = vsub.f32 %v1394_v31, %v1396_v55  ;;  %v1415_v37 = vadd.f32 %v3635_v17, %v1411_v36  ;;  %v1416_v49 = vadd.f32 %v3638_v4, %v1412_v46  ;;  %v1108_v36 = vpop.permute.xlu1 %1107  ;;  %v1103_v46 = vpop.permute.xlu0 %1102 }
 0x22f   : > { %v1419_v7 = vmax.f32 %v1373_v3, %v3690_v40  ;;  %v1420_v50 = vmax.f32 %v1374_v42, %v3728_v27  ;;  %v1421_v13 = vmin.f32 %v1371_v51, %v3662_v38  ;;  %v1422_v58 = vmin.f32 %v1372_v9, %v3666_v41 }
 0x230   : > { %v1433_v18 = vmax.f32 %v1431_v45, 0.0  ;;  %v1434_v0 = vmax.f32 %v1432_v21, 0.0  ;;  %v1399_v8 = vmax.f32 %v1397_v24, 0.0  ;;  %v1400_v57 = vmax.f32 %v1398_v56, 0.0 }
 0x231   : > { %v1423_v26 = vsub.f32 %v1419_v7, %v1421_v13  ;;  %v1424_v1 = vsub.f32 %v1420_v50, %v1422_v58  ;;  %v1471_v17 = vrot.slane %v3854_v59, 7  ;;  %v1137_v4 = vmul.f32 %v3545_v34, %v1098_v54  ;;  %v3901_v59 = vld [vmem:[%s3193_s14 + $0x48] sm:$0xff]  ;;  %v2367_v7 = vld [vmem:[%s3193_s14 + $0xf0] sm:$0xff] }
 0x232   : > { %v3889_v40 = vmul.f32 %v1407_v52, %v1399_v8  ;;  %v3891_v27 = vmul.f32 %v1408_v29, %v1400_v57  ;;  %v1131_v38 = vmul.f32 %v3545_v34, %v1083_v20  ;;  %v1132_v41 = vmul.f32 %v3548_v35, %v1083_v20  ;;  %v1118_v61 = vpop.permute.xlu1 %1117  ;;  %v1113_v29 = vpop.permute.xlu0 %1112 }
 0x233   : > { %v1425_v51 = vmax.f32 %v1423_v26, 0.0  ;;  %v1426_v9 = vmax.f32 %v1424_v1, 0.0  ;;  %v1485_v3 = vrot.slane %v3857_v62, 7  ;;  %v1138_v42 = vmul.f32 %v3548_v35, %v1098_v54 }
 0x234   : > { %v3904_v47 = vsub.f32 %v1415_v37, %v3889_v40  ;;  %v3907_v19 = vsub.f32 %v1416_v49, %v3891_v27  ;;  %v1475_v10 = vrot.slane %v1137_v4, 5  ;;  %v1472_v44 = vsel %vm1276_vm14, %v1471_v17, %v1131_v38 }
 0x235   : > { %v3910_v63 = vmul.f32 %v1433_v18, %v1425_v51  ;;  %v3912_v60 = vmul.f32 %v1434_v0, %v1426_v9  ;;  %v1474_v62 = vsel %vm1279_vm1, %v1473_v15, %v1472_v44  ;;  %v1486_v11 = vsel %vm1276_vm14, %v1485_v3, %v1132_v41 }
 0x236   : > { %v1437_v39 = vadd.f32 1e-09, %v3904_v47  ;;  %v1438_v32 = vadd.f32 1e-09, %v3907_v19  ;;  %v1141_v16 = vmul.f32 %v3545_v34, %v1108_v36  ;;  %v1142_v31 = vmul.f32 %v3548_v35, %v1108_v36 }
 0x237   : > { %vm1453_vm11 = vcmp.eq.f32.partialorder %v3898_v30, 1.0  ;;  %vm1454_vm12 = vcmp.eq.f32.partialorder %v3901_v59, 1.0  ;;  %v1441_v54 = vadd.f32 1e-09, %v3910_v63  ;;  %v1442_v45 = vadd.f32 1e-09, %v3912_v60 }
 0x238   : > { %v1489_v21 = vrot.slane %v1138_v42, 5  ;;  %2609 = vrcp.f32 %v1437_v39  ;;  %v1488_v55 = vsel %vm1279_vm1, %v1487_v25, %v1486_v11  ;;  %v1479_v20 = vrot.slane %v1141_v16, 3  ;;  %v2368_v25 = vld [vmem:[%s3193_s14 + $0xf8] sm:$0xff] }
 0x239   : > { %v1139_v52 = vmul.f32 %v3545_v34, %v1103_v46  ;;  %2611 = vrcp.f32 %v1438_v32  ;;  %v1493_v15 = vrot.slane %v1142_v31, 3  ;;  %v1140_v24 = vmul.f32 %v3548_v35, %v1103_v46 }
 0x23a   : > { %v1476_v56 = vsel %vm1282_vm2, %v1475_v10, %v1474_v62  ;;  %2613 = vrcp.f32 %v1441_v54  ;;  %v1145_v49 = vmul.f32 %v3545_v34, %v1118_v61  ;;  %v1146_v14 = vmul.f32 %v3548_v35, %v1118_v61 }
 0x23b   : > { %v1477_v37 = vrot.slane %v1139_v52, 4  ;;  %2615 = vrcp.f32 %v1442_v45  ;;  %v1491_v50 = vrot.slane %v1140_v24, 4  ;;  %v1143_v13 = vmul.f32 %v3545_v34, %v1113_v29 }
 0x23c   : > { %v1144_v58 = vmul.f32 %v3548_v35, %v1113_v29  ;;  %v1490_v0 = vsel %vm1282_vm2, %v1489_v21, %v1488_v55  ;;  %v1483_v8 = vrot.slane %v1145_v49, 1  ;;  %v1497_v57 = vrot.slane %v1146_v14, 1  ;;  %v4071_v21 = vld [vmem:[#allocation71_spill] sm:$0xff] }
 0x23d   : > { %v1478_v18 = vsel %vm1285_vm3, %v1477_v37, %v1476_v56  ;;  %v1492_v26 = vsel %vm1285_vm3, %v1491_v50, %v1490_v0  ;;  %vm1503_vm13 = vcmp.eq.f32.partialorder %v2367_v7, 0.0  ;;  %v1481_v1 = vrot.slane %v1143_v13, 2 }
 0x23e   : > { %v1495_v17 = vrot.slane %v1144_v58, 2  ;;  %vm1504_vm14 = vcmp.eq.f32.partialorder %v2368_v25, 0.0  ;;  %v1715_v34 = vadd.f32 %v1713_v22, %v3825_v12  ;;  %v1480_v35 = vsel %vm1288_vm4, %v1479_v20, %v1478_v18 }
 0x23f   : > { %v1494_v4 = vsel %vm1288_vm4, %v1493_v15, %v1492_v26  ;;  %v1716_v36 = vadd.f32 %v1714_v23, %v3827_v43  ;;  %v1482_v38 = vsel %vm1291_vm5, %v1481_v1, %v1480_v35  ;;  %2617 = vlog2.f32 %v3851_v5 }
 0x240   : > { %v1496_v41 = vsel %vm1291_vm5, %v1495_v17, %v1494_v4  ;;  %v3956_v28 = vsel %vm1294_vm7, %v1483_v8, %v1482_v38  ;;  %v1447_v46 = vsub.f32 %v3910_v63, %v3904_v47  ;;  %v1448_v10 = vsub.f32 %v3912_v60, %v3907_v19 }
 0x241   : > { %v3959_v33 = vsel %vm1294_vm7, %v1497_v57, %v1496_v41  ;;  %v1501_v2 = vsel %vm1453_vm11, %v3956_v28, 0.0  ;;  %v1505_v6 = vsel %vm1503_vm13, %v3956_v28, 0.0  ;;  %v1728_v47 = vmax.f32 %v4071_v21, 0.0 }
 0x242   : > { %v1502_v53 = vsel %vm1454_vm12, %v3959_v33, 0.0  ;;  %v1506_v12 = vsel %vm1504_vm14, %v3959_v33, 0.0  ;;  %v2610_v43 = vpop.eup %2609  ;;  %v1717_v22 = vmul.f32 %v1715_v34, %v1505_v6  ;;  %v1767_v9 = vrot.slane %v1501_v2, 4 }
 0x243   : > { %v2612_v23 = vpop.eup %2611  ;;  %v1445_v5 = vmul.f32 %v2610_v43, %v3889_v40  ;;  %v1718_v51 = vmul.f32 %v1716_v36, %v1506_v12  ;;  %v1773_v44 = vrot.slane %v1502_v53, 4  ;;  %v4070_v40 = vld [vmem:[#allocation70_spill] sm:$0xff]  ;;  %v1744_v55 = vmul.f32 0.6931472, %v2608_v48 }
 0x244   : > { %v2614_v3 = vpop.eup %2613  ;;  %v1446_v42 = vmul.f32 %v2612_v23, %v3891_v27  ;;  %v1779_v32 = vrot.slane %v1717_v22, 4  ;;  %v1768_v31 = vadd.f32 %v1767_v9, %v1501_v2  ;;  %v1727_v45 = vmax.f32 %v4070_v40, 0.0 }
 0x245   : > { %v2616_v62 = vpop.eup %2615  ;;  %v1449_v11 = vmul.f32 %v2614_v3, %v1447_v46  ;;  %v1785_v54 = vrot.slane %v1718_v51, 4  ;;  %v1774_v61 = vadd.f32 %v1773_v44, %v1502_v53  ;;  %v1791_v52 = vrot.slane %v1505_v6, 4 }
 0x246   : > { %v1450_v39 = vmul.f32 %v2616_v62, %v1448_v10  ;;  %v1780_v15 = vadd.f32 %v1779_v32, %v1717_v22  ;;  %v1797_v24 = vrot.slane %v1506_v12, 4  ;;  %v1769_v49 = vrot.slane %v1768_v31, 2 }
 0x247   : > { %v1451_v16 = vsub.f32 %v1445_v5, %v1449_v11  ;;  %v1786_v14 = vadd.f32 %v1785_v54, %v1718_v51  ;;  %v1775_v13 = vrot.slane %v1774_v61, 2  ;;  %v1792_v8 = vadd.f32 %v1791_v52, %v1505_v6 }
 0x248   : > { %v1452_v63 = vsub.f32 %v1446_v42, %v1450_v39  ;;  %v1781_v1 = vrot.slane %v1780_v15, 2  ;;  %v1798_v30 = vadd.f32 %v1797_v24, %v1506_v12  ;;  %v1770_v35 = vadd.f32 %v1769_v49, %v1768_v31 }
 0x249   : > { %v1719_v20 = vmax.f32 %v1451_v16, 0.0  ;;  %v1751_v27 = vsub.f32 1.0, %v1451_v16  ;;  %v2618_v29 = vpop.eup %2617  ;;  %v1787_v4 = vrot.slane %v1786_v14, 2  ;;  %v1776_v38 = vadd.f32 %v1775_v13, %v1774_v61 }
 0x24a   : > { %v1720_v19 = vmax.f32 %v1452_v63, 0.0  ;;  %v1752_v60 = vsub.f32 1.0, %v1452_v63  ;;  %v1746_v58 = vmul.f32 0.6931472, %v2618_v29  ;;  %v1782_v22 = vadd.f32 %v1781_v1, %v1780_v15 }
 0x24b   : > { %v1721_v56 = vsel %vm1453_vm11, %v1719_v20, 0.0  ;;  %v1753_v37 = vmul.f32 %v1751_v27, %v1501_v2  ;;  %v1793_v2 = vrot.slane %v1792_v8, 2  ;;  %v1799_v23 = vrot.slane %v1798_v30, 2 }
 0x24c   : > { %v1722_v7 = vsel %vm1454_vm12, %v1720_v19, 0.0  ;;  %v1729_v50 = vmul.f32 %v4070_v40, %v1721_v56  ;;  %v1754_v25 = vmul.f32 %v1752_v60, %v1502_v53  ;;  %v1771_v46 = vrot.slane %v1770_v35, 1 }
 0x24d   : > { %v1730_v18 = vmul.f32 %v4071_v21, %v1722_v7  ;;  %v1755_v0 = vrot.slane %v1753_v37, 4  ;;  %v1788_v12 = vadd.f32 %v1787_v4, %v1786_v14  ;;  %v1777_v9 = vrot.slane %v1776_v38, 1 }
 0x24e   : > { %v1731_v57 = vsub.f32 %v1727_v45, %v1729_v50  ;;  %v1761_v26 = vrot.slane %v1754_v25, 4  ;;  %v1794_v10 = vadd.f32 %v1793_v2, %v1792_v8  ;;  %v1783_v11 = vrot.slane %v1782_v22, 1 }
 0x24f   : > { %v1732_v17 = vsub.f32 %v1728_v47, %v1730_v18  ;;  %v1756_v34 = vadd.f32 %v1755_v0, %v1753_v37  ;;  %v1800_v39 = vadd.f32 %v1799_v23, %v1798_v30  ;;  %v1772_v16 = vadd.f32 %v1771_v46, %v1770_v35 }
 0x250   : > { %v1747_v36 = vadd.f32 %v1744_v55, %v1731_v57  ;;  %v1762_v59 = vadd.f32 %v1761_v26, %v1754_v25  ;;  %v1789_v31 = vrot.slane %v1788_v12, 1  ;;  %v1795_v21 = vrot.slane %v1794_v10, 1 }
 0x251   : > { %v1748_v41 = vadd.f32 %v1746_v58, %v1732_v17  ;;  %v1757_v48 = vrot.slane %v1756_v34, 2  ;;  %v1784_v61 = vadd.f32 %v1783_v11, %v1782_v22  ;;  %v1801_v55 = vrot.slane %v1800_v39, 1 }
 0x252   : > { %v1749_v53 = vmul.f32 %v1747_v36, %v3956_v28  ;;  %v1763_v43 = vrot.slane %v1762_v59, 2  ;;  %v1790_v52 = vadd.f32 %v1789_v31, %v1788_v12  ;;  %vm1821_vm1 = vcmask 1042432  }
 0x253   : > { %v1750_v6 = vmul.f32 %v1748_v41, %v3959_v33  ;;  %v1758_v5 = vadd.f32 %v1757_v48, %v1756_v34  ;;  %v1778_v33 = vadd.f32 %v1777_v9, %v1776_v38  ;;  %vm1824_vm2 = vcmask 1043456  }
 0x254   : > { %v1764_v51 = vadd.f32 %v1763_v43, %v1762_v59  ;;  %v1803_v3 = vrot.slane %v1749_v53, 4  ;;  %v1796_v15 = vadd.f32 %v1795_v21, %v1794_v10  ;;  %v1802_v37 = vadd.f32 %v1801_v55, %v1800_v39 }
 0x255   : > { %v1759_v42 = vrot.slane %v1758_v5, 1  ;;  %v1809_v44 = vrot.slane %v1750_v6, 4 }
 0x256   : > { %v1765_v62 = vrot.slane %v1764_v51, 1  ;;  %v1804_v32 = vadd.f32 %v1803_v3, %v1749_v53 }
 0x257   : > { %v1760_v28 = vadd.f32 %v1759_v42, %v1758_v5  ;;  %v1810_v54 = vadd.f32 %v1809_v44, %v1750_v6 }
 0x258   : > { %v1766_v40 = vadd.f32 %v1765_v62, %v1764_v51  ;;  %v1805_v45 = vrot.slane %v1804_v32, 2 }
 0x259   : > { %v1811_v47 = vrot.slane %v1810_v54, 2  ;;  %v1816_v63 = vsel %vm1815_vm15, %v1760_v28, %v1772_v16 }
 0x25a   : > { %v1806_v20 = vadd.f32 %v1805_v45, %v1804_v32  ;;  %v1817_v27 = vsel %vm1815_vm15, %v1766_v40, %v1778_v33  ;;  %v1819_v60 = vsel %vm1818_vm0, %v1816_v63, %v1784_v61 }
 0x25b   : > { %v1812_v29 = vadd.f32 %v1811_v47, %v1810_v54  ;;  %v1820_v56 = vsel %vm1818_vm0, %v1817_v27, %v1790_v52  ;;  %v1822_v7 = vsel %vm1821_vm1, %v1819_v60, %v1796_v15 }
 0x25c   : > { %v1807_v19 = vrot.slane %v1806_v20, 1  ;;  %v1823_v50 = vsel %vm1821_vm1, %v1820_v56, %v1802_v37 }
 0x25d   : > { %v1813_v24 = vrot.slane %v1812_v29, 1 }
 0x25e   : > { %v1808_v49 = vadd.f32 %v1807_v19, %v1806_v20 }
 0x25f   : > { %v1814_v14 = vadd.f32 %v1813_v24, %v1812_v29 }
 0x260   : > { %v1825_v25 = vsel %vm1824_vm2, %v1822_v7, %v1808_v49 }
 0x261   : > { %v1826_v13 = vsel %vm1824_vm2, %v1823_v50, %v1814_v14  ;;  %1830 = vst [vmem:[%s3207_s26] sm:$0x1f] %v1825_v25 }
 0x262   : > { %1831 = vst [vmem:[%s3207_s26 + $0x8] sm:$0x1f] %v1826_v13 }
 0x263 PF: > { %s17_s20 = sadd.s32 1, %s3061_s20   ;;  %s4072_s15 = smov %s3045_s16 }
 0x264   : > { %p14_p9 = scmp.ge.s32.totalorder %s17_s20, 4   ;;  %s4073_s16 = smov %s3049_s17 }
 0x265   : > { %s4074_s17 = smov %s3143_s27  ;;  %s4075_s18 = smov %s3057_s19 }
 0x266   : > { %s4076_s19 = smov %s4078_s22  ;;  %16 = sbr.rel (!%p14_p9) target bundleno = 6 (0x6), region = 310 }
 0x26d   :  { %1872 = vsyncpa [#allocation5], 1 }
 0x26e   :  { %1874 = vsyncpa [#allocation5 + $0x1], 1 }
 0x26f   :  { %1875 = vsyncmov [#allocation3] }
 0x272   :  { %s1876_s14 = vpop.sfrf %1875 }
 0x273   :  { %p2433_p10 = scmp.ne.s32.totalorder %s1876_s14, 0 }
 0x275   :  { %1880 = shalt.err (%p2433_p10)  }
 0x276   :  { %1882 = vsyncmov [#allocation3 + $0x1] }
 0x279   :  { %s1883_s26 = vpop.sfrf %1882 }
 0x27a   :  { %p2434_p7 = scmp.ne.s32.totalorder %s1883_s26, 0 }
 0x27c   :  { %1887 = shalt.err (%p2434_p7)  }

</bundles_post_ra>
